<compile_context>
chip_gen: v7x
topology: tpu7x:2x2x1
jax: 0.10.0
libtpu: 0.0.40
codegen_flags: <defaults>
</compile_context>

<pallas_src>
import jax
import jax.numpy as jnp
import numpy as np
from jax import lax
from jax.experimental import pallas as pl
from jax.experimental.pallas import tpu as pltpu


def _make_fused_block_kernel(H, W, C, compute_dtype):
    HW = H * W
    taps = [(dh, dw) for dh in range(3) for dw in range(3)]

    def kernel(x_ref, res_ref, w1_ref, b1_ref, w2t_ref, b2_ref, out_ref,
               pad_ref, patch_ref):
        # Zero the padded scratch once per image; only its interior is
        # overwritten below, so the 1-pixel halo ring stays zero (in-kernel
        # padding, no wrapper jnp.pad / extra HBM pass).
        pad_ref[...] = jnp.zeros_like(pad_ref)

        def conv3x3_im2col(inp_hwc):
            # Write the interior of the zero-padded tile.
            pad_ref[1:H + 1, 1:W + 1, :] = inp_hwc
            # im2col: tap t = (dh, dw) occupies lanes [t*C, (t+1)*C) of the
            # patch matrix -> one deep-K matmul instead of 9 shallow ones.
            for t, (dh, dw) in enumerate(taps):
                patch_ref[:, t * C:(t + 1) * C] = (
                    pad_ref[dh:dh + H, dw:dw + W, :].reshape(HW, C))
            return patch_ref[...].astype(compute_dtype)        # (HW, 9C)

        # ---- stage 1: conv1 * bn1_scale + bn1_bias, ReLU ----------------
        x = x_ref[0]                                           # (H, W, C) f32
        p1 = conv3x3_im2col(x)
        h = jnp.dot(p1, w1_ref[...], preferred_element_type=jnp.float32)
        h = jnp.maximum(h + b1_ref[...], 0.0)                  # (HW, C) f32

        # ---- stage 2: conv2 * bn2_scale + bn2_bias + residual, ReLU -----
        p2 = conv3x3_im2col(h.reshape(H, W, C))
        # (C, 9C) x (HW, 9C)^T -> (C, HW): channel-major result, so the
        # store is lane-dense (HW lanes) and already in NCHW layout.
        o = lax.dot_general(w2t_ref[...], p2,
                            (((1,), (1,)), ((), ())),
                            preferred_element_type=jnp.float32)
        o = o + b2_ref[...]                                    # (C, 1) bias
        o = o + res_ref[0]                                     # identity residual
        out_ref[0] = jnp.maximum(o, 0.0).astype(out_ref.dtype)

    return kernel


def fold_bn(gamma, beta, mean, var, eps=1e-5):
    scale = gamma / jnp.sqrt(var + eps)
    bias = beta - mean * scale
    return scale, bias


def basic_block_forward(x_nchw, params, *, compute_dtype=jnp.bfloat16):
    """BasicBlock forward. Input/output are NCHW (PyTorch convention)."""
    N, C, H, W = x_nchw.shape
    assert params["w1"].shape[-1] == C and params["w2"].shape[-1] == C, (
        "identity-residual BasicBlock requires inplanes == planes")

    s1, b1 = fold_bn(params["bn1_gamma"], params["bn1_beta"],
                     params["bn1_mean"], params["bn1_var"])
    s2, b2 = fold_bn(params["bn2_gamma"], params["bn2_beta"],
                     params["bn2_mean"], params["bn2_var"])

    # Fold BN scale into the conv weights, reshape to im2col layout, bf16 MXU
    # operands.  w2 is stored transposed so the kernel's second matmul emits a
    # channel-major (NCHW) result directly.
    w1f = (params["w1"] * s1[None, None, None, :]
           ).reshape(9 * C, C).astype(compute_dtype)
    w2t = jnp.transpose((params["w2"] * s2[None, None, None, :]
                         ).reshape(9 * C, C)).astype(compute_dtype)
    b1_2d = b1.reshape(1, C).astype(jnp.float32)
    b2_2d = b2.reshape(C, 1).astype(jnp.float32)

    # Channel-minor (NHWC) view for the conv / im2col compute ...
    # TODO(synk): hoist this transpose to the model boundary in a real network.
    x_nhwc = jnp.transpose(x_nchw, (0, 2, 3, 1))
    # ... and a channel-major flat view of the same input for the lane-dense
    # residual add (free reshape of the original NCHW array).
    res = x_nchw.reshape(N, C, H * W)

    kernel = _make_fused_block_kernel(H, W, C, compute_dtype)

    out = pl.pallas_call(
        kernel,
        out_shape=jax.ShapeDtypeStruct((N, C, H * W), jnp.float32),
        grid_spec=pltpu.PrefetchScalarGridSpec(
            num_scalar_prefetch=0,
            grid=(N,),
            in_specs=[
                pl.BlockSpec((1, H, W, C), lambda n: (n, 0, 0, 0)),   # x (NHWC)
                pl.BlockSpec((1, C, H * W), lambda n: (n, 0, 0)),     # residual
                pl.BlockSpec((9 * C, C), lambda n: (0, 0)),           # w1 folded
                pl.BlockSpec((1, C), lambda n: (0, 0)),               # bn1 bias
                pl.BlockSpec((C, 9 * C), lambda n: (0, 0)),           # w2 folded^T
                pl.BlockSpec((C, 1), lambda n: (0, 0)),               # bn2 bias
            ],
            out_specs=pl.BlockSpec((1, C, H * W), lambda n: (n, 0, 0)),
            scratch_shapes=[
                pltpu.VMEM((H + 2, W + 2, C), jnp.float32),   # zero-halo tile
                pltpu.VMEM((H * W, 9 * C), jnp.float32),      # im2col patches
            ]),
        compiler_params=pltpu.CompilerParams(
            dimension_semantics=("parallel",)),
    )(x_nhwc, res, w1f, b1_2d, w2t, b2_2d)

    # (N, C, H*W) -> NCHW; metadata-only reshape, no extra HBM pass.
    return out.reshape(N, C, H, W)


def _reference_forward(x_nchw, params):
    """Pure-JAX reference (NCHW, lax.conv) for validation."""
    def conv(x, w_hwio):
        w = jnp.transpose(w_hwio, (3, 2, 0, 1))   # HWIO -> OIHW
        return lax.conv_general_dilated(
            x, w, window_strides=(1, 1), padding=((1, 1), (1, 1)),
            dimension_numbers=("NCHW", "OIHW", "NCHW"))

    def bn(x, g, b, m, v, eps=1e-5):
        g = g[None, :, None, None]; b = b[None, :, None, None]
        m = m[None, :, None, None]; v = v[None, :, None, None]
        return g * (x - m) / jnp.sqrt(v + eps) + b

    h = jax.nn.relu(bn(conv(x_nchw, params["w1"]),
                       params["bn1_gamma"], params["bn1_beta"],
                       params["bn1_mean"], params["bn1_var"]))
    o = bn(conv(h, params["w2"]),
           params["bn2_gamma"], params["bn2_beta"],
           params["bn2_mean"], params["bn2_var"])
    return jax.nn.relu(o + x_nchw)


def init_params(key, inplanes, planes):
    ks = jax.random.split(key, 6)
    fan_in = 3 * 3 * inplanes
    std = float(np.sqrt(2.0 / fan_in))
    return {
        "w1": jax.random.normal(ks[0], (3, 3, inplanes, planes), jnp.float32) * std,
        "w2": jax.random.normal(ks[1], (3, 3, planes, planes), jnp.float32) * std,
        "bn1_gamma": 1.0 + 0.1 * jax.random.normal(ks[2], (planes,), jnp.float32),
        "bn1_beta": 0.1 * jax.random.normal(ks[3], (planes,), jnp.float32),
        "bn1_mean": jnp.zeros((planes,), jnp.float32),
        "bn1_var": jnp.ones((planes,), jnp.float32),
        "bn2_gamma": 1.0 + 0.1 * jax.random.normal(ks[4], (planes,), jnp.float32),
        "bn2_beta": 0.1 * jax.random.normal(ks[5], (planes,), jnp.float32),
        "bn2_mean": jnp.zeros((planes,), jnp.float32),
        "bn2_var": jnp.ones((planes,), jnp.float32),
    }


if __name__ == "__main__":
    key = jax.random.PRNGKey(0)
    kx, kp = jax.random.split(key)

    N, C, H, W = 2, 8, 16, 16       # inplanes == planes (stride=1, no downsample)
    x = jax.random.normal(kx, (N, C, H, W), jnp.float32)
    params = init_params(kp, inplanes=C, planes=C)

    out = jax.block_until_ready(jax.jit(basic_block_forward)(x, params))

    ref = jax.block_until_ready(_reference_forward(x, params))
    # bf16 MXU operands with f32 accumulation -> looser tolerance than pure f32.
    np.testing.assert_allclose(np.asarray(out), np.asarray(ref),
                               atol=5e-2, rtol=5e-2)

    print("KERNEL_OK")
</pallas_src>

<mosaic_0001>
module attributes {stable_mosaic.version = 11 : i64} {
  func.func @kernel(%arg0: i32, %arg1: memref<1x16x16x8xf32, #tpu.memory_space<vmem>>, %arg2: memref<1x8x256xf32, #tpu.memory_space<vmem>>, %arg3: memref<72x8xbf16, #tpu.memory_space<vmem>>, %arg4: memref<1x8xf32, #tpu.memory_space<vmem>>, %arg5: memref<8x72xbf16, #tpu.memory_space<vmem>>, %arg6: memref<8x1xf32, #tpu.memory_space<vmem>>, %arg7: memref<1x8x256xf32, #tpu.memory_space<vmem>>, %arg8: memref<18x18x8xf32, #tpu.memory_space<vmem>>, %arg9: memref<256x72xf32, #tpu.memory_space<vmem>>) attributes {dimension_semantics = [#tpu.dimension_semantics<parallel>], iteration_bounds = array<i64: 2>, scalar_prefetch = 0 : i64, scratch_operands = 2 : i64, tpu.core_type = #tpu.core_type<tc>, window_params = [{transform_indices = @transform_0, window_bounds = array<i64: 1, 16, 16, 8>}, {transform_indices = @transform_1, window_bounds = array<i64: 1, 8, 256>}, {pipeline_mode = #tpu.pipeline_mode<synchronous>, transform_indices = @transform_2, window_bounds = array<i64: 72, 8>}, {pipeline_mode = #tpu.pipeline_mode<synchronous>, transform_indices = @transform_3, window_bounds = array<i64: 1, 8>}, {pipeline_mode = #tpu.pipeline_mode<synchronous>, transform_indices = @transform_4, window_bounds = array<i64: 8, 72>}, {pipeline_mode = #tpu.pipeline_mode<synchronous>, transform_indices = @transform_5, window_bounds = array<i64: 8, 1>}, {transform_indices = @transform_6, window_bounds = array<i64: 1, 8, 256>}]} {
    %cst = arith.constant 0.000000e+00 : f32
    %0 = vector.broadcast %cst : f32 to vector<18x18x8xf32>
    %c0 = arith.constant 0 : index
    %c0_0 = arith.constant 0 : index
    %c0_1 = arith.constant 0 : index
    %1 = vector.load %arg8[%c0, %c0_0, %c0_1] : memref<18x18x8xf32, #tpu.memory_space<vmem>>, vector<18x18x8xf32>
    tpu.vector_store %arg8[%c0, %c0_0, %c0_1], %0 {strides = array<i32>} : memref<18x18x8xf32, #tpu.memory_space<vmem>>, vector<18x18x8xf32>,
    %c0_2 = arith.constant 0 : index
    %c0_3 = arith.constant 0 : index
    %c0_4 = arith.constant 0 : index
    %c0_5 = arith.constant 0 : index
    %2 = vector.load %arg1[%c0_2, %c0_3, %c0_4, %c0_5] : memref<1x16x16x8xf32, #tpu.memory_space<vmem>>, vector<1x16x16x8xf32>
    %3 = vector.shape_cast %2 : vector<1x16x16x8xf32> to vector<16x16x8xf32>
    %c1 = arith.constant 1 : index
    %c1_6 = arith.constant 1 : index
    %c0_7 = arith.constant 0 : index
    %4 = vector.load %arg8[%c1, %c1_6, %c0_7] : memref<18x18x8xf32, #tpu.memory_space<vmem>>, vector<16x16x8xf32>
    tpu.vector_store %arg8[%c1, %c1_6, %c0_7], %3 {strides = array<i32>} : memref<18x18x8xf32, #tpu.memory_space<vmem>>, vector<16x16x8xf32>,
    %c0_8 = arith.constant 0 : index
    %c0_9 = arith.constant 0 : index
    %c0_10 = arith.constant 0 : index
    %5 = vector.load %arg8[%c0_8, %c0_9, %c0_10] : memref<18x18x8xf32, #tpu.memory_space<vmem>>, vector<16x16x8xf32>
    %6 = vector.shape_cast %5 : vector<16x16x8xf32> to vector<256x8xf32>
    %c0_11 = arith.constant 0 : index
    %c0_12 = arith.constant 0 : index
    %7 = vector.load %arg9[%c0_11, %c0_12] : memref<256x72xf32, #tpu.memory_space<vmem>>, vector<256x8xf32>
    tpu.vector_store %arg9[%c0_11, %c0_12], %6 {strides = array<i32>} : memref<256x72xf32, #tpu.memory_space<vmem>>, vector<256x8xf32>,
    %c0_13 = arith.constant 0 : index
    %c1_14 = arith.constant 1 : index
    %c0_15 = arith.constant 0 : index
    %8 = vector.load %arg8[%c0_13, %c1_14, %c0_15] : memref<18x18x8xf32, #tpu.memory_space<vmem>>, vector<16x16x8xf32>
    %9 = vector.shape_cast %8 : vector<16x16x8xf32> to vector<256x8xf32>
    %c0_16 = arith.constant 0 : index
    %c8 = arith.constant 8 : index
    %10 = vector.load %arg9[%c0_16, %c8] : memref<256x72xf32, #tpu.memory_space<vmem>>, vector<256x8xf32>
    tpu.vector_store %arg9[%c0_16, %c8], %9 {strides = array<i32>} : memref<256x72xf32, #tpu.memory_space<vmem>>, vector<256x8xf32>,
    %c0_17 = arith.constant 0 : index
    %c2 = arith.constant 2 : index
    %c0_18 = arith.constant 0 : index
    %11 = vector.load %arg8[%c0_17, %c2, %c0_18] : memref<18x18x8xf32, #tpu.memory_space<vmem>>, vector<16x16x8xf32>
    %12 = vector.shape_cast %11 : vector<16x16x8xf32> to vector<256x8xf32>
    %c0_19 = arith.constant 0 : index
    %c16 = arith.constant 16 : index
    %13 = vector.load %arg9[%c0_19, %c16] : memref<256x72xf32, #tpu.memory_space<vmem>>, vector<256x8xf32>
    tpu.vector_store %arg9[%c0_19, %c16], %12 {strides = array<i32>} : memref<256x72xf32, #tpu.memory_space<vmem>>, vector<256x8xf32>,
    %c1_20 = arith.constant 1 : index
    %c0_21 = arith.constant 0 : index
    %c0_22 = arith.constant 0 : index
    %14 = vector.load %arg8[%c1_20, %c0_21, %c0_22] : memref<18x18x8xf32, #tpu.memory_space<vmem>>, vector<16x16x8xf32>
    %15 = vector.shape_cast %14 : vector<16x16x8xf32> to vector<256x8xf32>
    %c0_23 = arith.constant 0 : index
    %c24 = arith.constant 24 : index
    %16 = vector.load %arg9[%c0_23, %c24] : memref<256x72xf32, #tpu.memory_space<vmem>>, vector<256x8xf32>
    tpu.vector_store %arg9[%c0_23, %c24], %15 {strides = array<i32>} : memref<256x72xf32, #tpu.memory_space<vmem>>, vector<256x8xf32>,
    %c1_24 = arith.constant 1 : index
    %c1_25 = arith.constant 1 : index
    %c0_26 = arith.constant 0 : index
    %17 = vector.load %arg8[%c1_24, %c1_25, %c0_26] : memref<18x18x8xf32, #tpu.memory_space<vmem>>, vector<16x16x8xf32>
    %18 = vector.shape_cast %17 : vector<16x16x8xf32> to vector<256x8xf32>
    %c0_27 = arith.constant 0 : index
    %c32 = arith.constant 32 : index
    %19 = vector.load %arg9[%c0_27, %c32] : memref<256x72xf32, #tpu.memory_space<vmem>>, vector<256x8xf32>
    tpu.vector_store %arg9[%c0_27, %c32], %18 {strides = array<i32>} : memref<256x72xf32, #tpu.memory_space<vmem>>, vector<256x8xf32>,
    %c1_28 = arith.constant 1 : index
    %c2_29 = arith.constant 2 : index
    %c0_30 = arith.constant 0 : index
    %20 = vector.load %arg8[%c1_28, %c2_29, %c0_30] : memref<18x18x8xf32, #tpu.memory_space<vmem>>, vector<16x16x8xf32>
    %21 = vector.shape_cast %20 : vector<16x16x8xf32> to vector<256x8xf32>
    %c0_31 = arith.constant 0 : index
    %c40 = arith.constant 40 : index
    %22 = vector.load %arg9[%c0_31, %c40] : memref<256x72xf32, #tpu.memory_space<vmem>>, vector<256x8xf32>
    tpu.vector_store %arg9[%c0_31, %c40], %21 {strides = array<i32>} : memref<256x72xf32, #tpu.memory_space<vmem>>, vector<256x8xf32>,
    %c2_32 = arith.constant 2 : index
    %c0_33 = arith.constant 0 : index
    %c0_34 = arith.constant 0 : index
    %23 = vector.load %arg8[%c2_32, %c0_33, %c0_34] : memref<18x18x8xf32, #tpu.memory_space<vmem>>, vector<16x16x8xf32>
    %24 = vector.shape_cast %23 : vector<16x16x8xf32> to vector<256x8xf32>
    %c0_35 = arith.constant 0 : index
    %c48 = arith.constant 48 : index
    %25 = vector.load %arg9[%c0_35, %c48] : memref<256x72xf32, #tpu.memory_space<vmem>>, vector<256x8xf32>
    tpu.vector_store %arg9[%c0_35, %c48], %24 {strides = array<i32>} : memref<256x72xf32, #tpu.memory_space<vmem>>, vector<256x8xf32>,
    %c2_36 = arith.constant 2 : index
    %c1_37 = arith.constant 1 : index
    %c0_38 = arith.constant 0 : index
    %26 = vector.load %arg8[%c2_36, %c1_37, %c0_38] : memref<18x18x8xf32, #tpu.memory_space<vmem>>, vector<16x16x8xf32>
    %27 = vector.shape_cast %26 : vector<16x16x8xf32> to vector<256x8xf32>
    %c0_39 = arith.constant 0 : index
    %c56 = arith.constant 56 : index
    %28 = vector.load %arg9[%c0_39, %c56] : memref<256x72xf32, #tpu.memory_space<vmem>>, vector<256x8xf32>
    tpu.vector_store %arg9[%c0_39, %c56], %27 {strides = array<i32>} : memref<256x72xf32, #tpu.memory_space<vmem>>, vector<256x8xf32>,
    %c2_40 = arith.constant 2 : index
    %c2_41 = arith.constant 2 : index
    %c0_42 = arith.constant 0 : index
    %29 = vector.load %arg8[%c2_40, %c2_41, %c0_42] : memref<18x18x8xf32, #tpu.memory_space<vmem>>, vector<16x16x8xf32>
    %30 = vector.shape_cast %29 : vector<16x16x8xf32> to vector<256x8xf32>
    %c0_43 = arith.constant 0 : index
    %c64 = arith.constant 64 : index
    %31 = vector.load %arg9[%c0_43, %c64] : memref<256x72xf32, #tpu.memory_space<vmem>>, vector<256x8xf32>
    tpu.vector_store %arg9[%c0_43, %c64], %30 {strides = array<i32>} : memref<256x72xf32, #tpu.memory_space<vmem>>, vector<256x8xf32>,
    %c0_44 = arith.constant 0 : index
    %c0_45 = arith.constant 0 : index
    %32 = vector.load %arg9[%c0_44, %c0_45] : memref<256x72xf32, #tpu.memory_space<vmem>>, vector<256x72xf32>
    %33 = arith.truncf %32 : vector<256x72xf32> to vector<256x72xbf16>
    %c0_46 = arith.constant 0 : index
    %c0_47 = arith.constant 0 : index
    %34 = vector.load %arg3[%c0_46, %c0_47] : memref<72x8xbf16, #tpu.memory_space<vmem>>, vector<72x8xbf16>
    %cst_48 = arith.constant dense<0.000000e+00> : vector<256x8xf32>
    %35 = tpu.matmul %33, %34, %cst_48 {dimension_numbers = #tpu.dot_dimension_numbers<[1], [0], [0], [1], [0, 0, 1, 1], [], []>} : vector<256x72xbf16>, vector<72x8xbf16>, vector<256x8xf32> -> vector<256x8xf32>
    %c0_49 = arith.constant 0 : index
    %c0_50 = arith.constant 0 : index
    %36 = vector.load %arg4[%c0_49, %c0_50] : memref<1x8xf32, #tpu.memory_space<vmem>>, vector<1x8xf32>
    %37 = vector.broadcast %36 : vector<1x8xf32> to vector<256x8xf32>
    %38 = arith.addf %35, %37 : vector<256x8xf32>
    %cst_51 = arith.constant 0.000000e+00 : f32
    %39 = vector.broadcast %cst_51 : f32 to vector<256x8xf32>
    %40 = arith.maximumf %38, %39 : vector<256x8xf32>
    %41 = vector.shape_cast %40 : vector<256x8xf32> to vector<16x16x8xf32>
    %c1_52 = arith.constant 1 : index
    %c1_53 = arith.constant 1 : index
    %c0_54 = arith.constant 0 : index
    %42 = vector.load %arg8[%c1_52, %c1_53, %c0_54] : memref<18x18x8xf32, #tpu.memory_space<vmem>>, vector<16x16x8xf32>
    tpu.vector_store %arg8[%c1_52, %c1_53, %c0_54], %41 {strides = array<i32>} : memref<18x18x8xf32, #tpu.memory_space<vmem>>, vector<16x16x8xf32>,
    %c0_55 = arith.constant 0 : index
    %c0_56 = arith.constant 0 : index
    %c0_57 = arith.constant 0 : index
    %43 = vector.load %arg8[%c0_55, %c0_56, %c0_57] : memref<18x18x8xf32, #tpu.memory_space<vmem>>, vector<16x16x8xf32>
    %44 = vector.shape_cast %43 : vector<16x16x8xf32> to vector<256x8xf32>
    %c0_58 = arith.constant 0 : index
    %c0_59 = arith.constant 0 : index
    %45 = vector.load %arg9[%c0_58, %c0_59] : memref<256x72xf32, #tpu.memory_space<vmem>>, vector<256x8xf32>
    tpu.vector_store %arg9[%c0_58, %c0_59], %44 {strides = array<i32>} : memref<256x72xf32, #tpu.memory_space<vmem>>, vector<256x8xf32>,
    %c0_60 = arith.constant 0 : index
    %c1_61 = arith.constant 1 : index
    %c0_62 = arith.constant 0 : index
    %46 = vector.load %arg8[%c0_60, %c1_61, %c0_62] : memref<18x18x8xf32, #tpu.memory_space<vmem>>, vector<16x16x8xf32>
    %47 = vector.shape_cast %46 : vector<16x16x8xf32> to vector<256x8xf32>
    %c0_63 = arith.constant 0 : index
    %c8_64 = arith.constant 8 : index
    %48 = vector.load %arg9[%c0_63, %c8_64] : memref<256x72xf32, #tpu.memory_space<vmem>>, vector<256x8xf32>
    tpu.vector_store %arg9[%c0_63, %c8_64], %47 {strides = array<i32>} : memref<256x72xf32, #tpu.memory_space<vmem>>, vector<256x8xf32>,
    %c0_65 = arith.constant 0 : index
    %c2_66 = arith.constant 2 : index
    %c0_67 = arith.constant 0 : index
    %49 = vector.load %arg8[%c0_65, %c2_66, %c0_67] : memref<18x18x8xf32, #tpu.memory_space<vmem>>, vector<16x16x8xf32>
    %50 = vector.shape_cast %49 : vector<16x16x8xf32> to vector<256x8xf32>
    %c0_68 = arith.constant 0 : index
    %c16_69 = arith.constant 16 : index
    %51 = vector.load %arg9[%c0_68, %c16_69] : memref<256x72xf32, #tpu.memory_space<vmem>>, vector<256x8xf32>
    tpu.vector_store %arg9[%c0_68, %c16_69], %50 {strides = array<i32>} : memref<256x72xf32, #tpu.memory_space<vmem>>, vector<256x8xf32>,
    %c1_70 = arith.constant 1 : index
    %c0_71 = arith.constant 0 : index
    %c0_72 = arith.constant 0 : index
    %52 = vector.load %arg8[%c1_70, %c0_71, %c0_72] : memref<18x18x8xf32, #tpu.memory_space<vmem>>, vector<16x16x8xf32>
    %53 = vector.shape_cast %52 : vector<16x16x8xf32> to vector<256x8xf32>
    %c0_73 = arith.constant 0 : index
    %c24_74 = arith.constant 24 : index
    %54 = vector.load %arg9[%c0_73, %c24_74] : memref<256x72xf32, #tpu.memory_space<vmem>>, vector<256x8xf32>
    tpu.vector_store %arg9[%c0_73, %c24_74], %53 {strides = array<i32>} : memref<256x72xf32, #tpu.memory_space<vmem>>, vector<256x8xf32>,
    %c1_75 = arith.constant 1 : index
    %c1_76 = arith.constant 1 : index
    %c0_77 = arith.constant 0 : index
    %55 = vector.load %arg8[%c1_75, %c1_76, %c0_77] : memref<18x18x8xf32, #tpu.memory_space<vmem>>, vector<16x16x8xf32>
    %56 = vector.shape_cast %55 : vector<16x16x8xf32> to vector<256x8xf32>
    %c0_78 = arith.constant 0 : index
    %c32_79 = arith.constant 32 : index
    %57 = vector.load %arg9[%c0_78, %c32_79] : memref<256x72xf32, #tpu.memory_space<vmem>>, vector<256x8xf32>
    tpu.vector_store %arg9[%c0_78, %c32_79], %56 {strides = array<i32>} : memref<256x72xf32, #tpu.memory_space<vmem>>, vector<256x8xf32>,
    %c1_80 = arith.constant 1 : index
    %c2_81 = arith.constant 2 : index
    %c0_82 = arith.constant 0 : index
    %58 = vector.load %arg8[%c1_80, %c2_81, %c0_82] : memref<18x18x8xf32, #tpu.memory_space<vmem>>, vector<16x16x8xf32>
    %59 = vector.shape_cast %58 : vector<16x16x8xf32> to vector<256x8xf32>
    %c0_83 = arith.constant 0 : index
    %c40_84 = arith.constant 40 : index
    %60 = vector.load %arg9[%c0_83, %c40_84] : memref<256x72xf32, #tpu.memory_space<vmem>>, vector<256x8xf32>
    tpu.vector_store %arg9[%c0_83, %c40_84], %59 {strides = array<i32>} : memref<256x72xf32, #tpu.memory_space<vmem>>, vector<256x8xf32>,
    %c2_85 = arith.constant 2 : index
    %c0_86 = arith.constant 0 : index
    %c0_87 = arith.constant 0 : index
    %61 = vector.load %arg8[%c2_85, %c0_86, %c0_87] : memref<18x18x8xf32, #tpu.memory_space<vmem>>, vector<16x16x8xf32>
    %62 = vector.shape_cast %61 : vector<16x16x8xf32> to vector<256x8xf32>
    %c0_88 = arith.constant 0 : index
    %c48_89 = arith.constant 48 : index
    %63 = vector.load %arg9[%c0_88, %c48_89] : memref<256x72xf32, #tpu.memory_space<vmem>>, vector<256x8xf32>
    tpu.vector_store %arg9[%c0_88, %c48_89], %62 {strides = array<i32>} : memref<256x72xf32, #tpu.memory_space<vmem>>, vector<256x8xf32>,
    %c2_90 = arith.constant 2 : index
    %c1_91 = arith.constant 1 : index
    %c0_92 = arith.constant 0 : index
    %64 = vector.load %arg8[%c2_90, %c1_91, %c0_92] : memref<18x18x8xf32, #tpu.memory_space<vmem>>, vector<16x16x8xf32>
    %65 = vector.shape_cast %64 : vector<16x16x8xf32> to vector<256x8xf32>
    %c0_93 = arith.constant 0 : index
    %c56_94 = arith.constant 56 : index
    %66 = vector.load %arg9[%c0_93, %c56_94] : memref<256x72xf32, #tpu.memory_space<vmem>>, vector<256x8xf32>
    tpu.vector_store %arg9[%c0_93, %c56_94], %65 {strides = array<i32>} : memref<256x72xf32, #tpu.memory_space<vmem>>, vector<256x8xf32>,
    %c2_95 = arith.constant 2 : index
    %c2_96 = arith.constant 2 : index
    %c0_97 = arith.constant 0 : index
    %67 = vector.load %arg8[%c2_95, %c2_96, %c0_97] : memref<18x18x8xf32, #tpu.memory_space<vmem>>, vector<16x16x8xf32>
    %68 = vector.shape_cast %67 : vector<16x16x8xf32> to vector<256x8xf32>
    %c0_98 = arith.constant 0 : index
    %c64_99 = arith.constant 64 : index
    %69 = vector.load %arg9[%c0_98, %c64_99] : memref<256x72xf32, #tpu.memory_space<vmem>>, vector<256x8xf32>
    tpu.vector_store %arg9[%c0_98, %c64_99], %68 {strides = array<i32>} : memref<256x72xf32, #tpu.memory_space<vmem>>, vector<256x8xf32>,
    %c0_100 = arith.constant 0 : index
    %c0_101 = arith.constant 0 : index
    %70 = vector.load %arg9[%c0_100, %c0_101] : memref<256x72xf32, #tpu.memory_space<vmem>>, vector<256x72xf32>
    %71 = arith.truncf %70 : vector<256x72xf32> to vector<256x72xbf16>
    %c0_102 = arith.constant 0 : index
    %c0_103 = arith.constant 0 : index
    %72 = vector.load %arg5[%c0_102, %c0_103] : memref<8x72xbf16, #tpu.memory_space<vmem>>, vector<8x72xbf16>
    %cst_104 = arith.constant dense<0.000000e+00> : vector<8x256xf32>
    %73 = tpu.matmul %72, %71, %cst_104 {dimension_numbers = #tpu.dot_dimension_numbers<[1], [1], [0], [0], [0, 0, 1, 0], [], []>} : vector<8x72xbf16>, vector<256x72xbf16>, vector<8x256xf32> -> vector<8x256xf32>
    %c0_105 = arith.constant 0 : index
    %c0_106 = arith.constant 0 : index
    %74 = vector.load %arg6[%c0_105, %c0_106] : memref<8x1xf32, #tpu.memory_space<vmem>>, vector<8x1xf32>
    %75 = vector.broadcast %74 : vector<8x1xf32> to vector<8x256xf32>
    %76 = arith.addf %73, %75 : vector<8x256xf32>
    %c0_107 = arith.constant 0 : index
    %c0_108 = arith.constant 0 : index
    %c0_109 = arith.constant 0 : index
    %77 = vector.load %arg2[%c0_107, %c0_108, %c0_109] : memref<1x8x256xf32, #tpu.memory_space<vmem>>, vector<1x8x256xf32>
    %78 = vector.shape_cast %77 : vector<1x8x256xf32> to vector<8x256xf32>
    %79 = arith.addf %76, %78 : vector<8x256xf32>
    %cst_110 = arith.constant 0.000000e+00 : f32
    %80 = vector.broadcast %cst_110 : f32 to vector<8x256xf32>
    %81 = arith.maximumf %79, %80 : vector<8x256xf32>
    %c0_111 = arith.constant 0 : index
    %c0_112 = arith.constant 0 : index
    %c0_113 = arith.constant 0 : index
    %82 = vector.load %arg7[%c0_111, %c0_112, %c0_113] : memref<1x8x256xf32, #tpu.memory_space<vmem>>, vector<1x8x256xf32>
    %83 = vector.shape_cast %82 : vector<1x8x256xf32> to vector<8x256xf32>
    %84 = vector.shape_cast %81 : vector<8x256xf32> to vector<1x8x256xf32>
    tpu.vector_store %arg7[%c0_111, %c0_112, %c0_113], %84 {strides = array<i32>} : memref<1x8x256xf32, #tpu.memory_space<vmem>>, vector<1x8x256xf32>,
    return
  }
  func.func @transform_0(%arg0: i32) -> (i32, i32, i32, i32) {
    %c0_i32 = arith.constant 0 : i32
    %c0_i32_0 = arith.constant 0 : i32
    %c0_i32_1 = arith.constant 0 : i32
    %c0_i32_2 = arith.constant 0 : i32
    return %arg0, %c0_i32, %c0_i32_0, %c0_i32_1 : i32, i32, i32, i32
  }
  func.func @transform_1(%arg0: i32) -> (i32, i32, i32) {
    %c0_i32 = arith.constant 0 : i32
    %c0_i32_0 = arith.constant 0 : i32
    %c0_i32_1 = arith.constant 0 : i32
    return %arg0, %c0_i32, %c0_i32_0 : i32, i32, i32
  }
  func.func @transform_2(%arg0: i32) -> (i32, i32) {
    %c0_i32 = arith.constant 0 : i32
    %c0_i32_0 = arith.constant 0 : i32
    %c0_i32_1 = arith.constant 0 : i32
    return %c0_i32, %c0_i32_0 : i32, i32
  }
  func.func @transform_3(%arg0: i32) -> (i32, i32) {
    %c0_i32 = arith.constant 0 : i32
    %c0_i32_0 = arith.constant 0 : i32
    %c0_i32_1 = arith.constant 0 : i32
    return %c0_i32, %c0_i32_0 : i32, i32
  }
  func.func @transform_4(%arg0: i32) -> (i32, i32) {
    %c0_i32 = arith.constant 0 : i32
    %c0_i32_0 = arith.constant 0 : i32
    %c0_i32_1 = arith.constant 0 : i32
    return %c0_i32, %c0_i32_0 : i32, i32
  }
  func.func @transform_5(%arg0: i32) -> (i32, i32) {
    %c0_i32 = arith.constant 0 : i32
    %c0_i32_0 = arith.constant 0 : i32
    %c0_i32_1 = arith.constant 0 : i32
    return %c0_i32, %c0_i32_0 : i32, i32
  }
  func.func @transform_6(%arg0: i32) -> (i32, i32, i32) {
    %c0_i32 = arith.constant 0 : i32
    %c0_i32_0 = arith.constant 0 : i32
    %c0_i32_1 = arith.constant 0 : i32
    return %arg0, %c0_i32, %c0_i32_0 : i32, i32, i32
  }
}

</mosaic_0001>

<bundles_post_ra>
// kernel: basic_block_forward.1
= control target key start
LH: loop header
LB: loop body
LE: loop exit
PB: predicated region body
PF: predicated region fallthrough
CT: control target
= control target key end

     0   :  { %s4400_s21 = smov 0   ;;  %s6446_s0 = inlined_call_operand.vmem [shape: f32[2,16,16,8], index: 0, kind: input, shape index: {}]   ;;  %s6447_s1 = inlined_call_operand.vmem [shape: f32[2,8,256], index: 1, kind: input, shape index: {}]   ;;  %s6448_s2 = inlined_call_operand.vmem [shape: bf16[72,8], index: 2, kind: input, shape index: {}]   ;;  %s6449_s3 = inlined_call_operand.vmem [shape: f32[1,8], index: 3, kind: input, shape index: {}]   ;;  %s6450_s4 = inlined_call_operand.vmem [shape: bf16[8,72], index: 4, kind: input, shape index: {}]   ;;  %s6451_s5 = inlined_call_operand.vmem [shape: f32[8,1], index: 5, kind: input, shape index: {}]   ;;  %s6452_s6 = inlined_call_operand.vmem [shape: f32[2,8,256], index: 6, kind: output, shape index: {}]  }
   0x1 LB: > { %s4194_s22 = sadd.s32 4294967295, %s4353_s21   ;;  %p4198_p0 = scmp.ge.s32.totalorder %s4353_s21, 1  ;;  %s4353_s21 = sphi %s4400_s21, %s16_s21  }
   0x2   : > { %p222_p1 = scmp.lt.s32.totalorder %s4353_s21, 3 }
   0x4   : > { %p223_p2 = pnand %p4198_p0, %p222_p1 }
   0x6   : > { %226 = sbr.rel (%p223_p2) target bundleno = 1710 (0x6ae), region = 44 }
   0xd   : > { %vm273_vm0 = vcmask 64512   ;;  %p4410_p3 = scmp.lt.s32.totalorder %s4194_s22, 1  ;;  %vm276_vm1 = vcmask 58368   ;;  %v4355_v0 = vmov 0.0   ;;  %s4356_s28 = smov 8   ;;  %vm618_vm2 = vcmask 130112  }
   0xe   : > { %274 = vst.msk [vmem:[#allocation2] sm:$0xff] %vm273_vm0, %v4355_v0  ;;  %275 = vst.msk [vmem:[#allocation2 + $0x8] sm:$0xff] %vm273_vm0, %v4355_v0  ;;  %s4357_s29 = smov 16   ;;  %s4358_s30 = smov 24   ;;  %vm811_vm3 = vcmask 195712   ;;  %vm1004_vm4 = vcmask 261312  }
   0xf   : > { %278 = vst.msk [vmem:[#allocation2 + $0x18] sm:$0xff] %vm273_vm0, %v4355_v0  ;;  %279 = vst.msk [vmem:[#allocation2 + $0x20] sm:$0xff] %vm273_vm0, %v4355_v0  ;;  %s6567_s22 = smov (!%p4410_p3, %s4194_s22), 1  ;;  %s4359_s7 = smov 32   ;;  %vm1197_vm5 = vcmask 326912   ;;  %vm2143_vm6 = vcmask 1043456  }
  0x10   : > { %281 = vst.msk [vmem:[#allocation2 + $0x30] sm:$0xff] %vm273_vm0, %v4355_v0  ;;  %282 = vst.msk [vmem:[#allocation2 + $0x38] sm:$0xff] %vm273_vm0, %v4355_v0  ;;  %s4230_s24 = sshll.u32 %s6567_s22, 8  ;;  %s4360_s8 = smov 40   ;;  %vm1390_vm7 = vcmask 392512   ;;  %vm1584_vm8 = vcmask 458112  }
  0x11   : > { %284 = vst.msk [vmem:[#allocation2 + $0x48] sm:$0xff] %vm273_vm0, %v4355_v0  ;;  %285 = vst.msk [vmem:[#allocation2 + $0x50] sm:$0xff] %vm273_vm0, %v4355_v0  ;;  %s4478_s27 = scalar_lea.vmem %s6446_s0, %s4230_s24  ;;  %s4361_s9 = smov 48   ;;  %vm1777_vm9 = vcmask 523712   ;;  %vm1970_vm10 = vcmask 589312   ;;  %vm2094_vm11 = vcmask 588800  }
  0x12   : > { %287 = vst.msk [vmem:[#allocation2 + $0x60] sm:$0xff] %vm273_vm0, %v4355_v0  ;;  %288 = vst.msk [vmem:[#allocation2 + $0x68] sm:$0xff] %vm273_vm0, %v4355_v0  ;;  %v329_v1 = vld [vmem:[%s4478_s27] sm:$0xff]  ;;  %v330_v2 = vld [vmem:[%s4478_s27 + $0x8] sm:$0xff]  ;;  %s4362_s14 = smov 56   ;;  %s4363_s19 = smov 64  }
  0x13   : > { %290 = vst.msk [vmem:[#allocation2 + $0x78] sm:$0xff] %vm273_vm0, %v4355_v0  ;;  %291 = vst.msk [vmem:[#allocation2 + $0x80] sm:$0xff] %vm273_vm0, %v4355_v0  ;;  %v331_v3 = vld [vmem:[%s4478_s27 + $0x10] sm:$0xff]  ;;  %v332_v4 = vld [vmem:[%s4478_s27 + $0x18] sm:$0xff] }
  0x14   : > { %293 = vst.msk [vmem:[#allocation2 + $0x90] sm:$0xff] %vm273_vm0, %v4355_v0  ;;  %294 = vst.msk [vmem:[#allocation2 + $0x98] sm:$0xff] %vm273_vm0, %v4355_v0  ;;  %v333_v5 = vld [vmem:[%s4478_s27 + $0x20] sm:$0xff]  ;;  %v334_v6 = vld [vmem:[%s4478_s27 + $0x28] sm:$0xff] }
  0x15   : > { %296 = vst.msk [vmem:[#allocation2 + $0xa8] sm:$0xff] %vm273_vm0, %v4355_v0  ;;  %297 = vst.msk [vmem:[#allocation2 + $0xb0] sm:$0xff] %vm273_vm0, %v4355_v0  ;;  %v458_v7 = vld [vmem:[#allocation2 + $0x1] sm:$0xff]  ;;  %v336_v10 = vld [vmem:[%s4478_s27 + $0x38] sm:$0xff] }
  0x16   : > { %299 = vst.msk [vmem:[#allocation2 + $0xc0] sm:$0xff] %vm273_vm0, %v4355_v0  ;;  %300 = vst.msk [vmem:[#allocation2 + $0xc8] sm:$0xff] %vm273_vm0, %v4355_v0  ;;  %v335_v9 = vld [vmem:[%s4478_s27 + $0x30] sm:$0xff]  ;;  %522 = vrot.lane.b32.xlu0 %v458_v7, %s4356_s28  ;;  %v337_v11 = vld [vmem:[%s4478_s27 + $0x40] sm:$0xff] }
  0x17   : > { %302 = vst.msk [vmem:[#allocation2 + $0xd8] sm:$0xff] %vm273_vm0, %v4355_v0  ;;  %303 = vst.msk [vmem:[#allocation2 + $0xe0] sm:$0xff] %vm273_vm0, %v4355_v0  ;;  %v338_v12 = vld [vmem:[%s4478_s27 + $0x48] sm:$0xff]  ;;  %v339_v13 = vld [vmem:[%s4478_s27 + $0x50] sm:$0xff] }
  0x18   : > { %305 = vst.msk [vmem:[#allocation2 + $0xf0] sm:$0xff] %vm273_vm0, %v4355_v0  ;;  %306 = vst.msk [vmem:[#allocation2 + $0xf8] sm:$0xff] %vm273_vm0, %v4355_v0  ;;  %v340_v14 = vld [vmem:[%s4478_s27 + $0x58] sm:$0xff]  ;;  %v341_v15 = vld [vmem:[%s4478_s27 + $0x60] sm:$0xff] }
  0x19   : > { %308 = vst.msk [vmem:[#allocation2 + $0x108] sm:$0xff] %vm273_vm0, %v4355_v0  ;;  %309 = vst.msk [vmem:[#allocation2 + $0x110] sm:$0xff] %vm273_vm0, %v4355_v0  ;;  %v342_v16 = vld [vmem:[%s4478_s27 + $0x68] sm:$0xff]  ;;  %v343_v17 = vld [vmem:[%s4478_s27 + $0x70] sm:$0xff] }
  0x1a   : > { %311 = vst.msk [vmem:[#allocation2 + $0x120] sm:$0xff] %vm273_vm0, %v4355_v0  ;;  %312 = vst.msk [vmem:[#allocation2 + $0x128] sm:$0xff] %vm273_vm0, %v4355_v0  ;;  %v344_v18 = vld [vmem:[%s4478_s27 + $0x78] sm:$0xff]  ;;  %v345_v19 = vld [vmem:[%s4478_s27 + $0x80] sm:$0xff] }
  0x1b   : > { %314 = vst.msk [vmem:[#allocation2 + $0x138] sm:$0xff] %vm273_vm0, %v4355_v0  ;;  %315 = vst.msk [vmem:[#allocation2 + $0x140] sm:$0xff] %vm273_vm0, %v4355_v0  ;;  %v346_v20 = vld [vmem:[%s4478_s27 + $0x88] sm:$0xff]  ;;  %v347_v21 = vld [vmem:[%s4478_s27 + $0x90] sm:$0xff] }
  0x1c   : > { %317 = vst.msk [vmem:[#allocation2 + $0x150] sm:$0xff] %vm273_vm0, %v4355_v0  ;;  %318 = vst.msk [vmem:[#allocation2 + $0x158] sm:$0xff] %vm273_vm0, %v4355_v0  ;;  %v348_v22 = vld [vmem:[%s4478_s27 + $0x98] sm:$0xff]  ;;  %v349_v23 = vld [vmem:[%s4478_s27 + $0xa0] sm:$0xff] }
  0x1d   : > { %320 = vst.msk [vmem:[#allocation2 + $0x168] sm:$0xff] %vm273_vm0, %v4355_v0  ;;  %321 = vst.msk [vmem:[#allocation2 + $0x170] sm:$0xff] %vm273_vm0, %v4355_v0  ;;  %v350_v24 = vld [vmem:[%s4478_s27 + $0xa8] sm:$0xff]  ;;  %v351_v28 = vld [vmem:[%s4478_s27 + $0xb0] sm:$0xff] }
  0x1e   : > { %323 = vst.msk [vmem:[#allocation2 + $0x180] sm:$0xff] %vm273_vm0, %v4355_v0  ;;  %324 = vst.msk [vmem:[#allocation2 + $0x188] sm:$0xff] %vm273_vm0, %v4355_v0  ;;  %v352_v29 = vld [vmem:[%s4478_s27 + $0xb8] sm:$0xff]  ;;  %v353_v33 = vld [vmem:[%s4478_s27 + $0xc0] sm:$0xff] }
  0x1f   : > { %326 = vst.msk [vmem:[#allocation2 + $0x198] sm:$0xff] %vm273_vm0, %v4355_v0  ;;  %327 = vst.msk [vmem:[#allocation2 + $0x1a0] sm:$0xff] %vm273_vm0, %v4355_v0  ;;  %v354_v34 = vld [vmem:[%s4478_s27 + $0xc8] sm:$0xff]  ;;  %v355_v35 = vld [vmem:[%s4478_s27 + $0xd0] sm:$0xff] }
  0x20   : > { %277 = vst.msk [vmem:[#allocation2 + $0x10] sm:$0x3] %vm276_vm1, %v4355_v0  ;;  %280 = vst.msk [vmem:[#allocation2 + $0x28] sm:$0x3] %vm276_vm1, %v4355_v0  ;;  %v356_v36 = vld [vmem:[%s4478_s27 + $0xd8] sm:$0xff]  ;;  %v357_v37 = vld [vmem:[%s4478_s27 + $0xe0] sm:$0xff] }
  0x21   : > { %283 = vst.msk [vmem:[#allocation2 + $0x40] sm:$0x3] %vm276_vm1, %v4355_v0  ;;  %286 = vst.msk [vmem:[#allocation2 + $0x58] sm:$0x3] %vm276_vm1, %v4355_v0  ;;  %v358_v38 = vld [vmem:[%s4478_s27 + $0xe8] sm:$0xff]  ;;  %v395_v48 = vld [vmem:[#allocation2 + $0x8] sm:$0xff] }
  0x22   : > { %289 = vst.msk [vmem:[#allocation2 + $0x70] sm:$0x3] %vm276_vm1, %v4355_v0  ;;  %292 = vst.msk [vmem:[#allocation2 + $0x88] sm:$0x3] %vm276_vm1, %v4355_v0  ;;  %v394_v45 = vld [vmem:[#allocation2] sm:$0xff] }
  0x23   : > { %295 = vst.msk [vmem:[#allocation2 + $0xa0] sm:$0x3] %vm276_vm1, %v4355_v0  ;;  %298 = vst.msk [vmem:[#allocation2 + $0xb8] sm:$0x3] %vm276_vm1, %v4355_v0 }
  0x24   : > { %301 = vst.msk [vmem:[#allocation2 + $0xd0] sm:$0x3] %vm276_vm1, %v4355_v0  ;;  %304 = vst.msk [vmem:[#allocation2 + $0xe8] sm:$0x3] %vm276_vm1, %v4355_v0 }
  0x25   : > { %307 = vst.msk [vmem:[#allocation2 + $0x100] sm:$0x3] %vm276_vm1, %v4355_v0  ;;  %310 = vst.msk [vmem:[#allocation2 + $0x118] sm:$0x3] %vm276_vm1, %v4355_v0 }
  0x26   : > { %313 = vst.msk [vmem:[#allocation2 + $0x130] sm:$0x3] %vm276_vm1, %v4355_v0  ;;  %316 = vst.msk [vmem:[#allocation2 + $0x148] sm:$0x3] %vm276_vm1, %v4355_v0 }
  0x27   : > { %319 = vst.msk [vmem:[#allocation2 + $0x160] sm:$0x3] %vm276_vm1, %v4355_v0  ;;  %322 = vst.msk [vmem:[#allocation2 + $0x178] sm:$0x3] %vm276_vm1, %v4355_v0  ;;  %v459_v8 = vld [vmem:[#allocation2 + $0x9] sm:$0xff] }
  0x28   : > { %325 = vst.msk [vmem:[#allocation2 + $0x190] sm:$0x3] %vm276_vm1, %v4355_v0  ;;  %328 = vst.msk [vmem:[#allocation2 + $0x1a8] sm:$0x3] %vm276_vm1, %v4355_v0  ;;  %524 = vrot.lane.b32.xlu0 %v459_v8, %s4356_s28 }
  0x29   : > { %362 = vst.msk [vmem:[#allocation2 + $0x19] sm:$0xff] %vm273_vm0, %v329_v1  ;;  %363 = vst.msk [vmem:[#allocation2 + $0x21] sm:$0xff] %vm273_vm0, %v330_v2 }
  0x2a   : > { %364 = vst.msk [vmem:[#allocation2 + $0x31] sm:$0xff] %vm273_vm0, %v331_v3  ;;  %365 = vst.msk [vmem:[#allocation2 + $0x39] sm:$0xff] %vm273_vm0, %v332_v4 }
  0x2b   : > { %366 = vst.msk [vmem:[#allocation2 + $0x49] sm:$0xff] %vm273_vm0, %v333_v5  ;;  %367 = vst.msk [vmem:[#allocation2 + $0x51] sm:$0xff] %vm273_vm0, %v334_v6 }
  0x2c   : > { %368 = vst.msk [vmem:[#allocation2 + $0x61] sm:$0xff] %vm273_vm0, %v335_v9  ;;  %369 = vst.msk [vmem:[#allocation2 + $0x69] sm:$0xff] %vm273_vm0, %v336_v10 }
  0x2d   : > { %370 = vst.msk [vmem:[#allocation2 + $0x79] sm:$0xff] %vm273_vm0, %v337_v11  ;;  %371 = vst.msk [vmem:[#allocation2 + $0x81] sm:$0xff] %vm273_vm0, %v338_v12 }
  0x2e   : > { %372 = vst.msk [vmem:[#allocation2 + $0x91] sm:$0xff] %vm273_vm0, %v339_v13  ;;  %373 = vst.msk [vmem:[#allocation2 + $0x99] sm:$0xff] %vm273_vm0, %v340_v14 }
  0x2f   : > { %374 = vst.msk [vmem:[#allocation2 + $0xa9] sm:$0xff] %vm273_vm0, %v341_v15  ;;  %375 = vst.msk [vmem:[#allocation2 + $0xb1] sm:$0xff] %vm273_vm0, %v342_v16 }
  0x30   : > { %376 = vst.msk [vmem:[#allocation2 + $0xc1] sm:$0xff] %vm273_vm0, %v343_v17  ;;  %377 = vst.msk [vmem:[#allocation2 + $0xc9] sm:$0xff] %vm273_vm0, %v344_v18  ;;  %v4523_v25 = vld [vmem:[#allocation2 + $0x19] sm:$0xff]  ;;  %v4532_v27 = vld [vmem:[#allocation2 + $0x21] sm:$0xff] }
  0x31   : > { %378 = vst.msk [vmem:[#allocation2 + $0xd9] sm:$0xff] %vm273_vm0, %v345_v19  ;;  %379 = vst.msk [vmem:[#allocation2 + $0xe1] sm:$0xff] %vm273_vm0, %v346_v20  ;;  %v4525_v26 = vld [vmem:[#allocation2 + $0x31] sm:$0xff]  ;;  %526 = vrot.lane.b32.xlu1 %v4523_v25, %s4356_s28  ;;  %v4544_v31 = vld [vmem:[#allocation2 + $0x39] sm:$0xff] }
  0x32   : > { %380 = vst.msk [vmem:[#allocation2 + $0xf1] sm:$0xff] %vm273_vm0, %v347_v21  ;;  %381 = vst.msk [vmem:[#allocation2 + $0xf9] sm:$0xff] %vm273_vm0, %v348_v22  ;;  %530 = vrot.lane.b32.xlu0 %v4525_v26, %s4356_s28  ;;  %v4540_v30 = vld [vmem:[#allocation2 + $0x49] sm:$0xff]  ;;  %v4561_v39 = vld [vmem:[#allocation2 + $0x51] sm:$0xff] }
  0x33   : > { %382 = vst.msk [vmem:[#allocation2 + $0x109] sm:$0xff] %vm273_vm0, %v349_v23  ;;  %383 = vst.msk [vmem:[#allocation2 + $0x111] sm:$0xff] %vm273_vm0, %v350_v24  ;;  %v4548_v32 = vld [vmem:[#allocation2 + $0x61] sm:$0xff]  ;;  %v4572_v41 = vld [vmem:[#allocation2 + $0x69] sm:$0xff] }
  0x34   : > { %384 = vst.msk [vmem:[#allocation2 + $0x121] sm:$0xff] %vm273_vm0, %v351_v28  ;;  %385 = vst.msk [vmem:[#allocation2 + $0x129] sm:$0xff] %vm273_vm0, %v352_v29  ;;  %v4568_v40 = vld [vmem:[#allocation2 + $0x79] sm:$0xff]  ;;  %v4580_v43 = vld [vmem:[#allocation2 + $0x81] sm:$0xff] }
  0x35   : > { %528 = vrot.lane.b32.xlu1 %v4532_v27, %s4356_s28  ;;  %386 = vst.msk [vmem:[#allocation2 + $0x139] sm:$0xff] %vm273_vm0, %v353_v33  ;;  %387 = vst.msk [vmem:[#allocation2 + $0x141] sm:$0xff] %vm273_vm0, %v354_v34  ;;  %v4576_v42 = vld [vmem:[#allocation2 + $0x91] sm:$0xff]  ;;  %v4590_v47 = vld [vmem:[#allocation2 + $0x99] sm:$0xff] }
  0x36   : > { %534 = vrot.lane.b32.xlu0 %v4540_v30, %s4356_s28  ;;  %388 = vst.msk [vmem:[#allocation2 + $0x151] sm:$0xff] %vm273_vm0, %v355_v35  ;;  %389 = vst.msk [vmem:[#allocation2 + $0x159] sm:$0xff] %vm273_vm0, %v356_v36  ;;  %v4584_v44 = vld [vmem:[#allocation2 + $0xa9] sm:$0xff]  ;;  %v4588_v46 = vld [vmem:[#allocation2 + $0x18] sm:$0xff] }
  0x37   : > { %390 = vst.msk [vmem:[#allocation2 + $0x169] sm:$0xff] %vm273_vm0, %v357_v37  ;;  %391 = vst.msk [vmem:[#allocation2 + $0x171] sm:$0xff] %vm273_vm0, %v358_v38  ;;  %v4598_v49 = vld [vmem:[#allocation2 + $0x20] sm:$0xff]  ;;  %v4604_v51 = vld [vmem:[#allocation2 + $0x30] sm:$0xff] }
  0x38   : > { %426 = vst.msk [vmem:[#allocation3] sm:$0xff] %vm273_vm0, %v394_v45  ;;  %428 = vst.msk [vmem:[#allocation3 + $0x10] sm:$0xff] %vm273_vm0, %v4588_v46  ;;  %v4600_v50 = vld [vmem:[#allocation2 + $0xc1] sm:$0xff]  ;;  %v4606_v52 = vld [vmem:[#allocation2 + $0x38] sm:$0xff] }
  0x39   : > { %532 = vrot.lane.b32.xlu1 %v4544_v31, %s4356_s28  ;;  %427 = vst.msk [vmem:[#allocation3 + $0x8] sm:$0xff] %vm273_vm0, %v395_v48  ;;  %429 = vst.msk [vmem:[#allocation3 + $0x18] sm:$0xff] %vm273_vm0, %v4598_v49  ;;  %v4610_v53 = vld [vmem:[#allocation2 + $0xb1] sm:$0xff]  ;;  %v4616_v54 = vld [vmem:[#allocation2 + $0x48] sm:$0xff] }
  0x3a   : > { %538 = vrot.lane.b32.xlu0 %v4548_v32, %s4356_s28  ;;  %430 = vst.msk [vmem:[#allocation3 + $0x20] sm:$0xff] %vm273_vm0, %v4604_v51  ;;  %431 = vst.msk [vmem:[#allocation3 + $0x28] sm:$0xff] %vm273_vm0, %v4606_v52  ;;  %v4618_v55 = vld [vmem:[#allocation2 + $0x50] sm:$0xff]  ;;  %v4620_v56 = vld [vmem:[#allocation2 + $0xd9] sm:$0xff] }
  0x3b   : > { %432 = vst.msk [vmem:[#allocation3 + $0x30] sm:$0xff] %vm273_vm0, %v4616_v54  ;;  %433 = vst.msk [vmem:[#allocation3 + $0x38] sm:$0xff] %vm273_vm0, %v4618_v55  ;;  %v4626_v57 = vld [vmem:[#allocation2 + $0x60] sm:$0xff]  ;;  %v4628_v58 = vld [vmem:[#allocation2 + $0x68] sm:$0xff] }
  0x3c   : > { %v4630_v59 = vld [vmem:[#allocation2 + $0x78] sm:$0xff]  ;;  %434 = vst.msk [vmem:[#allocation3 + $0x40] sm:$0xff] %vm273_vm0, %v4626_v57  ;;  %435 = vst.msk [vmem:[#allocation3 + $0x48] sm:$0xff] %vm273_vm0, %v4628_v58  ;;  %v4640_v60 = vld [vmem:[#allocation2 + $0x80] sm:$0xff] }
  0x3d   : > { %536 = vrot.lane.b32.xlu1 %v4561_v39, %s4356_s28  ;;  %436 = vst.msk [vmem:[#allocation3 + $0x50] sm:$0xff] %vm273_vm0, %v4630_v59  ;;  %v4642_v61 = vld [vmem:[#allocation2 + $0x90] sm:$0xff]  ;;  %v4644_v62 = vld [vmem:[#allocation2 + $0x98] sm:$0xff]  ;;  %437 = vst.msk [vmem:[#allocation3 + $0x58] sm:$0xff] %vm273_vm0, %v4640_v60 }
  0x3e   : > { %542 = vrot.lane.b32.xlu0 %v4568_v40, %s4356_s28  ;;  %v4646_v63 = vld [vmem:[#allocation2 + $0xc9] sm:$0xff]  ;;  %438 = vst.msk [vmem:[#allocation3 + $0x60] sm:$0xff] %vm273_vm0, %v4642_v61  ;;  %439 = vst.msk [vmem:[#allocation3 + $0x68] sm:$0xff] %vm273_vm0, %v4644_v62  ;;  %v4658_v2 = vld [vmem:[#allocation2 + $0xc0] sm:$0xff] }
  0x3f   : > { %v4654_v0 = vld [vmem:[#allocation2 + $0xa8] sm:$0xff]  ;;  %v4656_v1 = vld [vmem:[#allocation2 + $0xb0] sm:$0xff]  ;;  %442 = vst.msk [vmem:[#allocation3 + $0x80] sm:$0xff] %vm273_vm0, %v4658_v2  ;;  %v4670_v4 = vld [vmem:[#allocation2 + $0xd8] sm:$0xff] }
  0x40   : > { %440 = vst.msk [vmem:[#allocation3 + $0x70] sm:$0xff] %vm273_vm0, %v4654_v0  ;;  %441 = vst.msk [vmem:[#allocation3 + $0x78] sm:$0xff] %vm273_vm0, %v4656_v1  ;;  %v4668_v3 = vld [vmem:[#allocation2 + $0xc8] sm:$0xff]  ;;  %v4672_v5 = vld [vmem:[#allocation2 + $0xe0] sm:$0xff] }
  0x41   : > { %540 = vrot.lane.b32.xlu1 %v4572_v41, %s4356_s28  ;;  %443 = vst.msk [vmem:[#allocation3 + $0x88] sm:$0xff] %vm273_vm0, %v4668_v3  ;;  %444 = vst.msk [vmem:[#allocation3 + $0x90] sm:$0xff] %vm273_vm0, %v4670_v4  ;;  %v4680_v6 = vld [vmem:[#allocation2 + $0xf0] sm:$0xff]  ;;  %v4682_v7 = vld [vmem:[#allocation2 + $0xf8] sm:$0xff] }
  0x42   : > { %546 = vrot.lane.b32.xlu0 %v4576_v42, %s4356_s28  ;;  %445 = vst.msk [vmem:[#allocation3 + $0x98] sm:$0xff] %vm273_vm0, %v4672_v5  ;;  %v4684_v8 = vld [vmem:[#allocation2 + $0x108] sm:$0xff]  ;;  %446 = vst.msk [vmem:[#allocation3 + $0xa0] sm:$0xff] %vm273_vm0, %v4680_v6  ;;  %v4694_v9 = vld [vmem:[#allocation2 + $0x110] sm:$0xff] }
  0x43   : > { %447 = vst.msk [vmem:[#allocation3 + $0xa8] sm:$0xff] %vm273_vm0, %v4682_v7  ;;  %448 = vst.msk [vmem:[#allocation3 + $0xb0] sm:$0xff] %vm273_vm0, %v4684_v8  ;;  %v4696_v10 = vld [vmem:[#allocation2 + $0xf1] sm:$0xff]  ;;  %v4702_v11 = vld [vmem:[#allocation2 + $0x120] sm:$0xff] }
  0x44   : > { %449 = vst.msk [vmem:[#allocation3 + $0xb8] sm:$0xff] %vm273_vm0, %v4694_v9  ;;  %v4704_v12 = vld [vmem:[#allocation2 + $0x128] sm:$0xff]  ;;  %450 = vst.msk [vmem:[#allocation3 + $0xc0] sm:$0xff] %vm273_vm0, %v4702_v11  ;;  %v4718_v15 = vld [vmem:[#allocation2 + $0x138] sm:$0xff] }
  0x45   : > { %544 = vrot.lane.b32.xlu1 %v4580_v43, %s4356_s28  ;;  %v4706_v13 = vld [vmem:[#allocation2 + $0xe1] sm:$0xff]  ;;  %451 = vst.msk [vmem:[#allocation3 + $0xc8] sm:$0xff] %vm273_vm0, %v4704_v12  ;;  %v4714_v14 = vld [vmem:[#allocation2 + $0x109] sm:$0xff]  ;;  %v4722_v17 = vld [vmem:[#allocation2 + $0xf9] sm:$0xff] }
  0x46   : > { %550 = vrot.lane.b32.xlu0 %v4584_v44, %s4356_s28  ;;  %v4720_v16 = vld [vmem:[#allocation2 + $0x140] sm:$0xff]  ;;  %452 = vst.msk [vmem:[#allocation3 + $0xd0] sm:$0xff] %vm273_vm0, %v4718_v15  ;;  %v4734_v19 = vld [vmem:[#allocation2 + $0x150] sm:$0xff]  ;;  %v4736_v20 = vld [vmem:[#allocation2 + $0x158] sm:$0xff] }
  0x47   : > { %453 = vst.msk [vmem:[#allocation3 + $0xd8] sm:$0xff] %vm273_vm0, %v4720_v16  ;;  %v4730_v18 = vld [vmem:[#allocation2 + $0x121] sm:$0xff]  ;;  %v4738_v21 = vld [vmem:[#allocation2 + $0x111] sm:$0xff]  ;;  %454 = vst.msk [vmem:[#allocation3 + $0xe0] sm:$0xff] %vm273_vm0, %v4734_v19 }
  0x48   : > { %455 = vst.msk [vmem:[#allocation3 + $0xe8] sm:$0xff] %vm273_vm0, %v4736_v20  ;;  %v4746_v22 = vld [vmem:[#allocation2 + $0x139] sm:$0xff]  ;;  %v4750_v23 = vld [vmem:[#allocation2 + $0x168] sm:$0xff]  ;;  %v4752_v24 = vld [vmem:[#allocation2 + $0x170] sm:$0xff] }
  0x49   : > { %548 = vrot.lane.b32.xlu1 %v4590_v47, %s4356_s28  ;;  %v4754_v28 = vld [vmem:[#allocation2 + $0x129] sm:$0xff]  ;;  %456 = vst.msk [vmem:[#allocation3 + $0xf0] sm:$0xff] %vm273_vm0, %v4750_v23  ;;  %457 = vst.msk [vmem:[#allocation3 + $0xf8] sm:$0xff] %vm273_vm0, %v4752_v24  ;;  %v4762_v29 = vld [vmem:[#allocation2 + $0x151] sm:$0xff] }
  0x4a   : > { %554 = vrot.lane.b32.xlu0 %v4600_v50, %s4356_s28  ;;  %v4766_v33 = vld [vmem:[#allocation2 + $0x141] sm:$0xff]  ;;  %v4770_v34 = vld [vmem:[#allocation2 + $0x169] sm:$0xff]  ;;  %v4778_v37 = vld [vmem:[#allocation2 + $0x159] sm:$0xff] }
  0x4b   : > { %6494 = vst [vmem:[#allocation4_spill] sm:$0xff] %v4766_v33  ;;  %6495 = vst [vmem:[#allocation5_spill] sm:$0xff] %v4770_v34  ;;  %v359_v35 = vld [vmem:[%s4478_s27 + $0xf0] sm:$0xff]  ;;  %v360_v36 = vld [vmem:[%s4478_s27 + $0xf8] sm:$0xff] }
  0x4c   : > { %392 = vst.msk [vmem:[#allocation2 + $0x181] sm:$0xff] %vm273_vm0, %v359_v35  ;;  %393 = vst.msk [vmem:[#allocation2 + $0x189] sm:$0xff] %vm273_vm0, %v360_v36  ;;  %v651_v38 = vld [vmem:[#allocation2 + $0x2] sm:$0xff]  ;;  %v4784_v45 = vld [vmem:[#allocation2 + $0x171] sm:$0xff] }
  0x4d   : > { %552 = vrot.lane.b32.xlu1 %v4610_v53, %s4356_s28  ;;  %6496 = vst [vmem:[#allocation6_spill] sm:$0xff] %v4778_v37  ;;  %6497 = vst [vmem:[#allocation7_spill] sm:$0xff] %v4784_v45  ;;  %v4787_v48 = vld [vmem:[#allocation2 + $0x1a] sm:$0xff]  ;;  %v652_v35 = vld [vmem:[#allocation2 + $0xa] sm:$0xff] }
  0x4e   : > { %558 = vrot.lane.b32.xlu0 %v4620_v56, %s4356_s28  ;;  %6498 = vst [vmem:[#allocation8_spill] sm:$0xff] %v4787_v48  ;;  %v4793_v36 = vld [vmem:[#allocation2 + $0x32] sm:$0xff] }
  0x4f   : > { %6499 = vst [vmem:[#allocation9_spill] sm:$0xff] %v4793_v36 }
  0x51   : > { %556 = vrot.lane.b32.xlu1 %v4646_v63, %s4356_s28 }
  0x52   : > { %562 = vrot.lane.b32.xlu0 %v4696_v10, %s4356_s28 }
  0x55   : > { %560 = vrot.lane.b32.xlu1 %v4706_v13, %s4356_s28 }
  0x56   : > { %566 = vrot.lane.b32.xlu0 %v4714_v14, %s4356_s28 }
  0x59   : > { %564 = vrot.lane.b32.xlu1 %v4722_v17, %s4356_s28 }
  0x5a   : > { %570 = vrot.lane.b32.xlu0 %v4730_v18, %s4356_s28 }
  0x5d   : > { %568 = vrot.lane.b32.xlu1 %v4738_v21, %s4356_s28 }
  0x5e   : > { %574 = vrot.lane.b32.xlu0 %v4746_v22, %s4356_s28 }
  0x61   : > { %572 = vrot.lane.b32.xlu1 %v4754_v28, %s4356_s28 }
  0x62   : > { %578 = vrot.lane.b32.xlu0 %v4762_v29, %s4356_s28 }
  0x65   : > { %576 = vrot.lane.b32.xlu1 %v4766_v33, %s4356_s28 }
  0x66   : > { %582 = vrot.lane.b32.xlu0 %v4770_v34, %s4356_s28  ;;  %v4796_v34 = vld [vmem:[#allocation2 + $0x22] sm:$0xff] }
  0x67   : > { %6500 = vst [vmem:[#allocation10_spill] sm:$0xff] %v4796_v34 }
  0x69   : > { %580 = vrot.lane.b32.xlu1 %v4778_v37, %s4356_s28  ;;  %v4800_v37 = vld [vmem:[#allocation2 + $0x4a] sm:$0xff] }
  0x6a   : > { %715 = vrot.lane.b32.xlu0 %v651_v38, %s4357_s29  ;;  %6501 = vst [vmem:[#allocation11_spill] sm:$0xff] %v4800_v37  ;;  %v4804_v38 = vld [vmem:[#allocation2 + $0x3a] sm:$0xff] }
  0x6b   : > { %6502 = vst [vmem:[#allocation12_spill] sm:$0xff] %v4804_v38 }
  0x6d   : > { %584 = vrot.lane.b32.xlu1 %v4784_v45, %s4356_s28  ;;  %v4884_v45 = vld [vmem:[#allocation2 + $0x12a] sm:$0xff] }
  0x6e   : > { %719 = vrot.lane.b32.xlu0 %v4787_v48, %s4357_s29  ;;  %v4808_v48 = vld [vmem:[#allocation2 + $0x62] sm:$0xff]  ;;  %6522 = vst [vmem:[#allocation32_spill] sm:$0xff] %v4884_v45 }
  0x6f   : > { %6503 = vst [vmem:[#allocation13_spill] sm:$0xff] %v4808_v48 }
  0x71   : > { %717 = vrot.lane.b32.xlu1 %v652_v35, %s4357_s29  ;;  %v4812_v35 = vld [vmem:[#allocation2 + $0x52] sm:$0xff] }
  0x72   : > { %723 = vrot.lane.b32.xlu0 %v4793_v36, %s4357_s29  ;;  %6504 = vst [vmem:[#allocation14_spill] sm:$0xff] %v4812_v35  ;;  %v4816_v36 = vld [vmem:[#allocation2 + $0x7a] sm:$0xff] }
  0x73   : > { %6505 = vst [vmem:[#allocation15_spill] sm:$0xff] %v4816_v36 }
  0x75   : > { %721 = vrot.lane.b32.xlu1 %v4796_v34, %s4357_s29  ;;  %v4820_v34 = vld [vmem:[#allocation2 + $0x6a] sm:$0xff] }
  0x76   : > { %727 = vrot.lane.b32.xlu0 %v4800_v37, %s4357_s29  ;;  %6506 = vst [vmem:[#allocation16_spill] sm:$0xff] %v4820_v34  ;;  %v4824_v37 = vld [vmem:[#allocation2 + $0x92] sm:$0xff] }
  0x77   : > { %6507 = vst [vmem:[#allocation17_spill] sm:$0xff] %v4824_v37 }
  0x79   : > { %725 = vrot.lane.b32.xlu1 %v4804_v38, %s4357_s29  ;;  %v4828_v38 = vld [vmem:[#allocation2 + $0x82] sm:$0xff] }
  0x7a   : > { %731 = vrot.lane.b32.xlu0 %v4808_v48, %s4357_s29  ;;  %6508 = vst [vmem:[#allocation18_spill] sm:$0xff] %v4828_v38  ;;  %v4832_v48 = vld [vmem:[#allocation2 + $0xaa] sm:$0xff] }
  0x7b   : > { %6509 = vst [vmem:[#allocation19_spill] sm:$0xff] %v4832_v48 }
  0x7d   : > { %729 = vrot.lane.b32.xlu1 %v4812_v35, %s4357_s29  ;;  %v4836_v35 = vld [vmem:[#allocation2 + $0x9a] sm:$0xff] }
  0x7e   : > { %735 = vrot.lane.b32.xlu0 %v4816_v36, %s4357_s29  ;;  %6510 = vst [vmem:[#allocation20_spill] sm:$0xff] %v4836_v35  ;;  %v4840_v36 = vld [vmem:[#allocation2 + $0xc2] sm:$0xff] }
  0x7f   : > { %6511 = vst [vmem:[#allocation21_spill] sm:$0xff] %v4840_v36 }
  0x81   : > { %733 = vrot.lane.b32.xlu1 %v4820_v34, %s4357_s29  ;;  %v4844_v34 = vld [vmem:[#allocation2 + $0xb2] sm:$0xff] }
  0x82   : > { %739 = vrot.lane.b32.xlu0 %v4824_v37, %s4357_s29  ;;  %6512 = vst [vmem:[#allocation22_spill] sm:$0xff] %v4844_v34  ;;  %v4848_v37 = vld [vmem:[#allocation2 + $0xda] sm:$0xff] }
  0x83   : > { %6513 = vst [vmem:[#allocation23_spill] sm:$0xff] %v4848_v37 }
  0x85   : > { %737 = vrot.lane.b32.xlu1 %v4828_v38, %s4357_s29  ;;  %v4852_v38 = vld [vmem:[#allocation2 + $0xca] sm:$0xff] }
  0x86   : > { %743 = vrot.lane.b32.xlu0 %v4832_v48, %s4357_s29  ;;  %6514 = vst [vmem:[#allocation24_spill] sm:$0xff] %v4852_v38  ;;  %v4856_v48 = vld [vmem:[#allocation2 + $0xf2] sm:$0xff] }
  0x87   : > { %6515 = vst [vmem:[#allocation25_spill] sm:$0xff] %v4856_v48 }
  0x89   : > { %741 = vrot.lane.b32.xlu1 %v4836_v35, %s4357_s29  ;;  %v4860_v35 = vld [vmem:[#allocation2 + $0xe2] sm:$0xff] }
  0x8a   : > { %747 = vrot.lane.b32.xlu0 %v4840_v36, %s4357_s29  ;;  %6516 = vst [vmem:[#allocation26_spill] sm:$0xff] %v4860_v35  ;;  %v4864_v36 = vld [vmem:[#allocation2 + $0x10a] sm:$0xff] }
  0x8b   : > { %6517 = vst [vmem:[#allocation27_spill] sm:$0xff] %v4864_v36 }
  0x8d   : > { %745 = vrot.lane.b32.xlu1 %v4844_v34, %s4357_s29  ;;  %v4868_v34 = vld [vmem:[#allocation2 + $0xfa] sm:$0xff] }
  0x8e   : > { %751 = vrot.lane.b32.xlu0 %v4848_v37, %s4357_s29  ;;  %6518 = vst [vmem:[#allocation28_spill] sm:$0xff] %v4868_v34  ;;  %v4872_v37 = vld [vmem:[#allocation2 + $0x122] sm:$0xff] }
  0x8f   : > { %6519 = vst [vmem:[#allocation29_spill] sm:$0xff] %v4872_v37 }
  0x91   : > { %749 = vrot.lane.b32.xlu1 %v4852_v38, %s4357_s29  ;;  %v4876_v38 = vld [vmem:[#allocation2 + $0x112] sm:$0xff] }
  0x92   : > { %755 = vrot.lane.b32.xlu0 %v4856_v48, %s4357_s29  ;;  %6520 = vst [vmem:[#allocation30_spill] sm:$0xff] %v4876_v38  ;;  %v4880_v48 = vld [vmem:[#allocation2 + $0x13a] sm:$0xff] }
  0x93   : > { %6521 = vst [vmem:[#allocation31_spill] sm:$0xff] %v4880_v48 }
  0x95   : > { %753 = vrot.lane.b32.xlu1 %v4860_v35, %s4357_s29  ;;  %v523_v35 = vpop.permute.xlu0 %522 }
  0x96   : > { %759 = vrot.lane.b32.xlu0 %v4864_v36, %s4357_s29  ;;  %619 = vst.msk [vmem:[#allocation3] sm:$0xff] %vm618_vm2, %v523_v35  ;;  %v4893_v36 = vld [vmem:[#allocation2 + $0x142] sm:$0xff]  ;;  %v4899_v35 = vld [vmem:[#allocation2 + $0x16a] sm:$0xff] }
  0x97   : > { %6523 = vst [vmem:[#allocation33_spill] sm:$0xff] %v4893_v36 }
  0x99   : > { %757 = vrot.lane.b32.xlu1 %v4868_v34, %s4357_s29  ;;  %v4889_v34 = vld [vmem:[#allocation2 + $0x152] sm:$0xff] }
  0x9a   : > { %763 = vrot.lane.b32.xlu0 %v4872_v37, %s4357_s29  ;;  %v525_v37 = vpop.permute.xlu0 %524 }
  0x9b   : > { %620 = vst.msk [vmem:[#allocation3 + $0x8] sm:$0xff] %vm618_vm2, %v525_v37  ;;  %v4911_v37 = vld [vmem:[#allocation2 + $0x172] sm:$0xff] }
  0x9d   : > { %761 = vrot.lane.b32.xlu1 %v4876_v38, %s4357_s29  ;;  %v4903_v38 = vld [vmem:[#allocation2 + $0x15a] sm:$0xff] }
  0x9e   : > { %767 = vrot.lane.b32.xlu0 %v4880_v48, %s4357_s29 }
  0xa1   : > { %765 = vrot.lane.b32.xlu1 %v4884_v45, %s4357_s29 }
  0xa2   : > { %771 = vrot.lane.b32.xlu0 %v4889_v34, %s4357_s29 }
  0xa3   : > { %v527_v33 = vpop.permute.xlu1 %526 }
  0xa4   : > { %621 = vst.msk [vmem:[#allocation3 + $0x10] sm:$0xff] %vm618_vm2, %v527_v33  ;;  %v531_v48 = vpop.permute.xlu0 %530 }
  0xa5   : > { %769 = vrot.lane.b32.xlu1 %v4893_v36, %s4357_s29  ;;  %623 = vst.msk [vmem:[#allocation3 + $0x20] sm:$0xff] %vm618_vm2, %v531_v48 }
  0xa6   : > { %775 = vrot.lane.b32.xlu0 %v4899_v35, %s4357_s29 }
  0xa7   : > { %v529_v45 = vpop.permute.xlu1 %528 }
  0xa8   : > { %622 = vst.msk [vmem:[#allocation3 + $0x18] sm:$0xff] %vm618_vm2, %v529_v45  ;;  %v535_v33 = vpop.permute.xlu0 %534 }
  0xa9   : > { %773 = vrot.lane.b32.xlu1 %v4903_v38, %s4357_s29  ;;  %625 = vst.msk [vmem:[#allocation3 + $0x30] sm:$0xff] %vm618_vm2, %v535_v33 }
  0xaa   : > { %908 = vrot.lane.b32.xlu0 %v4588_v46, %s4358_s30 }
  0xab   : > { %v533_v36 = vpop.permute.xlu1 %532 }
  0xac   : > { %624 = vst.msk [vmem:[#allocation3 + $0x28] sm:$0xff] %vm618_vm2, %v533_v36  ;;  %v539_v48 = vpop.permute.xlu0 %538 }
  0xad   : > { %777 = vrot.lane.b32.xlu1 %v4911_v37, %s4357_s29  ;;  %627 = vst.msk [vmem:[#allocation3 + $0x40] sm:$0xff] %vm618_vm2, %v539_v48 }
  0xae   : > { %912 = vrot.lane.b32.xlu0 %v4604_v51, %s4358_s30 }
  0xaf   : > { %v537_v45 = vpop.permute.xlu1 %536 }
  0xb0   : > { %626 = vst.msk [vmem:[#allocation3 + $0x38] sm:$0xff] %vm618_vm2, %v537_v45  ;;  %v543_v33 = vpop.permute.xlu0 %542 }
  0xb1   : > { %910 = vrot.lane.b32.xlu1 %v4598_v49, %s4358_s30  ;;  %629 = vst.msk [vmem:[#allocation3 + $0x50] sm:$0xff] %vm618_vm2, %v543_v33 }
  0xb2   : > { %916 = vrot.lane.b32.xlu0 %v4616_v54, %s4358_s30 }
  0xb3   : > { %v541_v46 = vpop.permute.xlu1 %540 }
  0xb4   : > { %628 = vst.msk [vmem:[#allocation3 + $0x48] sm:$0xff] %vm618_vm2, %v541_v46  ;;  %v547_v36 = vpop.permute.xlu0 %546 }
  0xb5   : > { %914 = vrot.lane.b32.xlu1 %v4606_v52, %s4358_s30  ;;  %631 = vst.msk [vmem:[#allocation3 + $0x60] sm:$0xff] %vm618_vm2, %v547_v36 }
  0xb6   : > { %920 = vrot.lane.b32.xlu0 %v4626_v57, %s4358_s30 }
  0xb7   : > { %v545_v48 = vpop.permute.xlu1 %544 }
  0xb8   : > { %630 = vst.msk [vmem:[#allocation3 + $0x58] sm:$0xff] %vm618_vm2, %v545_v48  ;;  %v551_v49 = vpop.permute.xlu0 %550 }
  0xb9   : > { %918 = vrot.lane.b32.xlu1 %v4618_v55, %s4358_s30  ;;  %633 = vst.msk [vmem:[#allocation3 + $0x70] sm:$0xff] %vm618_vm2, %v551_v49 }
  0xba   : > { %924 = vrot.lane.b32.xlu0 %v4630_v59, %s4358_s30 }
  0xbb   : > { %v549_v45 = vpop.permute.xlu1 %548 }
  0xbc   : > { %632 = vst.msk [vmem:[#allocation3 + $0x68] sm:$0xff] %vm618_vm2, %v549_v45  ;;  %v555_v33 = vpop.permute.xlu0 %554 }
  0xbd   : > { %922 = vrot.lane.b32.xlu1 %v4628_v58, %s4358_s30  ;;  %635 = vst.msk [vmem:[#allocation3 + $0x80] sm:$0xff] %vm618_vm2, %v555_v33 }
  0xbe   : > { %928 = vrot.lane.b32.xlu0 %v4642_v61, %s4358_s30 }
  0xbf   : > { %v553_v46 = vpop.permute.xlu1 %552 }
  0xc0   : > { %634 = vst.msk [vmem:[#allocation3 + $0x78] sm:$0xff] %vm618_vm2, %v553_v46  ;;  %v559_v36 = vpop.permute.xlu0 %558 }
  0xc1   : > { %926 = vrot.lane.b32.xlu1 %v4640_v60, %s4358_s30  ;;  %637 = vst.msk [vmem:[#allocation3 + $0x90] sm:$0xff] %vm618_vm2, %v559_v36 }
  0xc2   : > { %932 = vrot.lane.b32.xlu0 %v4654_v0, %s4358_s30 }
  0xc3   : > { %v557_v48 = vpop.permute.xlu1 %556 }
  0xc4   : > { %636 = vst.msk [vmem:[#allocation3 + $0x88] sm:$0xff] %vm618_vm2, %v557_v48  ;;  %v563_v49 = vpop.permute.xlu0 %562 }
  0xc5   : > { %930 = vrot.lane.b32.xlu1 %v4644_v62, %s4358_s30  ;;  %639 = vst.msk [vmem:[#allocation3 + $0xa0] sm:$0xff] %vm618_vm2, %v563_v49 }
  0xc6   : > { %936 = vrot.lane.b32.xlu0 %v4658_v2, %s4358_s30 }
  0xc7   : > { %v561_v45 = vpop.permute.xlu1 %560 }
  0xc8   : > { %638 = vst.msk [vmem:[#allocation3 + $0x98] sm:$0xff] %vm618_vm2, %v561_v45  ;;  %v567_v33 = vpop.permute.xlu0 %566  ;;  %v875_v45 = vld [vmem:[#allocation2 + $0x188] sm:$0xff] }
  0xc9   : > { %934 = vrot.lane.b32.xlu1 %v4656_v1, %s4358_s30  ;;  %641 = vst.msk [vmem:[#allocation3 + $0xb0] sm:$0xff] %vm618_vm2, %v567_v33 }
  0xca   : > { %940 = vrot.lane.b32.xlu0 %v4670_v4, %s4358_s30 }
  0xcb   : > { %v565_v46 = vpop.permute.xlu1 %564 }
  0xcc   : > { %640 = vst.msk [vmem:[#allocation3 + $0xa8] sm:$0xff] %vm618_vm2, %v565_v46  ;;  %v571_v36 = vpop.permute.xlu0 %570 }
  0xcd   : > { %938 = vrot.lane.b32.xlu1 %v4668_v3, %s4358_s30  ;;  %643 = vst.msk [vmem:[#allocation3 + $0xc0] sm:$0xff] %vm618_vm2, %v571_v36 }
  0xce   : > { %944 = vrot.lane.b32.xlu0 %v4680_v6, %s4358_s30 }
  0xcf   : > { %v569_v2 = vpop.permute.xlu1 %568 }
  0xd0   : > { %642 = vst.msk [vmem:[#allocation3 + $0xb8] sm:$0xff] %vm618_vm2, %v569_v2  ;;  %v575_v48 = vpop.permute.xlu0 %574  ;;  %v6525_v2 = vld [vmem:[#allocation5_spill] sm:$0xff] }
  0xd1   : > { %942 = vrot.lane.b32.xlu1 %v4672_v5, %s4358_s30  ;;  %645 = vst.msk [vmem:[#allocation3 + $0xd0] sm:$0xff] %vm618_vm2, %v575_v48  ;;  %v6526_v48 = vld [vmem:[#allocation6_spill] sm:$0xff] }
  0xd2   : > { %948 = vrot.lane.b32.xlu0 %v4684_v8, %s4358_s30 }
  0xd3   : > { %v573_v4 = vpop.permute.xlu1 %572 }
  0xd4   : > { %644 = vst.msk [vmem:[#allocation3 + $0xc8] sm:$0xff] %vm618_vm2, %v573_v4  ;;  %v579_v3 = vpop.permute.xlu0 %578 }
  0xd5   : > { %946 = vrot.lane.b32.xlu1 %v4682_v7, %s4358_s30  ;;  %647 = vst.msk [vmem:[#allocation3 + $0xe0] sm:$0xff] %vm618_vm2, %v579_v3  ;;  %v6527_v3 = vld [vmem:[#allocation7_spill] sm:$0xff] }
  0xd6   : > { %952 = vrot.lane.b32.xlu0 %v4702_v11, %s4358_s30 }
  0xd7   : > { %v577_v6 = vpop.permute.xlu1 %576 }
  0xd8   : > { %646 = vst.msk [vmem:[#allocation3 + $0xd8] sm:$0xff] %vm618_vm2, %v577_v6  ;;  %v583_v5 = vpop.permute.xlu0 %582 }
  0xd9   : > { %950 = vrot.lane.b32.xlu1 %v4694_v9, %s4358_s30  ;;  %649 = vst.msk [vmem:[#allocation3 + $0xf0] sm:$0xff] %vm618_vm2, %v583_v5  ;;  %v1068_v5 = vld [vmem:[#allocation2 + $0x189] sm:$0xff] }
  0xda   : > { %956 = vrot.lane.b32.xlu0 %v4718_v15, %s4358_s30 }
  0xdb   : > { %v581_v8 = vpop.permute.xlu1 %580 }
  0xdc   : > { %648 = vst.msk [vmem:[#allocation3 + $0xe8] sm:$0xff] %vm618_vm2, %v581_v8  ;;  %v716_v7 = vpop.permute.xlu0 %715 }
  0xdd   : > { %954 = vrot.lane.b32.xlu1 %v4704_v12, %s4358_s30  ;;  %812 = vst.msk [vmem:[#allocation3] sm:$0xff] %vm811_vm3, %v716_v7  ;;  %v874_v12 = vld [vmem:[#allocation2 + $0x180] sm:$0xff]  ;;  %v6528_v7 = vld [vmem:[#allocation8_spill] sm:$0xff] }
  0xde   : > { %960 = vrot.lane.b32.xlu0 %v4734_v19, %s4358_s30 }
  0xdf   : > { %v585_v11 = vpop.permute.xlu1 %584 }
  0xe0   : > { %650 = vst.msk [vmem:[#allocation3 + $0xf8] sm:$0xff] %vm618_vm2, %v585_v11  ;;  %v720_v9 = vpop.permute.xlu0 %719 }
  0xe1   : > { %958 = vrot.lane.b32.xlu1 %v4720_v16, %s4358_s30  ;;  %814 = vst.msk [vmem:[#allocation3 + $0x10] sm:$0xff] %vm811_vm3, %v720_v9 }
  0xe2   : > { %964 = vrot.lane.b32.xlu0 %v4750_v23, %s4358_s30 }
  0xe3   : > { %v718_v15 = vpop.permute.xlu1 %717 }
  0xe4   : > { %813 = vst.msk [vmem:[#allocation3 + $0x8] sm:$0xff] %vm811_vm3, %v718_v15  ;;  %v724_v49 = vpop.permute.xlu0 %723  ;;  %v6529_v15 = vld [vmem:[#allocation9_spill] sm:$0xff] }
  0xe5   : > { %962 = vrot.lane.b32.xlu1 %v4736_v20, %s4358_s30  ;;  %816 = vst.msk [vmem:[#allocation3 + $0x20] sm:$0xff] %vm811_vm3, %v724_v49 }
  0xe6   : > { %968 = vrot.lane.b32.xlu0 %v874_v12, %s4358_s30  ;;  %v6530_v12 = vld [vmem:[#allocation10_spill] sm:$0xff] }
  0xe7   : > { %v722_v19 = vpop.permute.xlu1 %721 }
  0xe8   : > { %815 = vst.msk [vmem:[#allocation3 + $0x18] sm:$0xff] %vm811_vm3, %v722_v19  ;;  %v728_v16 = vpop.permute.xlu0 %727 }
  0xe9   : > { %966 = vrot.lane.b32.xlu1 %v4752_v24, %s4358_s30  ;;  %818 = vst.msk [vmem:[#allocation3 + $0x30] sm:$0xff] %vm811_vm3, %v728_v16  ;;  %v6531_v16 = vld [vmem:[#allocation11_spill] sm:$0xff] }
  0xea   : > { %1101 = vrot.lane.b32.xlu0 %v4523_v25, %s4359_s7 }
  0xeb   : > { %v726_v23 = vpop.permute.xlu1 %725 }
  0xec   : > { %817 = vst.msk [vmem:[#allocation3 + $0x28] sm:$0xff] %vm811_vm3, %v726_v23  ;;  %v732_v20 = vpop.permute.xlu0 %731 }
  0xed   : > { %970 = vrot.lane.b32.xlu1 %v875_v45, %s4358_s30  ;;  %820 = vst.msk [vmem:[#allocation3 + $0x40] sm:$0xff] %vm811_vm3, %v732_v20  ;;  %v6532_v45 = vld [vmem:[#allocation12_spill] sm:$0xff] }
  0xee   : > { %1105 = vrot.lane.b32.xlu0 %v4525_v26, %s4359_s7 }
  0xef   : > { %v730_v33 = vpop.permute.xlu1 %729 }
  0xf0   : > { %819 = vst.msk [vmem:[#allocation3 + $0x38] sm:$0xff] %vm811_vm3, %v730_v33  ;;  %v736_v24 = vpop.permute.xlu0 %735  ;;  %v6533_v33 = vld [vmem:[#allocation13_spill] sm:$0xff] }
  0xf1   : > { %1103 = vrot.lane.b32.xlu1 %v4532_v27, %s4359_s7  ;;  %822 = vst.msk [vmem:[#allocation3 + $0x50] sm:$0xff] %vm811_vm3, %v736_v24  ;;  %v6534_v24 = vld [vmem:[#allocation14_spill] sm:$0xff] }
  0xf2   : > { %1109 = vrot.lane.b32.xlu0 %v4540_v30, %s4359_s7 }
  0xf3   : > { %v734_v25 = vpop.permute.xlu1 %733 }
  0xf4   : > { %821 = vst.msk [vmem:[#allocation3 + $0x48] sm:$0xff] %vm811_vm3, %v734_v25  ;;  %v740_v46 = vpop.permute.xlu0 %739 }
  0xf5   : > { %1107 = vrot.lane.b32.xlu1 %v4544_v31, %s4359_s7  ;;  %824 = vst.msk [vmem:[#allocation3 + $0x60] sm:$0xff] %vm811_vm3, %v740_v46 }
  0xf6   : > { %1113 = vrot.lane.b32.xlu0 %v4548_v32, %s4359_s7 }
  0xf7   : > { %v738_v26 = vpop.permute.xlu1 %737 }
  0xf8   : > { %823 = vst.msk [vmem:[#allocation3 + $0x58] sm:$0xff] %vm811_vm3, %v738_v26  ;;  %v744_v27 = vpop.permute.xlu0 %743  ;;  %v6535_v26 = vld [vmem:[#allocation15_spill] sm:$0xff] }
  0xf9   : > { %1111 = vrot.lane.b32.xlu1 %v4561_v39, %s4359_s7  ;;  %826 = vst.msk [vmem:[#allocation3 + $0x70] sm:$0xff] %vm811_vm3, %v744_v27  ;;  %v6536_v27 = vld [vmem:[#allocation16_spill] sm:$0xff] }
  0xfa   : > { %1117 = vrot.lane.b32.xlu0 %v4568_v40, %s4359_s7 }
  0xfb   : > { %v742_v30 = vpop.permute.xlu1 %741 }
  0xfc   : > { %825 = vst.msk [vmem:[#allocation3 + $0x68] sm:$0xff] %vm811_vm3, %v742_v30  ;;  %v748_v31 = vpop.permute.xlu0 %747 }
  0xfd   : > { %1115 = vrot.lane.b32.xlu1 %v4572_v41, %s4359_s7  ;;  %828 = vst.msk [vmem:[#allocation3 + $0x80] sm:$0xff] %vm811_vm3, %v748_v31 }
  0xfe   : > { %1121 = vrot.lane.b32.xlu0 %v4576_v42, %s4359_s7 }
  0xff   : > { %v746_v32 = vpop.permute.xlu1 %745 }
 0x100   : > { %827 = vst.msk [vmem:[#allocation3 + $0x78] sm:$0xff] %vm811_vm3, %v746_v32  ;;  %v752_v39 = vpop.permute.xlu0 %751  ;;  %v6537_v32 = vld [vmem:[#allocation17_spill] sm:$0xff] }
 0x101   : > { %1119 = vrot.lane.b32.xlu1 %v4580_v43, %s4359_s7  ;;  %830 = vst.msk [vmem:[#allocation3 + $0x90] sm:$0xff] %vm811_vm3, %v752_v39  ;;  %v6538_v39 = vld [vmem:[#allocation18_spill] sm:$0xff] }
 0x102   : > { %1125 = vrot.lane.b32.xlu0 %v4584_v44, %s4359_s7 }
 0x103   : > { %v750_v40 = vpop.permute.xlu1 %749 }
 0x104   : > { %829 = vst.msk [vmem:[#allocation3 + $0x88] sm:$0xff] %vm811_vm3, %v750_v40  ;;  %v756_v41 = vpop.permute.xlu0 %755 }
 0x105   : > { %1123 = vrot.lane.b32.xlu1 %v4590_v47, %s4359_s7  ;;  %832 = vst.msk [vmem:[#allocation3 + $0xa0] sm:$0xff] %vm811_vm3, %v756_v41 }
 0x106   : > { %1129 = vrot.lane.b32.xlu0 %v4600_v50, %s4359_s7 }
 0x107   : > { %v754_v42 = vpop.permute.xlu1 %753 }
 0x108   : > { %831 = vst.msk [vmem:[#allocation3 + $0x98] sm:$0xff] %vm811_vm3, %v754_v42  ;;  %v760_v43 = vpop.permute.xlu0 %759  ;;  %v6539_v42 = vld [vmem:[#allocation19_spill] sm:$0xff] }
 0x109   : > { %1127 = vrot.lane.b32.xlu1 %v4610_v53, %s4359_s7  ;;  %834 = vst.msk [vmem:[#allocation3 + $0xb0] sm:$0xff] %vm811_vm3, %v760_v43  ;;  %v6540_v43 = vld [vmem:[#allocation20_spill] sm:$0xff] }
 0x10a   : > { %1133 = vrot.lane.b32.xlu0 %v4620_v56, %s4359_s7 }
 0x10b   : > { %v758_v44 = vpop.permute.xlu1 %757 }
 0x10c   : > { %833 = vst.msk [vmem:[#allocation3 + $0xa8] sm:$0xff] %vm811_vm3, %v758_v44  ;;  %v764_v47 = vpop.permute.xlu0 %763 }
 0x10d   : > { %1131 = vrot.lane.b32.xlu1 %v4646_v63, %s4359_s7  ;;  %836 = vst.msk [vmem:[#allocation3 + $0xc0] sm:$0xff] %vm811_vm3, %v764_v47 }
 0x10e   : > { %1137 = vrot.lane.b32.xlu0 %v4696_v10, %s4359_s7 }
 0x10f   : > { %v762_v50 = vpop.permute.xlu1 %761 }
 0x110   : > { %835 = vst.msk [vmem:[#allocation3 + $0xb8] sm:$0xff] %vm811_vm3, %v762_v50  ;;  %v768_v53 = vpop.permute.xlu0 %767  ;;  %v6541_v50 = vld [vmem:[#allocation21_spill] sm:$0xff] }
 0x111   : > { %1135 = vrot.lane.b32.xlu1 %v4706_v13, %s4359_s7  ;;  %838 = vst.msk [vmem:[#allocation3 + $0xd0] sm:$0xff] %vm811_vm3, %v768_v53  ;;  %v6542_v53 = vld [vmem:[#allocation22_spill] sm:$0xff] }
 0x112   : > { %1141 = vrot.lane.b32.xlu0 %v4714_v14, %s4359_s7 }
 0x113   : > { %v766_v56 = vpop.permute.xlu1 %765 }
 0x114   : > { %837 = vst.msk [vmem:[#allocation3 + $0xc8] sm:$0xff] %vm811_vm3, %v766_v56  ;;  %v772_v63 = vpop.permute.xlu0 %771 }
 0x115   : > { %1139 = vrot.lane.b32.xlu1 %v4722_v17, %s4359_s7  ;;  %840 = vst.msk [vmem:[#allocation3 + $0xe0] sm:$0xff] %vm811_vm3, %v772_v63 }
 0x116   : > { %1145 = vrot.lane.b32.xlu0 %v4730_v18, %s4359_s7 }
 0x117   : > { %v770_v10 = vpop.permute.xlu1 %769 }
 0x118   : > { %839 = vst.msk [vmem:[#allocation3 + $0xd8] sm:$0xff] %vm811_vm3, %v770_v10  ;;  %v776_v13 = vpop.permute.xlu0 %775  ;;  %v6543_v10 = vld [vmem:[#allocation23_spill] sm:$0xff] }
 0x119   : > { %1143 = vrot.lane.b32.xlu1 %v4738_v21, %s4359_s7  ;;  %842 = vst.msk [vmem:[#allocation3 + $0xf0] sm:$0xff] %vm811_vm3, %v776_v13  ;;  %v6524_v21 = vld [vmem:[#allocation4_spill] sm:$0xff] }
 0x11a   : > { %1149 = vrot.lane.b32.xlu0 %v4746_v22, %s4359_s7  ;;  %v6544_v13 = vld [vmem:[#allocation24_spill] sm:$0xff] }
 0x11b   : > { %v774_v14 = vpop.permute.xlu1 %773 }
 0x11c   : > { %841 = vst.msk [vmem:[#allocation3 + $0xe8] sm:$0xff] %vm811_vm3, %v774_v14  ;;  %v909_v17 = vpop.permute.xlu0 %908 }
 0x11d   : > { %1147 = vrot.lane.b32.xlu1 %v4754_v28, %s4359_s7  ;;  %1005 = vst.msk [vmem:[#allocation3] sm:$0xff] %vm1004_vm4, %v909_v17  ;;  %v1067_v28 = vld [vmem:[#allocation2 + $0x181] sm:$0xff] }
 0x11e   : > { %1153 = vrot.lane.b32.xlu0 %v4762_v29, %s4359_s7 }
 0x11f   : > { %v778_v18 = vpop.permute.xlu1 %777 }
 0x120   : > { %843 = vst.msk [vmem:[#allocation3 + $0xf8] sm:$0xff] %vm811_vm3, %v778_v18  ;;  %v913_v36 = vpop.permute.xlu0 %912  ;;  %v6545_v18 = vld [vmem:[#allocation25_spill] sm:$0xff] }
 0x121   : > { %1151 = vrot.lane.b32.xlu1 %v6524_v21, %s4359_s7  ;;  %1007 = vst.msk [vmem:[#allocation3 + $0x10] sm:$0xff] %vm1004_vm4, %v913_v36  ;;  %v6546_v21 = vld [vmem:[#allocation26_spill] sm:$0xff] }
 0x122   : > { %1157 = vrot.lane.b32.xlu0 %v6525_v2, %s4359_s7  ;;  %v6547_v2 = vld [vmem:[#allocation27_spill] sm:$0xff] }
 0x123   : > { %v911_v22 = vpop.permute.xlu1 %910 }
 0x124   : > { %1006 = vst.msk [vmem:[#allocation3 + $0x8] sm:$0xff] %vm1004_vm4, %v911_v22  ;;  %v917_v4 = vpop.permute.xlu0 %916 }
 0x125   : > { %1155 = vrot.lane.b32.xlu1 %v6526_v48, %s4359_s7  ;;  %1009 = vst.msk [vmem:[#allocation3 + $0x20] sm:$0xff] %vm1004_vm4, %v917_v4 }
 0x126   : > { %1161 = vrot.lane.b32.xlu0 %v1067_v28, %s4359_s7  ;;  %v6548_v28 = vld [vmem:[#allocation28_spill] sm:$0xff] }
 0x127   : > { %v915_v29 = vpop.permute.xlu1 %914 }
 0x128   : > { %1008 = vst.msk [vmem:[#allocation3 + $0x18] sm:$0xff] %vm1004_vm4, %v915_v29  ;;  %v921_v6 = vpop.permute.xlu0 %920  ;;  %v6549_v29 = vld [vmem:[#allocation29_spill] sm:$0xff] }
 0x129   : > { %1159 = vrot.lane.b32.xlu1 %v6527_v3, %s4359_s7  ;;  %1011 = vst.msk [vmem:[#allocation3 + $0x30] sm:$0xff] %vm1004_vm4, %v921_v6  ;;  %v6550_v3 = vld [vmem:[#allocation30_spill] sm:$0xff] }
 0x12a   : > { %1294 = vrot.lane.b32.xlu0 %v6528_v7, %s4360_s8  ;;  %v6552_v7 = vld [vmem:[#allocation32_spill] sm:$0xff] }
 0x12b   : > { %v919_v8 = vpop.permute.xlu1 %918 }
 0x12c   : > { %1010 = vst.msk [vmem:[#allocation3 + $0x28] sm:$0xff] %vm1004_vm4, %v919_v8  ;;  %v925_v11 = vpop.permute.xlu0 %924  ;;  %v6551_v8 = vld [vmem:[#allocation31_spill] sm:$0xff] }
 0x12d   : > { %1163 = vrot.lane.b32.xlu1 %v1068_v5, %s4359_s7  ;;  %1013 = vst.msk [vmem:[#allocation3 + $0x40] sm:$0xff] %vm1004_vm4, %v925_v11 }
 0x12e   : > { %1298 = vrot.lane.b32.xlu0 %v6529_v15, %s4360_s8  ;;  %v6553_v15 = vld [vmem:[#allocation33_spill] sm:$0xff] }
 0x12f   : > { %v923_v9 = vpop.permute.xlu1 %922 }
 0x130   : > { %1012 = vst.msk [vmem:[#allocation3 + $0x38] sm:$0xff] %vm1004_vm4, %v923_v9  ;;  %v929_v49 = vpop.permute.xlu0 %928 }
 0x131   : > { %1296 = vrot.lane.b32.xlu1 %v6530_v12, %s4360_s8  ;;  %1015 = vst.msk [vmem:[#allocation3 + $0x50] sm:$0xff] %vm1004_vm4, %v929_v49 }
 0x132   : > { %1302 = vrot.lane.b32.xlu0 %v6531_v16, %s4360_s8 }
 0x133   : > { %v927_v19 = vpop.permute.xlu1 %926 }
 0x134   : > { %1014 = vst.msk [vmem:[#allocation3 + $0x48] sm:$0xff] %vm1004_vm4, %v927_v19  ;;  %v933_v23 = vpop.permute.xlu0 %932  ;;  %v5189_v19 = vld [vmem:[#allocation2 + $0x182] sm:$0xff] }
 0x135   : > { %1300 = vrot.lane.b32.xlu1 %v6532_v45, %s4360_s8  ;;  %1017 = vst.msk [vmem:[#allocation3 + $0x60] sm:$0xff] %vm1004_vm4, %v933_v23  ;;  %v5199_v45 = vld [vmem:[#allocation2 + $0x18a] sm:$0xff] }
 0x136   : > { %1306 = vrot.lane.b32.xlu0 %v6533_v33, %s4360_s8 }
 0x137   : > { %v931_v20 = vpop.permute.xlu1 %930 }
 0x138   : > { %1016 = vst.msk [vmem:[#allocation3 + $0x58] sm:$0xff] %vm1004_vm4, %v931_v20  ;;  %v937_v25 = vpop.permute.xlu0 %936 }
 0x139   : > { %1304 = vrot.lane.b32.xlu1 %v6534_v24, %s4360_s8  ;;  %1019 = vst.msk [vmem:[#allocation3 + $0x70] sm:$0xff] %vm1004_vm4, %v937_v25  ;;  %v4343_v24 = vld [vmem:[%s6448_s2 + $0x8] sm:$0xff]  }
 0x13a   : > { %1310 = vrot.lane.b32.xlu0 %v6535_v26, %s4360_s8  ;;  %v1618_v26 = vld [vmem:[#allocation2 + $0x39] sm:$0xff] }
 0x13b   : > { %v935_v46 = vpop.permute.xlu1 %934 }
 0x13c   : > { %1018 = vst.msk [vmem:[#allocation3 + $0x68] sm:$0xff] %vm1004_vm4, %v935_v46  ;;  %v941_v30 = vpop.permute.xlu0 %940  ;;  %v4344_v46 = vld [vmem:[%s6448_s2 + $0x10] sm:$0xff]  }
 0x13d   : > { %1308 = vrot.lane.b32.xlu1 %v6536_v27, %s4360_s8  ;;  %1021 = vst.msk [vmem:[#allocation3 + $0x80] sm:$0xff] %vm1004_vm4, %v941_v30  ;;  %v1810_v30 = vld [vmem:[#allocation2 + $0x32] sm:$0xff] }
 0x13e   : > { %1314 = vrot.lane.b32.xlu0 %v6537_v32, %s4360_s8 }
 0x13f   : > { %v939_v31 = vpop.permute.xlu1 %938 }
 0x140   : > { %1020 = vst.msk [vmem:[#allocation3 + $0x78] sm:$0xff] %vm1004_vm4, %v939_v31  ;;  %v945_v40 = vpop.permute.xlu0 %944  ;;  %v4345_v31 = vld [vmem:[%s6448_s2 + $0x18] sm:$0xff]  }
 0x141   : > { %1312 = vrot.lane.b32.xlu1 %v6538_v39, %s4360_s8  ;;  %1023 = vst.msk [vmem:[#allocation3 + $0x90] sm:$0xff] %vm1004_vm4, %v945_v40  ;;  %v1812_v40 = vld [vmem:[#allocation2 + $0x4a] sm:$0xff] }
 0x142   : > { %1318 = vrot.lane.b32.xlu0 %v6539_v42, %s4360_s8 }
 0x143   : > { %v943_v41 = vpop.permute.xlu1 %942 }
 0x144   : > { %1022 = vst.msk [vmem:[#allocation3 + $0x88] sm:$0xff] %vm1004_vm4, %v943_v41  ;;  %v949_v44 = vpop.permute.xlu0 %948  ;;  %v4346_v41 = vld [vmem:[%s6448_s2 + $0x20] ss:$0 sps:$4 sm:$0xff]  }
 0x145   : > { %1316 = vrot.lane.b32.xlu1 %v6540_v43, %s4360_s8  ;;  %1025 = vst.msk [vmem:[#allocation3 + $0xa0] sm:$0xff] %vm1004_vm4, %v949_v44  ;;  %v1811_v43 = vld [vmem:[#allocation2 + $0x3a] sm:$0xff]  ;;  %v2145_v44 = vsel %vm2143_vm6, %v4346_v41, 0 }
 0x146   : > { %1322 = vrot.lane.b32.xlu0 %v6541_v50, %s4360_s8  ;;  %v1621_v50 = vld [vmem:[#allocation2 + $0x61] sm:$0xff] }
 0x147   : > { %v947_v47 = vpop.permute.xlu1 %946 }
 0x148   : > { %1024 = vst.msk [vmem:[#allocation3 + $0x98] sm:$0xff] %vm1004_vm4, %v947_v47  ;;  %v953_v56 = vpop.permute.xlu0 %952 }
 0x149   : > { %1320 = vrot.lane.b32.xlu1 %v6542_v53, %s4360_s8  ;;  %1027 = vst.msk [vmem:[#allocation3 + $0xb0] sm:$0xff] %vm1004_vm4, %v953_v56  ;;  %v1813_v56 = vld [vmem:[#allocation2 + $0x52] sm:$0xff] }
 0x14a   : > { %1326 = vrot.lane.b32.xlu0 %v6543_v10, %s4360_s8  ;;  %v1623_v10 = vld [vmem:[#allocation2 + $0x79] sm:$0xff] }
 0x14b   : > { %v951_v63 = vpop.permute.xlu1 %950 }
 0x14c   : > { %1026 = vst.msk [vmem:[#allocation3 + $0xa8] sm:$0xff] %vm1004_vm4, %v951_v63  ;;  %v957_v14 = vpop.permute.xlu0 %956 }
 0x14d   : > { %1324 = vrot.lane.b32.xlu1 %v6544_v13, %s4360_s8  ;;  %1029 = vst.msk [vmem:[#allocation3 + $0xc0] sm:$0xff] %vm1004_vm4, %v957_v14  ;;  %v1622_v14 = vld [vmem:[#allocation2 + $0x69] sm:$0xff] }
 0x14e   : > { %1330 = vrot.lane.b32.xlu0 %v6545_v18, %s4360_s8  ;;  %v1814_v18 = vld [vmem:[#allocation2 + $0x62] sm:$0xff] }
 0x14f   : > { %v955_v17 = vpop.permute.xlu1 %954 }
 0x150   : > { %1028 = vst.msk [vmem:[#allocation3 + $0xb8] sm:$0xff] %vm1004_vm4, %v955_v17  ;;  %v961_v36 = vpop.permute.xlu0 %960 }
 0x151   : > { %1328 = vrot.lane.b32.xlu1 %v6546_v21, %s4360_s8  ;;  %1031 = vst.msk [vmem:[#allocation3 + $0xd0] sm:$0xff] %vm1004_vm4, %v961_v36  ;;  %v1624_v36 = vld [vmem:[#allocation2 + $0x81] sm:$0xff] }
 0x152   : > { %1334 = vrot.lane.b32.xlu0 %v6547_v2, %s4360_s8  ;;  %v1816_v2 = vld [vmem:[#allocation2 + $0x7a] sm:$0xff] }
 0x153   : > { %v959_v22 = vpop.permute.xlu1 %958 }
 0x154   : > { %1030 = vst.msk [vmem:[#allocation3 + $0xc8] sm:$0xff] %vm1004_vm4, %v959_v22  ;;  %v965_v48 = vpop.permute.xlu0 %964 }
 0x155   : > { %1332 = vrot.lane.b32.xlu1 %v6548_v28, %s4360_s8  ;;  %1033 = vst.msk [vmem:[#allocation3 + $0xe0] sm:$0xff] %vm1004_vm4, %v965_v48  ;;  %v1815_v48 = vld [vmem:[#allocation2 + $0x6a] sm:$0xff] }
 0x156   : > { %1338 = vrot.lane.b32.xlu0 %v6549_v29, %s4360_s8  ;;  %v1625_v29 = vld [vmem:[#allocation2 + $0x91] sm:$0xff] }
 0x157   : > { %v963_v4 = vpop.permute.xlu1 %962 }
 0x158   : > { %1032 = vst.msk [vmem:[#allocation3 + $0xd8] sm:$0xff] %vm1004_vm4, %v963_v4  ;;  %v969_v6 = vpop.permute.xlu0 %968 }
 0x159   : > { %1336 = vrot.lane.b32.xlu1 %v6550_v3, %s4360_s8  ;;  %1035 = vst.msk [vmem:[#allocation3 + $0xf0] sm:$0xff] %vm1004_vm4, %v969_v6  ;;  %v1817_v6 = vld [vmem:[#allocation2 + $0x82] sm:$0xff] }
 0x15a   : > { %1342 = vrot.lane.b32.xlu0 %v6551_v8, %s4360_s8  ;;  %v1627_v8 = vld [vmem:[#allocation2 + $0xa9] sm:$0xff] }
 0x15b   : > { %v967_v5 = vpop.permute.xlu1 %966 }
 0x15c   : > { %1034 = vst.msk [vmem:[#allocation3 + $0xe8] sm:$0xff] %vm1004_vm4, %v967_v5  ;;  %v1102_v11 = vpop.permute.xlu0 %1101 }
 0x15d   : > { %1340 = vrot.lane.b32.xlu1 %v6552_v7, %s4360_s8  ;;  %1198 = vst.msk [vmem:[#allocation3] sm:$0xff] %vm1197_vm5, %v1102_v11  ;;  %v1626_v11 = vld [vmem:[#allocation2 + $0x99] sm:$0xff] }
 0x15e   : > { %1346 = vrot.lane.b32.xlu0 %v4889_v34, %s4360_s8 }
 0x15f   : > { %v971_v9 = vpop.permute.xlu1 %970 }
 0x160   : > { %1036 = vst.msk [vmem:[#allocation3 + $0xf8] sm:$0xff] %vm1004_vm4, %v971_v9  ;;  %v1106_v12 = vpop.permute.xlu0 %1105 }
 0x161   : > { %1344 = vrot.lane.b32.xlu1 %v6553_v15, %s4360_s8  ;;  %1200 = vst.msk [vmem:[#allocation3 + $0x10] sm:$0xff] %vm1197_vm5, %v1106_v12  ;;  %v1818_v15 = vld [vmem:[#allocation2 + $0x92] sm:$0xff] }
 0x162   : > { %1350 = vrot.lane.b32.xlu0 %v4899_v35, %s4360_s8 }
 0x163   : > { %v1104_v49 = vpop.permute.xlu1 %1103 }
 0x164   : > { %1199 = vst.msk [vmem:[#allocation3 + $0x8] sm:$0xff] %vm1197_vm5, %v1104_v49  ;;  %v1110_v34 = vpop.permute.xlu0 %1109  ;;  %v1628_v49 = vld [vmem:[#allocation2 + $0xb1] sm:$0xff] }
 0x165   : > { %1348 = vrot.lane.b32.xlu1 %v4903_v38, %s4360_s8  ;;  %1202 = vst.msk [vmem:[#allocation3 + $0x20] sm:$0xff] %vm1197_vm5, %v1110_v34 }
 0x166   : > { %1354 = vrot.lane.b32.xlu0 %v5189_v19, %s4360_s8 }
 0x167   : > { %v1108_v16 = vpop.permute.xlu1 %1107 }
 0x168   : > { %1201 = vst.msk [vmem:[#allocation3 + $0x18] sm:$0xff] %vm1197_vm5, %v1108_v16  ;;  %v1114_v35 = vpop.permute.xlu0 %1113  ;;  %v1820_v16 = vld [vmem:[#allocation2 + $0xaa] sm:$0xff] }
 0x169   : > { %1352 = vrot.lane.b32.xlu1 %v4911_v37, %s4360_s8  ;;  %1204 = vst.msk [vmem:[#allocation3 + $0x30] sm:$0xff] %vm1197_vm5, %v1114_v35 }
 0x16a   : > { %1488 = vrot.lane.b32.xlu0 %v4604_v51, %s4361_s9 }
 0x16b   : > { %v1112_v23 = vpop.permute.xlu1 %1111 }
 0x16c   : > { %1203 = vst.msk [vmem:[#allocation3 + $0x28] sm:$0xff] %vm1197_vm5, %v1112_v23  ;;  %v1118_v38 = vpop.permute.xlu0 %1117  ;;  %v1819_v23 = vld [vmem:[#allocation2 + $0x9a] sm:$0xff] }
 0x16d   : > { %1356 = vrot.lane.b32.xlu1 %v5199_v45, %s4360_s8  ;;  %1206 = vst.msk [vmem:[#allocation3 + $0x40] sm:$0xff] %vm1197_vm5, %v1118_v38 }
 0x16e   : > { %1492 = vrot.lane.b32.xlu0 %v4616_v54, %s4361_s9 }
 0x16f   : > { %v1116_v20 = vpop.permute.xlu1 %1115 }
 0x170   : > { %1205 = vst.msk [vmem:[#allocation3 + $0x38] sm:$0xff] %vm1197_vm5, %v1116_v20  ;;  %v1122_v37 = vpop.permute.xlu0 %1121  ;;  %v1436_v20 = vld [vmem:[#allocation2 + $0xc0] sm:$0xff] }
 0x171   : > { %1490 = vrot.lane.b32.xlu1 %v4606_v52, %s4361_s9  ;;  %1208 = vst.msk [vmem:[#allocation3 + $0x50] sm:$0xff] %vm1197_vm5, %v1122_v37 }
 0x172   : > { %1496 = vrot.lane.b32.xlu0 %v4626_v57, %s4361_s9 }
 0x173   : > { %v1120_v51 = vpop.permute.xlu1 %1119 }
 0x174   : > { %1207 = vst.msk [vmem:[#allocation3 + $0x48] sm:$0xff] %vm1197_vm5, %v1120_v51  ;;  %v1126_v33 = vpop.permute.xlu0 %1125  ;;  %v1821_v51 = vld [vmem:[#allocation2 + $0xb2] sm:$0xff] }
 0x175   : > { %1494 = vrot.lane.b32.xlu1 %v4618_v55, %s4361_s9  ;;  %1210 = vst.msk [vmem:[#allocation3 + $0x60] sm:$0xff] %vm1197_vm5, %v1126_v33  ;;  %v4342_v55 = vld [vmem:[%s6448_s2] sm:$0xff]  }
 0x176   : > { %1500 = vrot.lane.b32.xlu0 %v4630_v59, %s4361_s9  ;;  %4272 = vmatprep.subr.bf16.mxu0 %v4342_v55 }
 0x177   : > { %v1124_v54 = vpop.permute.xlu1 %1123  ;;  %4273 = vmatpush3.bf16.msra.mxu0 %v4342_v55 }
 0x178   : > { %1209 = vst.msk [vmem:[#allocation3 + $0x58] sm:$0xff] %vm1197_vm5, %v1124_v54  ;;  %v1130_v52 = vpop.permute.xlu0 %1129  ;;  %4274 = vmatprep.subr.bf16.mxu0 %v4343_v24  ;;  %v1438_v54 = vld [vmem:[#allocation2 + $0xd8] sm:$0xff] }
 0x179   : > { %1498 = vrot.lane.b32.xlu1 %v4628_v58, %s4361_s9  ;;  %1212 = vst.msk [vmem:[#allocation3 + $0x70] sm:$0xff] %vm1197_vm5, %v1130_v52 }
 0x17a   : > { %1504 = vrot.lane.b32.xlu0 %v4642_v61, %s4361_s9  ;;  %v1617_v61 = vld [vmem:[#allocation2 + $0x31] sm:$0xff] }
 0x17b   : > { %v1128_v57 = vpop.permute.xlu1 %1127  ;;  %4275 = vmatpush3.bf16.msra.mxu0 %v4343_v24 }
 0x17c   : > { %1211 = vst.msk [vmem:[#allocation3 + $0x68] sm:$0xff] %vm1197_vm5, %v1128_v57  ;;  %v1134_v59 = vpop.permute.xlu0 %1133  ;;  %4276 = vmatprep.subr.bf16.mxu0 %v4344_v46  ;;  %v1437_v57 = vld [vmem:[#allocation2 + $0xc8] sm:$0xff] }
 0x17d   : > { %1502 = vrot.lane.b32.xlu1 %v4640_v60, %s4361_s9  ;;  %1214 = vst.msk [vmem:[#allocation3 + $0x80] sm:$0xff] %vm1197_vm5, %v1134_v59  ;;  %v1629_v59 = vld [vmem:[#allocation2 + $0xc1] sm:$0xff] }
 0x17e   : > { %1508 = vrot.lane.b32.xlu0 %v4654_v0, %s4361_s9  ;;  %v1619_v0 = vld [vmem:[#allocation2 + $0x49] sm:$0xff] }
 0x17f   : > { %v1132_v58 = vpop.permute.xlu1 %1131  ;;  %4277 = vmatpush3.bf16.msra.mxu0 %v4344_v46 }
 0x180   : > { %1213 = vst.msk [vmem:[#allocation3 + $0x78] sm:$0xff] %vm1197_vm5, %v1132_v58  ;;  %v1138_v60 = vpop.permute.xlu0 %1137  ;;  %4278 = vmatprep.subr.bf16.mxu0 %v4345_v31 }
 0x181   : > { %1506 = vrot.lane.b32.xlu1 %v4644_v62, %s4361_s9  ;;  %1216 = vst.msk [vmem:[#allocation3 + $0x90] sm:$0xff] %vm1197_vm5, %v1138_v60  ;;  %v1631_v60 = vld [vmem:[#allocation2 + $0xd9] sm:$0xff] }
 0x182   : > { %1681 = vrot.lane.b32.xlu0 %v1617_v61, %s4362_s14  ;;  %v1439_v61 = vld [vmem:[#allocation2 + $0xe0] sm:$0xff] }
 0x183   : > { %v1136_v25 = vpop.permute.xlu1 %1135  ;;  %4279 = vmatpush3.bf16.msra.mxu0 %v4345_v31  ;;  %v1824_v31 = vld [vmem:[#allocation2 + $0xda] sm:$0xff] }
 0x184   : > { %1215 = vst.msk [vmem:[#allocation3 + $0x88] sm:$0xff] %vm1197_vm5, %v1136_v25  ;;  %v1142_v62 = vpop.permute.xlu0 %1141  ;;  %4314 = vmatprep.subr.msk.bf16.mxu0 %vm2143_vm6, %v4346_v41 }
 0x185   : > { %1510 = vrot.lane.b32.xlu1 %v4656_v1, %s4361_s9  ;;  %1218 = vst.msk [vmem:[#allocation3 + $0xa0] sm:$0xff] %vm1197_vm5, %v1142_v62  ;;  %v1620_v1 = vld [vmem:[#allocation2 + $0x51] sm:$0xff]  ;;  %v1822_v62 = vld [vmem:[#allocation2 + $0xc2] sm:$0xff] }
 0x186   : > { %1685 = vrot.lane.b32.xlu0 %v1619_v0, %s4362_s14  ;;  %v1630_v0 = vld [vmem:[#allocation2 + $0xc9] sm:$0xff] }
 0x187   : > { %v1140_v27 = vpop.permute.xlu1 %1139  ;;  %4281 = vmatpush3.bf16.msra.mxu0 %v2145_v44  ;;  %v1442_v44 = vld [vmem:[#allocation2 + $0x108] sm:$0xff] }
 0x188   : > { %1217 = vst.msk [vmem:[#allocation3 + $0x98] sm:$0xff] %vm1197_vm5, %v1140_v27  ;;  %v1146_v32 = vpop.permute.xlu0 %1145  ;;  %v1632_v27 = vld [vmem:[#allocation2 + $0xe1] sm:$0xff] }
 0x189   : > { %1683 = vrot.lane.b32.xlu1 %v1618_v26, %s4362_s14  ;;  %1220 = vst.msk [vmem:[#allocation3 + $0xb0] sm:$0xff] %vm1197_vm5, %v1146_v32 }
 0x18a   : > { %1874 = vrot.lane.b32.xlu0 %v1810_v30, %s4363_s19 }
 0x18b   : > { %v1144_v39 = vpop.permute.xlu1 %1143 }
 0x18c   : > { %1219 = vst.msk [vmem:[#allocation3 + $0xa8] sm:$0xff] %vm1197_vm5, %v1144_v39  ;;  %v1150_v42 = vpop.permute.xlu0 %1149 }
 0x18d   : > { %1687 = vrot.lane.b32.xlu1 %v1620_v1, %s4362_s14  ;;  %1222 = vst.msk [vmem:[#allocation3 + $0xc0] sm:$0xff] %vm1197_vm5, %v1150_v42  ;;  %v1823_v1 = vld [vmem:[#allocation2 + $0xca] sm:$0xff]  ;;  %v1825_v42 = vld [vmem:[#allocation2 + $0xe2] sm:$0xff] }
 0x18e   : > { %1878 = vrot.lane.b32.xlu0 %v1812_v40, %s4363_s19  ;;  %v1440_v40 = vld [vmem:[#allocation2 + $0xf0] sm:$0xff] }
 0x18f   : > { %v1148_v47 = vpop.permute.xlu1 %1147 }
 0x190   : > { %1221 = vst.msk [vmem:[#allocation3 + $0xb8] sm:$0xff] %vm1197_vm5, %v1148_v47  ;;  %v1154_v53 = vpop.permute.xlu0 %1153 }
 0x191   : > { %1876 = vrot.lane.b32.xlu1 %v1811_v43, %s4363_s19  ;;  %1224 = vst.msk [vmem:[#allocation3 + $0xd0] sm:$0xff] %vm1197_vm5, %v1154_v53 }
 0x192   : > { %1689 = vrot.lane.b32.xlu0 %v1621_v50, %s4362_s14  ;;  %v1441_v50 = vld [vmem:[#allocation2 + $0xf8] sm:$0xff] }
 0x193   : > { %v1152_v63 = vpop.permute.xlu1 %1151 }
 0x194   : > { %1223 = vst.msk [vmem:[#allocation3 + $0xc8] sm:$0xff] %vm1197_vm5, %v1152_v63  ;;  %v1158_v13 = vpop.permute.xlu0 %1157 }
 0x195   : > { %1880 = vrot.lane.b32.xlu1 %v1813_v56, %s4363_s19  ;;  %1226 = vst.msk [vmem:[#allocation3 + $0xe0] sm:$0xff] %vm1197_vm5, %v1158_v13  ;;  %v1633_v56 = vld [vmem:[#allocation2 + $0xf1] sm:$0xff] }
 0x196   : > { %1693 = vrot.lane.b32.xlu0 %v1623_v10, %s4362_s14  ;;  %v1443_v10 = vld [vmem:[#allocation2 + $0x110] sm:$0xff] }
 0x197   : > { %v1156_v17 = vpop.permute.xlu1 %1155 }
 0x198   : > { %1225 = vst.msk [vmem:[#allocation3 + $0xd8] sm:$0xff] %vm1197_vm5, %v1156_v17  ;;  %v1162_v21 = vpop.permute.xlu0 %1161 }
 0x199   : > { %1691 = vrot.lane.b32.xlu1 %v1622_v14, %s4362_s14  ;;  %1228 = vst.msk [vmem:[#allocation3 + $0xf0] sm:$0xff] %vm1197_vm5, %v1162_v21  ;;  %v1635_v14 = vld [vmem:[#allocation2 + $0x109] sm:$0xff] }
 0x19a   : > { %1882 = vrot.lane.b32.xlu0 %v1814_v18, %s4363_s19  ;;  %v1634_v18 = vld [vmem:[#allocation2 + $0xf9] sm:$0xff] }
 0x19b   : > { %v1160_v22 = vpop.permute.xlu1 %1159 }
 0x19c   : > { %1227 = vst.msk [vmem:[#allocation3 + $0xe8] sm:$0xff] %vm1197_vm5, %v1160_v22  ;;  %v1295_v28 = vpop.permute.xlu0 %1294 }
 0x19d   : > { %1695 = vrot.lane.b32.xlu1 %v1624_v36, %s4362_s14  ;;  %1391 = vst.msk [vmem:[#allocation3] sm:$0xff] %vm1390_vm7, %v1295_v28  ;;  %v1826_v36 = vld [vmem:[#allocation2 + $0xf2] sm:$0xff] }
 0x19e   : > { %1886 = vrot.lane.b32.xlu0 %v1816_v2, %s4363_s19  ;;  %v1636_v2 = vld [vmem:[#allocation2 + $0x111] sm:$0xff] }
 0x19f   : > { %v1164_v4 = vpop.permute.xlu1 %1163 }
 0x1a0   : > { %1229 = vst.msk [vmem:[#allocation3 + $0xf8] sm:$0xff] %vm1197_vm5, %v1164_v4  ;;  %v1299_v3 = vpop.permute.xlu0 %1298 }
 0x1a1   : > { %1884 = vrot.lane.b32.xlu1 %v1815_v48, %s4363_s19  ;;  %1393 = vst.msk [vmem:[#allocation3 + $0x10] sm:$0xff] %vm1390_vm7, %v1299_v3  ;;  %v1828_v48 = vld [vmem:[#allocation2 + $0x10a] sm:$0xff] }
 0x1a2   : > { %1697 = vrot.lane.b32.xlu0 %v1625_v29, %s4362_s14  ;;  %v1827_v29 = vld [vmem:[#allocation2 + $0xfa] sm:$0xff] }
 0x1a3   : > { %v1297_v5 = vpop.permute.xlu1 %1296 }
 0x1a4   : > { %1392 = vst.msk [vmem:[#allocation3 + $0x8] sm:$0xff] %vm1390_vm7, %v1297_v5  ;;  %v1303_v7 = vpop.permute.xlu0 %1302 }
 0x1a5   : > { %1888 = vrot.lane.b32.xlu1 %v1817_v6, %s4363_s19  ;;  %1395 = vst.msk [vmem:[#allocation3 + $0x20] sm:$0xff] %vm1390_vm7, %v1303_v7  ;;  %v1444_v6 = vld [vmem:[#allocation2 + $0x120] sm:$0xff] }
 0x1a6   : > { %1701 = vrot.lane.b32.xlu0 %v1627_v8, %s4362_s14  ;;  %v1829_v8 = vld [vmem:[#allocation2 + $0x112] sm:$0xff] }
 0x1a7   : > { %v1301_v9 = vpop.permute.xlu1 %1300 }
 0x1a8   : > { %1394 = vst.msk [vmem:[#allocation3 + $0x18] sm:$0xff] %vm1390_vm7, %v1301_v9  ;;  %v1307_v12 = vpop.permute.xlu0 %1306 }
 0x1a9   : > { %1699 = vrot.lane.b32.xlu1 %v1626_v11, %s4362_s14  ;;  %1397 = vst.msk [vmem:[#allocation3 + $0x30] sm:$0xff] %vm1390_vm7, %v1307_v12  ;;  %v1446_v11 = vld [vmem:[#allocation2 + $0x138] sm:$0xff] }
 0x1aa   : > { %1890 = vrot.lane.b32.xlu0 %v1818_v15, %s4363_s19  ;;  %v1445_v15 = vld [vmem:[#allocation2 + $0x128] sm:$0xff] }
 0x1ab   : > { %v1305_v34 = vpop.permute.xlu1 %1304 }
 0x1ac   : > { %1396 = vst.msk [vmem:[#allocation3 + $0x28] sm:$0xff] %vm1390_vm7, %v1305_v34  ;;  %v1311_v35 = vpop.permute.xlu0 %1310 }
 0x1ad   : > { %1703 = vrot.lane.b32.xlu1 %v1628_v49, %s4362_s14  ;;  %1399 = vst.msk [vmem:[#allocation3 + $0x40] sm:$0xff] %vm1390_vm7, %v1311_v35  ;;  %v1637_v49 = vld [vmem:[#allocation2 + $0x121] sm:$0xff] }
 0x1ae   : > { %1894 = vrot.lane.b32.xlu0 %v1820_v16, %s4363_s19  ;;  %v1447_v16 = vld [vmem:[#allocation2 + $0x140] sm:$0xff] }
 0x1af   : > { %v1309_v38 = vpop.permute.xlu1 %1308 }
 0x1b0   : > { %1398 = vst.msk [vmem:[#allocation3 + $0x38] sm:$0xff] %vm1390_vm7, %v1309_v38  ;;  %v1315_v37 = vpop.permute.xlu0 %1314 }
 0x1b1   : > { %1892 = vrot.lane.b32.xlu1 %v1819_v23, %s4363_s19  ;;  %1401 = vst.msk [vmem:[#allocation3 + $0x50] sm:$0xff] %vm1390_vm7, %v1315_v37  ;;  %v1639_v23 = vld [vmem:[#allocation2 + $0x139] sm:$0xff] }
 0x1b2   : > { %1512 = vrot.lane.b32.xlu0 %v1436_v20, %s4361_s9  ;;  %v1638_v20 = vld [vmem:[#allocation2 + $0x129] sm:$0xff] }
 0x1b3   : > { %v1313_v33 = vpop.permute.xlu1 %1312 }
 0x1b4   : > { %1400 = vst.msk [vmem:[#allocation3 + $0x48] sm:$0xff] %vm1390_vm7, %v1313_v33  ;;  %v1319_v52 = vpop.permute.xlu0 %1318 }
 0x1b5   : > { %1896 = vrot.lane.b32.xlu1 %v1821_v51, %s4363_s19  ;;  %1403 = vst.msk [vmem:[#allocation3 + $0x60] sm:$0xff] %vm1390_vm7, %v1319_v52  ;;  %v1830_v51 = vld [vmem:[#allocation2 + $0x122] sm:$0xff] }
 0x1b6   : > { %1516 = vrot.lane.b32.xlu0 %v1438_v54, %s4361_s9  ;;  %v1640_v54 = vld [vmem:[#allocation2 + $0x141] sm:$0xff] }
 0x1b7   : > { %v1317_v55 = vpop.permute.xlu1 %1316 }
 0x1b8   : > { %1402 = vst.msk [vmem:[#allocation3 + $0x58] sm:$0xff] %vm1390_vm7, %v1317_v55  ;;  %v1323_v58 = vpop.permute.xlu0 %1322 }
 0x1b9   : > { %1514 = vrot.lane.b32.xlu1 %v1437_v57, %s4361_s9  ;;  %1405 = vst.msk [vmem:[#allocation3 + $0x70] sm:$0xff] %vm1390_vm7, %v1323_v58  ;;  %v1832_v57 = vld [vmem:[#allocation2 + $0x13a] sm:$0xff] }
 0x1ba   : > { %1705 = vrot.lane.b32.xlu0 %v1629_v59, %s4362_s14  ;;  %v1831_v59 = vld [vmem:[#allocation2 + $0x12a] sm:$0xff] }
 0x1bb   : > { %v1321_v24 = vpop.permute.xlu1 %1320 }
 0x1bc   : > { %1404 = vst.msk [vmem:[#allocation3 + $0x68] sm:$0xff] %vm1390_vm7, %v1321_v24  ;;  %v1327_v25 = vpop.permute.xlu0 %1326 }
 0x1bd   : > { %1518 = vrot.lane.b32.xlu1 %v1439_v61, %s4361_s9  ;;  %1407 = vst.msk [vmem:[#allocation3 + $0x80] sm:$0xff] %vm1390_vm7, %v1327_v25  ;;  %v1448_v61 = vld [vmem:[#allocation2 + $0x150] sm:$0xff] }
 0x1be   : > { %1709 = vrot.lane.b32.xlu0 %v1631_v60, %s4362_s14  ;;  %v1833_v60 = vld [vmem:[#allocation2 + $0x142] sm:$0xff] }
 0x1bf   : > { %v1325_v46 = vpop.permute.xlu1 %1324 }
 0x1c0   : > { %1406 = vst.msk [vmem:[#allocation3 + $0x78] sm:$0xff] %vm1390_vm7, %v1325_v46  ;;  %v1331_v26 = vpop.permute.xlu0 %1330 }
 0x1c1   : > { %1707 = vrot.lane.b32.xlu1 %v1630_v0, %s4362_s14  ;;  %1409 = vst.msk [vmem:[#allocation3 + $0x90] sm:$0xff] %vm1390_vm7, %v1331_v26  ;;  %v1450_v0 = vld [vmem:[#allocation2 + $0x168] sm:$0xff] }
 0x1c2   : > { %1898 = vrot.lane.b32.xlu0 %v1822_v62, %s4363_s19  ;;  %v1449_v62 = vld [vmem:[#allocation2 + $0x158] sm:$0xff] }
 0x1c3   : > { %v1329_v30 = vpop.permute.xlu1 %1328 }
 0x1c4   : > { %1408 = vst.msk [vmem:[#allocation3 + $0x88] sm:$0xff] %vm1390_vm7, %v1329_v30  ;;  %v1335_v32 = vpop.permute.xlu0 %1334 }
 0x1c5   : > { %1711 = vrot.lane.b32.xlu1 %v1632_v27, %s4362_s14  ;;  %1411 = vst.msk [vmem:[#allocation3 + $0xa0] sm:$0xff] %vm1390_vm7, %v1335_v32  ;;  %v1641_v27 = vld [vmem:[#allocation2 + $0x151] sm:$0xff] }
 0x1c6   : > { %1902 = vrot.lane.b32.xlu0 %v1824_v31, %s4363_s19  ;;  %v1451_v31 = vld [vmem:[#allocation2 + $0x170] sm:$0xff] }
 0x1c7   : > { %v1333_v39 = vpop.permute.xlu1 %1332 }
 0x1c8   : > { %1410 = vst.msk [vmem:[#allocation3 + $0x98] sm:$0xff] %vm1390_vm7, %v1333_v39  ;;  %v1339_v41 = vpop.permute.xlu0 %1338 }
 0x1c9   : > { %1900 = vrot.lane.b32.xlu1 %v1823_v1, %s4363_s19  ;;  %1413 = vst.msk [vmem:[#allocation3 + $0xb0] sm:$0xff] %vm1390_vm7, %v1339_v41  ;;  %v1643_v1 = vld [vmem:[#allocation2 + $0x169] sm:$0xff] }
 0x1ca   : > { %1520 = vrot.lane.b32.xlu0 %v1440_v40, %s4361_s9  ;;  %v1642_v40 = vld [vmem:[#allocation2 + $0x159] sm:$0xff] }
 0x1cb   : > { %v1337_v43 = vpop.permute.xlu1 %1336 }
 0x1cc   : > { %1412 = vst.msk [vmem:[#allocation3 + $0xa8] sm:$0xff] %vm1390_vm7, %v1337_v43  ;;  %v1343_v47 = vpop.permute.xlu0 %1342 }
 0x1cd   : > { %1904 = vrot.lane.b32.xlu1 %v1825_v42, %s4363_s19  ;;  %1415 = vst.msk [vmem:[#allocation3 + $0xc0] sm:$0xff] %vm1390_vm7, %v1343_v47  ;;  %v1834_v42 = vld [vmem:[#allocation2 + $0x152] sm:$0xff] }
 0x1ce   : > { %1524 = vrot.lane.b32.xlu0 %v1442_v44, %s4361_s9  ;;  %v1644_v47 = vld [vmem:[#allocation2 + $0x171] sm:$0xff] }
 0x1cf   : > { %v1341_v53 = vpop.permute.xlu1 %1340 }
 0x1d0   : > { %1414 = vst.msk [vmem:[#allocation3 + $0xb8] sm:$0xff] %vm1390_vm7, %v1341_v53  ;;  %v1347_v63 = vpop.permute.xlu0 %1346 }
 0x1d1   : > { %1522 = vrot.lane.b32.xlu1 %v1441_v50, %s4361_s9  ;;  %1417 = vst.msk [vmem:[#allocation3 + $0xd0] sm:$0xff] %vm1390_vm7, %v1347_v63  ;;  %v1836_v63 = vld [vmem:[#allocation2 + $0x16a] sm:$0xff] }
 0x1d2   : > { %1713 = vrot.lane.b32.xlu0 %v1633_v56, %s4362_s14 }
 0x1d3   : > { %v1345_v13 = vpop.permute.xlu1 %1344 }
 0x1d4   : > { %1416 = vst.msk [vmem:[#allocation3 + $0xc8] sm:$0xff] %vm1390_vm7, %v1345_v13  ;;  %v1351_v17 = vpop.permute.xlu0 %1350 }
 0x1d5   : > { %1526 = vrot.lane.b32.xlu1 %v1443_v10, %s4361_s9  ;;  %1419 = vst.msk [vmem:[#allocation3 + $0xe0] sm:$0xff] %vm1390_vm7, %v1351_v17 }
 0x1d6   : > { %1717 = vrot.lane.b32.xlu0 %v1635_v14, %s4362_s14  ;;  %v1835_v14 = vld [vmem:[#allocation2 + $0x15a] sm:$0xff] }
 0x1d7   : > { %v1349_v21 = vpop.permute.xlu1 %1348 }
 0x1d8   : > { %1418 = vst.msk [vmem:[#allocation3 + $0xd8] sm:$0xff] %vm1390_vm7, %v1349_v21  ;;  %v1355_v22 = vpop.permute.xlu0 %1354 }
 0x1d9   : > { %1715 = vrot.lane.b32.xlu1 %v1634_v18, %s4362_s14  ;;  %1421 = vst.msk [vmem:[#allocation3 + $0xf0] sm:$0xff] %vm1390_vm7, %v1355_v22 }
 0x1da   : > { %1906 = vrot.lane.b32.xlu0 %v1826_v36, %s4363_s19  ;;  %v1452_v36 = vld [vmem:[#allocation2 + $0x180] sm:$0xff] }
 0x1db   : > { %v1353_v28 = vpop.permute.xlu1 %1352 }
 0x1dc   : > { %1420 = vst.msk [vmem:[#allocation3 + $0xe8] sm:$0xff] %vm1390_vm7, %v1353_v28  ;;  %v1489_v4 = vpop.permute.xlu0 %1488 }
 0x1dd   : > { %1719 = vrot.lane.b32.xlu1 %v1636_v2, %s4362_s14  ;;  %1585 = vst.msk [vmem:[#allocation3] sm:$0xff] %vm1584_vm8, %v1489_v4  ;;  %v1837_v2 = vld [vmem:[#allocation2 + $0x172] sm:$0xff] }
 0x1de   : > { %1910 = vrot.lane.b32.xlu0 %v1828_v48, %s4363_s19  ;;  %v1454_v48 = vld [vmem:[#allocation2 + $0x198] sm:$0xff] }
 0x1df   : > { %v1357_v3 = vpop.permute.xlu1 %1356 }
 0x1e0   : > { %1422 = vst.msk [vmem:[#allocation3 + $0xf8] sm:$0xff] %vm1390_vm7, %v1357_v3  ;;  %v1493_v5 = vpop.permute.xlu0 %1492 }
 0x1e1   : > { %1908 = vrot.lane.b32.xlu1 %v1827_v29, %s4363_s19  ;;  %1587 = vst.msk [vmem:[#allocation3 + $0x10] sm:$0xff] %vm1584_vm8, %v1493_v5  ;;  %v1453_v29 = vld [vmem:[#allocation2 + $0x188] sm:$0xff] }
 0x1e2   : > { %1528 = vrot.lane.b32.xlu0 %v1444_v6, %s4361_s9  ;;  %v1645_v6 = vld [vmem:[#allocation2 + $0x181] sm:$0xff] }
 0x1e3   : > { %v1491_v7 = vpop.permute.xlu1 %1490 }
 0x1e4   : > { %1586 = vst.msk [vmem:[#allocation3 + $0x8] sm:$0xff] %vm1584_vm8, %v1491_v7  ;;  %v1497_v9 = vpop.permute.xlu0 %1496  ;;  %v1455_v7 = vld [vmem:[#allocation2 + $0x1a0] sm:$0xff] }
 0x1e5   : > { %1912 = vrot.lane.b32.xlu1 %v1829_v8, %s4363_s19  ;;  %1589 = vst.msk [vmem:[#allocation3 + $0x20] sm:$0xff] %vm1584_vm8, %v1497_v9 }
 0x1e6   : > { %1532 = vrot.lane.b32.xlu0 %v1446_v11, %s4361_s9 }
 0x1e7   : > { %v1495_v12 = vpop.permute.xlu1 %1494 }
 0x1e8   : > { %1588 = vst.msk [vmem:[#allocation3 + $0x18] sm:$0xff] %vm1584_vm8, %v1495_v12  ;;  %v1501_v34 = vpop.permute.xlu0 %1500  ;;  %v1647_v12 = vld [vmem:[#allocation2 + $0x199] sm:$0xff] }
 0x1e9   : > { %1530 = vrot.lane.b32.xlu1 %v1445_v15, %s4361_s9  ;;  %1591 = vst.msk [vmem:[#allocation3 + $0x30] sm:$0xff] %vm1584_vm8, %v1501_v34 }
 0x1ea   : > { %1721 = vrot.lane.b32.xlu0 %v1637_v49, %s4362_s14 }
 0x1eb   : > { %v1499_v35 = vpop.permute.xlu1 %1498 }
 0x1ec   : > { %1590 = vst.msk [vmem:[#allocation3 + $0x28] sm:$0xff] %vm1584_vm8, %v1499_v35  ;;  %v1505_v38 = vpop.permute.xlu0 %1504 }
 0x1ed   : > { %1534 = vrot.lane.b32.xlu1 %v1447_v16, %s4361_s9  ;;  %1593 = vst.msk [vmem:[#allocation3 + $0x40] sm:$0xff] %vm1584_vm8, %v1505_v38  ;;  %v1646_v16 = vld [vmem:[#allocation2 + $0x189] sm:$0xff] }
 0x1ee   : > { %1725 = vrot.lane.b32.xlu0 %v1639_v23, %s4362_s14 }
 0x1ef   : > { %v1503_v37 = vpop.permute.xlu1 %1502 }
 0x1f0   : > { %1592 = vst.msk [vmem:[#allocation3 + $0x38] sm:$0xff] %vm1584_vm8, %v1503_v37  ;;  %v1509_v33 = vpop.permute.xlu0 %1508  ;;  %v1648_v37 = vld [vmem:[#allocation2 + $0x1a1] sm:$0xff] }
 0x1f1   : > { %1723 = vrot.lane.b32.xlu1 %v1638_v20, %s4362_s14  ;;  %1595 = vst.msk [vmem:[#allocation3 + $0x50] sm:$0xff] %vm1584_vm8, %v1509_v33  ;;  %v1840_v33 = vld [vmem:[#allocation2 + $0x19a] sm:$0xff] }
 0x1f2   : > { %1914 = vrot.lane.b32.xlu0 %v1830_v51, %s4363_s19 }
 0x1f3   : > { %v1507_v52 = vpop.permute.xlu1 %1506 }
 0x1f4   : > { %1594 = vst.msk [vmem:[#allocation3 + $0x48] sm:$0xff] %vm1584_vm8, %v1507_v52  ;;  %v1682_v55 = vpop.permute.xlu0 %1681 }
 0x1f5   : > { %1727 = vrot.lane.b32.xlu1 %v1640_v54, %s4362_s14  ;;  %1778 = vst.msk [vmem:[#allocation3] sm:$0xff] %vm1777_vm9, %v1682_v55 }
 0x1f6   : > { %1918 = vrot.lane.b32.xlu0 %v1832_v57, %s4363_s19 }
 0x1f7   : > { %v1511_v58 = vpop.permute.xlu1 %1510 }
 0x1f8   : > { %1596 = vst.msk [vmem:[#allocation3 + $0x58] sm:$0xff] %vm1584_vm8, %v1511_v58  ;;  %v1686_v24 = vpop.permute.xlu0 %1685 }
 0x1f9   : > { %1916 = vrot.lane.b32.xlu1 %v1831_v59, %s4363_s19  ;;  %1780 = vst.msk [vmem:[#allocation3 + $0x10] sm:$0xff] %vm1777_vm9, %v1686_v24  ;;  %v1841_v59 = vld [vmem:[#allocation2 + $0x1a2] sm:$0xff] }
 0x1fa   : > { %1536 = vrot.lane.b32.xlu0 %v1448_v61, %s4361_s9 }
 0x1fb   : > { %v1684_v25 = vpop.permute.xlu1 %1683 }
 0x1fc   : > { %1779 = vst.msk [vmem:[#allocation3 + $0x8] sm:$0xff] %vm1777_vm9, %v1684_v25  ;;  %v1875_v46 = vpop.permute.xlu0 %1874 }
 0x1fd   : > { %1920 = vrot.lane.b32.xlu1 %v1833_v60, %s4363_s19  ;;  %1971 = vst.msk [vmem:[#allocation3] sm:$0xff] %vm1970_vm10, %v1875_v46 }
 0x1fe   : > { %1540 = vrot.lane.b32.xlu0 %v1450_v0, %s4361_s9 }
 0x1ff   : > { %v1688_v26 = vpop.permute.xlu1 %1687 }
 0x200   : > { %1781 = vst.msk [vmem:[#allocation3 + $0x18] sm:$0xff] %vm1777_vm9, %v1688_v26  ;;  %v1879_v30 = vpop.permute.xlu0 %1878 }
 0x201   : > { %1538 = vrot.lane.b32.xlu1 %v1449_v62, %s4361_s9  ;;  %1973 = vst.msk [vmem:[#allocation3 + $0x10] sm:$0xff] %vm1970_vm10, %v1879_v30 }
 0x202   : > { %1729 = vrot.lane.b32.xlu0 %v1641_v27, %s4362_s14 }
 0x203   : > { %v1877_v32 = vpop.permute.xlu1 %1876 }
 0x204   : > { %1972 = vst.msk [vmem:[#allocation3 + $0x8] sm:$0xff] %vm1970_vm10, %v1877_v32  ;;  %v1690_v39 = vpop.permute.xlu0 %1689  ;;  %v2003_v43 = vld [vmem:[#allocation3] sm:$0xff] }
 0x205   : > { %1542 = vrot.lane.b32.xlu1 %v1451_v31, %s4361_s9  ;;  %1782 = vst.msk [vmem:[#allocation3 + $0x20] sm:$0xff] %vm1777_vm9, %v1690_v39 }
 0x206   : > { %1733 = vrot.lane.b32.xlu0 %v1643_v1, %s4362_s14 }
 0x207   : > { %v1881_v41 = vpop.permute.xlu1 %1880 }
 0x208   : > { %1974 = vst.msk [vmem:[#allocation3 + $0x18] sm:$0xff] %vm1970_vm10, %v1881_v41  ;;  %v1694_v44 = vpop.permute.xlu0 %1693  ;;  %v2005_v10 = vld [vmem:[#allocation3 + $0x10] sm:$0xff] }
 0x209   : > { %1731 = vrot.lane.b32.xlu1 %v1642_v40, %s4362_s14  ;;  %1784 = vst.msk [vmem:[#allocation3 + $0x30] sm:$0xff] %vm1777_vm9, %v1694_v44 }
 0x20a   : > { %1922 = vrot.lane.b32.xlu0 %v1834_v42, %s4363_s19 }
 0x20b   : > { %v1692_v50 = vpop.permute.xlu1 %1691  ;;  %v2004_v53 = vld [vmem:[#allocation3 + $0x8] sm:$0xff] }
 0x20c   : > { %1783 = vst.msk [vmem:[#allocation3 + $0x28] sm:$0xff] %vm1777_vm9, %v1692_v50  ;;  %v2035_v56 = vpack.c.bf16 %v2004_v53, %v2003_v43  ;;  %v1883_v13 = vpop.permute.xlu0 %1882 }
 0x20d   : > { %1735 = vrot.lane.b32.xlu1 %v1644_v47, %s4362_s14  ;;  %1975 = vst.msk [vmem:[#allocation3 + $0x20] sm:$0xff] %vm1970_vm10, %v1883_v13 }
 0x20e   : > { %4282 = vmatprep.mubr.msk.bf16.mxu0 %vm2094_vm11, %v2035_v56  ;;  %1926 = vrot.lane.b32.xlu0 %v1836_v63, %s4363_s19 }
 0x20f   : > { %v1696_v17 = vpop.permute.xlu1 %1695  ;;  %v2006_v18 = vld [vmem:[#allocation3 + $0x18] sm:$0xff] }
 0x210   : > { %1785 = vst.msk [vmem:[#allocation3 + $0x38] sm:$0xff] %vm1777_vm9, %v1696_v17  ;;  %v2036_v21 = vpack.c.bf16 %v2006_v18, %v2005_v10  ;;  %v1887_v22 = vpop.permute.xlu0 %1886 }
 0x211   : > { %1924 = vrot.lane.b32.xlu1 %v1835_v14, %s4363_s19  ;;  %1977 = vst.msk [vmem:[#allocation3 + $0x30] sm:$0xff] %vm1970_vm10, %v1887_v22 }
 0x212   : > { %4283 = vmatmul.mubr.msk.bf16.vlgmr.msra.gmra.mrb[0].mxu0 %vm2094_vm11, %v2036_v21  ;;  %1544 = vrot.lane.b32.xlu0 %v1452_v36, %s4361_s9 }
 0x213   : > { %v1885_v28 = vpop.permute.xlu1 %1884 }
 0x214   : > { %1976 = vst.msk [vmem:[#allocation3 + $0x28] sm:$0xff] %vm1970_vm10, %v1885_v28  ;;  %v1698_v4 = vpop.permute.xlu0 %1697  ;;  %v2007_v5 = vld [vmem:[#allocation3 + $0x20] sm:$0xff] }
 0x215   : > { %1928 = vrot.lane.b32.xlu1 %v1837_v2, %s4363_s19  ;;  %1786 = vst.msk [vmem:[#allocation3 + $0x40] sm:$0xff] %vm1777_vm9, %v1698_v4 }
 0x216   : > { %1548 = vrot.lane.b32.xlu0 %v1454_v48, %s4361_s9 }
 0x217   : > { %v1889_v3 = vpop.permute.xlu1 %1888 }
 0x218   : > { %1978 = vst.msk [vmem:[#allocation3 + $0x38] sm:$0xff] %vm1970_vm10, %v1889_v3  ;;  %v1702_v8 = vpop.permute.xlu0 %1701  ;;  %v2009_v49 = vld [vmem:[#allocation3 + $0x30] sm:$0xff] }
 0x219   : > { %1546 = vrot.lane.b32.xlu1 %v1453_v29, %s4361_s9  ;;  %1788 = vst.msk [vmem:[#allocation3 + $0x50] sm:$0xff] %vm1777_vm9, %v1702_v8 }
 0x21a   : > { %1737 = vrot.lane.b32.xlu0 %v1645_v6, %s4362_s14 }
 0x21b   : > { %v1700_v11 = vpop.permute.xlu1 %1699  ;;  %v2008_v9 = vld [vmem:[#allocation3 + $0x28] sm:$0xff] }
 0x21c   : > { %1787 = vst.msk [vmem:[#allocation3 + $0x48] sm:$0xff] %vm1777_vm9, %v1700_v11  ;;  %v2037_v15 = vpack.c.bf16 %v2008_v9, %v2007_v5  ;;  %v1891_v34 = vpop.permute.xlu0 %1890 }
 0x21d   : > { %1550 = vrot.lane.b32.xlu1 %v1455_v7, %s4361_s9  ;;  %1979 = vst.msk [vmem:[#allocation3 + $0x40] sm:$0xff] %vm1970_vm10, %v1891_v34 }
 0x21e   : > { %4286 = vmatprep.mubr.msk.bf16.mxu0 %vm2094_vm11, %v2037_v15  ;;  %1741 = vrot.lane.b32.xlu0 %v1647_v12, %s4362_s14 }
 0x21f   : > { %v1704_v35 = vpop.permute.xlu1 %1703  ;;  %v2010_v23 = vld [vmem:[#allocation3 + $0x38] sm:$0xff] }
 0x220   : > { %1789 = vst.msk [vmem:[#allocation3 + $0x58] sm:$0xff] %vm1777_vm9, %v1704_v35  ;;  %v2038_v38 = vpack.c.bf16 %v2010_v23, %v2009_v49  ;;  %v1895_v20 = vpop.permute.xlu0 %1894  ;;  %v2437_v35 = vld [vmem:[#allocation2 + $0x9] sm:$0xff] }
 0x221   : > { %1739 = vrot.lane.b32.xlu1 %v1646_v16, %s4362_s14  ;;  %1981 = vst.msk [vmem:[#allocation3 + $0x50] sm:$0xff] %vm1970_vm10, %v1895_v20  ;;  %v2436_v16 = vld [vmem:[#allocation2 + $0x1] sm:$0xff] }
 0x222   : > { %4287 = vmatmul.mubr.msk.bf16.gmra.mrb[4].mxu0 %vm2094_vm11, %v2038_v38  ;;  %1930 = vrot.lane.b32.xlu0 %v5189_v19, %s4363_s19 }
 0x223   : > { %v1893_v51 = vpop.permute.xlu1 %1892 }
 0x224   : > { %1980 = vst.msk [vmem:[#allocation3 + $0x48] sm:$0xff] %vm1970_vm10, %v1893_v51  ;;  %v1513_v54 = vpop.permute.xlu0 %1512  ;;  %v2011_v57 = vld [vmem:[#allocation3 + $0x40] sm:$0xff] }
 0x225   : > { %1743 = vrot.lane.b32.xlu1 %v1648_v37, %s4362_s14  ;;  %1597 = vst.msk [vmem:[#allocation3 + $0x60] sm:$0xff] %vm1584_vm8, %v1513_v54 }
 0x226   : > { %1934 = vrot.lane.b32.xlu0 %v1840_v33, %s4363_s19 }
 0x227   : > { %v1897_v52 = vpop.permute.xlu1 %1896 }
 0x228   : > { %1982 = vst.msk [vmem:[#allocation3 + $0x58] sm:$0xff] %vm1970_vm10, %v1897_v52  ;;  %v1517_v55 = vpop.permute.xlu0 %1516  ;;  %v2013_v24 = vld [vmem:[#allocation3 + $0x50] sm:$0xff] }
 0x229   : > { %1932 = vrot.lane.b32.xlu1 %v5199_v45, %s4363_s19  ;;  %1599 = vst.msk [vmem:[#allocation3 + $0x70] sm:$0xff] %vm1584_vm8, %v1517_v55 }
 0x22a   : > { %2500 = vrot.lane.b32.xlu0 %v2436_v16, %s4356_s28 }
 0x22b   : > { %v1515_v19 = vpop.permute.xlu1 %1514  ;;  %v2012_v58 = vld [vmem:[#allocation3 + $0x48] sm:$0xff] }
 0x22c   : > { %1598 = vst.msk [vmem:[#allocation3 + $0x68] sm:$0xff] %vm1584_vm8, %v1515_v19  ;;  %v2039_v61 = vpack.c.bf16 %v2012_v58, %v2011_v57  ;;  %v1706_v60 = vpop.permute.xlu0 %1705 }
 0x22d   : > { %1936 = vrot.lane.b32.xlu1 %v1841_v59, %s4363_s19  ;;  %1790 = vst.msk [vmem:[#allocation3 + $0x60] sm:$0xff] %vm1777_vm9, %v1706_v60 }
 0x22e   : > { %4290 = vmatprep.mubr.msk.bf16.mxu0 %vm2094_vm11, %v2039_v61 }
 0x22f   : > { %v1519_v25 = vpop.permute.xlu1 %1518  ;;  %v2014_v45 = vld [vmem:[#allocation3 + $0x58] sm:$0xff] }
 0x230   : > { %1600 = vst.msk [vmem:[#allocation3 + $0x78] sm:$0xff] %vm1584_vm8, %v1519_v25  ;;  %v2040_v0 = vpack.c.bf16 %v2014_v45, %v2013_v24  ;;  %v1710_v46 = vpop.permute.xlu0 %1709 }
 0x231   : > { %1792 = vst.msk [vmem:[#allocation3 + $0x70] sm:$0xff] %vm1777_vm9, %v1710_v46  ;;  %2502 = vrot.lane.b32.xlu1 %v2437_v35, %s4356_s28 }
 0x232   : > { %4291 = vmatmul.mubr.msk.bf16.gmra.mrb[8].mxu0 %vm2094_vm11, %v2040_v0 }
 0x233   : > { %v1708_v62 = vpop.permute.xlu1 %1707 }
 0x234   : > { %1791 = vst.msk [vmem:[#allocation3 + $0x68] sm:$0xff] %vm1777_vm9, %v1708_v62  ;;  %v1899_v26 = vpop.permute.xlu0 %1898 }
 0x235   : > { %1983 = vst.msk [vmem:[#allocation3 + $0x60] sm:$0xff] %vm1970_vm10, %v1899_v26 }
 0x237   : > { %v1712_v27 = vpop.permute.xlu1 %1711 }
 0x238   : > { %1793 = vst.msk [vmem:[#allocation3 + $0x78] sm:$0xff] %vm1777_vm9, %v1712_v27  ;;  %v1903_v30 = vpop.permute.xlu0 %1902 }
 0x239   : > { %1985 = vst.msk [vmem:[#allocation3 + $0x70] sm:$0xff] %vm1970_vm10, %v1903_v30 }
 0x23b   : > { %v1901_v31 = vpop.permute.xlu1 %1900 }
 0x23c   : > { %1984 = vst.msk [vmem:[#allocation3 + $0x68] sm:$0xff] %vm1970_vm10, %v1901_v31  ;;  %v1521_v32 = vpop.permute.xlu0 %1520  ;;  %v2015_v39 = vld [vmem:[#allocation3 + $0x60] sm:$0xff] }
 0x23d   : > { %1601 = vst.msk [vmem:[#allocation3 + $0x80] sm:$0xff] %vm1584_vm8, %v1521_v32 }
 0x23f   : > { %v1905_v1 = vpop.permute.xlu1 %1904 }
 0x240   : > { %1986 = vst.msk [vmem:[#allocation3 + $0x78] sm:$0xff] %vm1970_vm10, %v1905_v1  ;;  %v1525_v40 = vpop.permute.xlu0 %1524  ;;  %v2017_v44 = vld [vmem:[#allocation3 + $0x70] sm:$0xff] }
 0x241   : > { %1603 = vst.msk [vmem:[#allocation3 + $0x90] sm:$0xff] %vm1584_vm8, %v1525_v40 }
 0x243   : > { %v1523_v41 = vpop.permute.xlu1 %1522  ;;  %v2016_v42 = vld [vmem:[#allocation3 + $0x68] sm:$0xff] }
 0x244   : > { %1602 = vst.msk [vmem:[#allocation3 + $0x88] sm:$0xff] %vm1584_vm8, %v1523_v41  ;;  %v2041_v43 = vpack.c.bf16 %v2016_v42, %v2015_v39  ;;  %v1714_v47 = vpop.permute.xlu0 %1713 }
 0x245   : > { %1794 = vst.msk [vmem:[#allocation3 + $0x80] sm:$0xff] %vm1777_vm9, %v1714_v47 }
 0x246   : > { %4294 = vmatprep.mubr.msk.bf16.mxu0 %vm2094_vm11, %v2041_v43 }
 0x247   : > { %v1527_v50 = vpop.permute.xlu1 %1526  ;;  %v2018_v53 = vld [vmem:[#allocation3 + $0x78] sm:$0xff] }
 0x248   : > { %1604 = vst.msk [vmem:[#allocation3 + $0x98] sm:$0xff] %vm1584_vm8, %v1527_v50  ;;  %v2042_v56 = vpack.c.bf16 %v2018_v53, %v2017_v44  ;;  %v1718_v63 = vpop.permute.xlu0 %1717 }
 0x249   : > { %1796 = vst.msk [vmem:[#allocation3 + $0x90] sm:$0xff] %vm1777_vm9, %v1718_v63 }
 0x24a   : > { %4295 = vmatmul.mubr.msk.bf16.gmra.mrb[12].mxu0 %vm2094_vm11, %v2042_v56 }
 0x24b   : > { %v1716_v10 = vpop.permute.xlu1 %1715 }
 0x24c   : > { %1795 = vst.msk [vmem:[#allocation3 + $0x88] sm:$0xff] %vm1777_vm9, %v1716_v10  ;;  %v1907_v13 = vpop.permute.xlu0 %1906 }
 0x24d   : > { %1987 = vst.msk [vmem:[#allocation3 + $0x80] sm:$0xff] %vm1970_vm10, %v1907_v13 }
 0x24f   : > { %v1720_v14 = vpop.permute.xlu1 %1719 }
 0x250   : > { %1797 = vst.msk [vmem:[#allocation3 + $0x98] sm:$0xff] %vm1777_vm9, %v1720_v14  ;;  %v1911_v17 = vpop.permute.xlu0 %1910 }
 0x251   : > { %1989 = vst.msk [vmem:[#allocation3 + $0x90] sm:$0xff] %vm1970_vm10, %v1911_v17 }
 0x253   : > { %v1909_v18 = vpop.permute.xlu1 %1908 }
 0x254   : > { %1988 = vst.msk [vmem:[#allocation3 + $0x88] sm:$0xff] %vm1970_vm10, %v1909_v18  ;;  %v1529_v21 = vpop.permute.xlu0 %1528  ;;  %v2019_v22 = vld [vmem:[#allocation3 + $0x80] sm:$0xff]  ;;  %v2372_v18 = vld [vmem:[#allocation2] sm:$0xff] }
 0x255   : > { %1605 = vst.msk [vmem:[#allocation3 + $0xa0] sm:$0xff] %vm1584_vm8, %v1529_v21 }
 0x256   : > { %2404 = vst.msk [vmem:[#allocation3] sm:$0xff] %vm273_vm0, %v2372_v18 }
 0x257   : > { %v1913_v36 = vpop.permute.xlu1 %1912 }
 0x258   : > { %1990 = vst.msk [vmem:[#allocation3 + $0x98] sm:$0xff] %vm1970_vm10, %v1913_v36  ;;  %v1533_v2 = vpop.permute.xlu0 %1532  ;;  %v2021_v29 = vld [vmem:[#allocation3 + $0x90] sm:$0xff]  ;;  %v2373_v36 = vld [vmem:[#allocation2 + $0x8] sm:$0xff] }
 0x259   : > { %1607 = vst.msk [vmem:[#allocation3 + $0xb0] sm:$0xff] %vm1584_vm8, %v1533_v2  ;;  %v5507_v2 = vld [vmem:[%s6449_s3] ss:$0 sm:$0xff] }
 0x25a   : > { %2405 = vst.msk [vmem:[#allocation3 + $0x8] sm:$0xff] %vm273_vm0, %v2373_v36 }
 0x25b   : > { %v1531_v28 = vpop.permute.xlu1 %1530  ;;  %v2020_v48 = vld [vmem:[#allocation3 + $0x88] sm:$0xff] }
 0x25c   : > { %1606 = vst.msk [vmem:[#allocation3 + $0xa8] sm:$0xff] %vm1584_vm8, %v1531_v28  ;;  %v2043_v4 = vpack.c.bf16 %v2020_v48, %v2019_v22  ;;  %v1722_v3 = vpop.permute.xlu0 %1721 }
 0x25d   : > { %1798 = vst.msk [vmem:[#allocation3 + $0xa0] sm:$0xff] %vm1777_vm9, %v1722_v3 }
 0x25e   : > { %4298 = vmatprep.mubr.msk.bf16.mxu0 %vm2094_vm11, %v2043_v4 }
 0x25f   : > { %v1535_v6 = vpop.permute.xlu1 %1534  ;;  %v2022_v5 = vld [vmem:[#allocation3 + $0x98] sm:$0xff] }
 0x260   : > { %1608 = vst.msk [vmem:[#allocation3 + $0xb8] sm:$0xff] %vm1584_vm8, %v1535_v6  ;;  %v2044_v8 = vpack.c.bf16 %v2022_v5, %v2021_v29  ;;  %v1726_v7 = vpop.permute.xlu0 %1725 }
 0x261   : > { %1800 = vst.msk [vmem:[#allocation3 + $0xb0] sm:$0xff] %vm1777_vm9, %v1726_v7 }
 0x262   : > { %4299 = vmatmul.mubr.msk.bf16.gmra.mrb[16].mxu0 %vm2094_vm11, %v2044_v8 }
 0x263   : > { %v1724_v11 = vpop.permute.xlu1 %1723 }
 0x264   : > { %1799 = vst.msk [vmem:[#allocation3 + $0xa8] sm:$0xff] %vm1777_vm9, %v1724_v11  ;;  %v1915_v9 = vpop.permute.xlu0 %1914 }
 0x265   : > { %1991 = vst.msk [vmem:[#allocation3 + $0xa0] sm:$0xff] %vm1970_vm10, %v1915_v9 }
 0x267   : > { %v1728_v15 = vpop.permute.xlu1 %1727 }
 0x268   : > { %1801 = vst.msk [vmem:[#allocation3 + $0xb8] sm:$0xff] %vm1777_vm9, %v1728_v15  ;;  %v1919_v12 = vpop.permute.xlu0 %1918 }
 0x269   : > { %1993 = vst.msk [vmem:[#allocation3 + $0xb0] sm:$0xff] %vm1970_vm10, %v1919_v12 }
 0x26b   : > { %v1917_v49 = vpop.permute.xlu1 %1916 }
 0x26c   : > { %1992 = vst.msk [vmem:[#allocation3 + $0xa8] sm:$0xff] %vm1970_vm10, %v1917_v49  ;;  %v1537_v34 = vpop.permute.xlu0 %1536  ;;  %v2023_v38 = vld [vmem:[#allocation3 + $0xa0] sm:$0xff] }
 0x26d   : > { %1609 = vst.msk [vmem:[#allocation3 + $0xc0] sm:$0xff] %vm1584_vm8, %v1537_v34 }
 0x26f   : > { %v1921_v23 = vpop.permute.xlu1 %1920 }
 0x270   : > { %1994 = vst.msk [vmem:[#allocation3 + $0xb8] sm:$0xff] %vm1970_vm10, %v1921_v23  ;;  %v1541_v20 = vpop.permute.xlu0 %1540  ;;  %v2025_v54 = vld [vmem:[#allocation3 + $0xb0] sm:$0xff] }
 0x271   : > { %1611 = vst.msk [vmem:[#allocation3 + $0xd0] sm:$0xff] %vm1584_vm8, %v1541_v20 }
 0x273   : > { %v1539_v37 = vpop.permute.xlu1 %1538  ;;  %v2024_v51 = vld [vmem:[#allocation3 + $0xa8] sm:$0xff] }
 0x274   : > { %1610 = vst.msk [vmem:[#allocation3 + $0xc8] sm:$0xff] %vm1584_vm8, %v1539_v37  ;;  %v2045_v33 = vpack.c.bf16 %v2024_v51, %v2023_v38  ;;  %v1730_v52 = vpop.permute.xlu0 %1729 }
 0x275   : > { %1802 = vst.msk [vmem:[#allocation3 + $0xc0] sm:$0xff] %vm1777_vm9, %v1730_v52 }
 0x276   : > { %4302 = vmatprep.mubr.msk.bf16.mxu0 %vm2094_vm11, %v2045_v33 }
 0x277   : > { %v1543_v57 = vpop.permute.xlu1 %1542  ;;  %v2026_v55 = vld [vmem:[#allocation3 + $0xb8] sm:$0xff] }
 0x278   : > { %1612 = vst.msk [vmem:[#allocation3 + $0xd8] sm:$0xff] %vm1584_vm8, %v1543_v57  ;;  %v2046_v59 = vpack.c.bf16 %v2026_v55, %v2025_v54  ;;  %v1734_v19 = vpop.permute.xlu0 %1733 }
 0x279   : > { %1804 = vst.msk [vmem:[#allocation3 + $0xd0] sm:$0xff] %vm1777_vm9, %v1734_v19 }
 0x27a   : > { %4303 = vmatmul.mubr.msk.bf16.gmra.mrb[20].mxu0 %vm2094_vm11, %v2046_v59 }
 0x27b   : > { %v1732_v58 = vpop.permute.xlu1 %1731 }
 0x27c   : > { %1803 = vst.msk [vmem:[#allocation3 + $0xc8] sm:$0xff] %vm1777_vm9, %v1732_v58  ;;  %v1923_v61 = vpop.permute.xlu0 %1922 }
 0x27d   : > { %1995 = vst.msk [vmem:[#allocation3 + $0xc0] sm:$0xff] %vm1970_vm10, %v1923_v61 }
 0x27f   : > { %v1736_v24 = vpop.permute.xlu1 %1735 }
 0x280   : > { %1805 = vst.msk [vmem:[#allocation3 + $0xd8] sm:$0xff] %vm1777_vm9, %v1736_v24  ;;  %v1927_v60 = vpop.permute.xlu0 %1926 }
 0x281   : > { %1997 = vst.msk [vmem:[#allocation3 + $0xd0] sm:$0xff] %vm1970_vm10, %v1927_v60 }
 0x283   : > { %v1925_v25 = vpop.permute.xlu1 %1924 }
 0x284   : > { %1996 = vst.msk [vmem:[#allocation3 + $0xc8] sm:$0xff] %vm1970_vm10, %v1925_v25  ;;  %v1545_v45 = vpop.permute.xlu0 %1544  ;;  %v2027_v46 = vld [vmem:[#allocation3 + $0xc0] sm:$0xff] }
 0x285   : > { %1613 = vst.msk [vmem:[#allocation3 + $0xe0] sm:$0xff] %vm1584_vm8, %v1545_v45 }
 0x287   : > { %v1929_v0 = vpop.permute.xlu1 %1928 }
 0x288   : > { %1998 = vst.msk [vmem:[#allocation3 + $0xd8] sm:$0xff] %vm1970_vm10, %v1929_v0  ;;  %v1549_v62 = vpop.permute.xlu0 %1548  ;;  %v2029_v31 = vld [vmem:[#allocation3 + $0xd0] sm:$0xff] }
 0x289   : > { %1615 = vst.msk [vmem:[#allocation3 + $0xf0] sm:$0xff] %vm1584_vm8, %v1549_v62 }
 0x28b   : > { %v1547_v26 = vpop.permute.xlu1 %1546  ;;  %v2028_v27 = vld [vmem:[#allocation3 + $0xc8] sm:$0xff] }
 0x28c   : > { %1614 = vst.msk [vmem:[#allocation3 + $0xe8] sm:$0xff] %vm1584_vm8, %v1547_v26  ;;  %v2047_v30 = vpack.c.bf16 %v2028_v27, %v2027_v46  ;;  %v1738_v32 = vpop.permute.xlu0 %1737 }
 0x28d   : > { %1806 = vst.msk [vmem:[#allocation3 + $0xe0] sm:$0xff] %vm1777_vm9, %v1738_v32 }
 0x28e   : > { %4306 = vmatprep.mubr.msk.bf16.mxu0 %vm2094_vm11, %v2047_v30 }
 0x28f   : > { %v1551_v1 = vpop.permute.xlu1 %1550  ;;  %v2030_v39 = vld [vmem:[#allocation3 + $0xd8] sm:$0xff] }
 0x290   : > { %1616 = vst.msk [vmem:[#allocation3 + $0xf8] sm:$0xff] %vm1584_vm8, %v1551_v1  ;;  %v2048_v40 = vpack.c.bf16 %v2030_v39, %v2029_v31  ;;  %v1742_v41 = vpop.permute.xlu0 %1741 }
 0x291   : > { %1808 = vst.msk [vmem:[#allocation3 + $0xf0] sm:$0xff] %vm1777_vm9, %v1742_v41 }
 0x292   : > { %4307 = vmatmul.mubr.msk.bf16.gmra.mrb[24].mxu0 %vm2094_vm11, %v2048_v40 }
 0x293   : > { %v1740_v42 = vpop.permute.xlu1 %1739 }
 0x294   : > { %1807 = vst.msk [vmem:[#allocation3 + $0xe8] sm:$0xff] %vm1777_vm9, %v1740_v42  ;;  %v1931_v43 = vpop.permute.xlu0 %1930 }
 0x295   : > { %1999 = vst.msk [vmem:[#allocation3 + $0xe0] sm:$0xff] %vm1970_vm10, %v1931_v43 }
 0x297   : > { %v1744_v44 = vpop.permute.xlu1 %1743 }
 0x298   : > { %1809 = vst.msk [vmem:[#allocation3 + $0xf8] sm:$0xff] %vm1777_vm9, %v1744_v44  ;;  %v1935_v47 = vpop.permute.xlu0 %1934 }
 0x299   : > { %2001 = vst.msk [vmem:[#allocation3 + $0xf0] sm:$0xff] %vm1970_vm10, %v1935_v47 }
 0x29b   : > { %v1933_v50 = vpop.permute.xlu1 %1932 }
 0x29c   : > { %2000 = vst.msk [vmem:[#allocation3 + $0xe8] sm:$0xff] %vm1970_vm10, %v1933_v50  ;;  %v2031_v56 = vld [vmem:[#allocation3 + $0xe0] sm:$0xff]  ;;  %v2501_v21 = vpop.permute.xlu0 %2500 }
 0x29d   : > { %2596 = vst.msk [vmem:[#allocation3] sm:$0xff] %vm618_vm2, %v2501_v21 }
 0x29f   : > { %v1937_v53 = vpop.permute.xlu1 %1936 }
 0x2a0   : > { %2002 = vst.msk [vmem:[#allocation3 + $0xf8] sm:$0xff] %vm1970_vm10, %v1937_v53  ;;  %v2033_v13 = vld [vmem:[#allocation3 + $0xf0] sm:$0xff] }
 0x2a3   : > { %v2032_v63 = vld [vmem:[#allocation3 + $0xe8] sm:$0xff]  ;;  %v2503_v22 = vpop.permute.xlu1 %2502 }
 0x2a4   : > { %v2049_v10 = vpack.c.bf16 %v2032_v63, %v2031_v56  ;;  %2597 = vst.msk [vmem:[#allocation3 + $0x8] sm:$0xff] %vm618_vm2, %v2503_v22 }
 0x2a6   : > { %4310 = vmatprep.mubr.msk.bf16.mxu0 %vm2094_vm11, %v2049_v10 }
 0x2a7   : > { %v2034_v14 = vld [vmem:[#allocation3 + $0xf8] sm:$0xff] }
 0x2a8   : > { %v2050_v17 = vpack.c.bf16 %v2034_v14, %v2033_v13 }
 0x2aa   : > { %4311 = vmatmul.mubr.msk.bf16.gmra.mrb[28].mxu0 %vm2094_vm11, %v2050_v17 }
 0x2e5   : > { %v4284_v28 = vpop.f32.mrb[0].mxu0 }
 0x2e6   : > { %v2190_v48 = vadd.f32 %v4284_v28, %v5507_v2  ;;  %v2181_v4 = vpop.f32.mrb[1].mxu0 }
 0x2e7   : > { %v2182_v29 = vadd.f32 %v5507_v2, %v2181_v4  ;;  %v4285_v3 = vpop.f32.mrb[2].mxu0 }
 0x2e8   : > { %v2310_v6 = vmax.f32 %v2190_v48, 0.0  ;;  %v2193_v5 = vadd.f32 %v4285_v3, %v5507_v2  ;;  %v2184_v8 = vpop.f32.mrb[3].mxu0 }
 0x2e9   : > { %v2308_v7 = vmax.f32 %v2182_v29, 0.0  ;;  %v2185_v11 = vadd.f32 %v5507_v2, %v2184_v8 }
 0x2ea   : > { %2342 = vst.msk [vmem:[#allocation2 + $0x31] sm:$0xff] %vm273_vm0, %v2310_v6  ;;  %v2311_v9 = vmax.f32 %v2193_v5, 0.0 }
 0x2eb   : > { %2340 = vst.msk [vmem:[#allocation2 + $0x19] sm:$0xff] %vm273_vm0, %v2308_v7  ;;  %v2309_v15 = vmax.f32 %v2185_v11, 0.0 }
 0x2ec   : > { %2343 = vst.msk [vmem:[#allocation2 + $0x39] sm:$0xff] %vm273_vm0, %v2311_v9 }
 0x2ed   : > { %2341 = vst.msk [vmem:[#allocation2 + $0x21] sm:$0xff] %vm273_vm0, %v2309_v15 }
 0x2f1   : > { %v5518_v12 = vld [vmem:[#allocation2 + $0x30] sm:$0xff] }
 0x2f2   : > { %v5520_v49 = vld [vmem:[#allocation2 + $0x19] sm:$0xff]  ;;  %2408 = vst.msk [vmem:[#allocation3 + $0x20] sm:$0xff] %vm273_vm0, %v5518_v12  ;;  %v5543_v51 = vld [vmem:[#allocation2 + $0x31] sm:$0xff] }
 0x2f3   : > { %v5522_v34 = vld [vmem:[#allocation2 + $0x18] sm:$0xff]  ;;  %2504 = vrot.lane.b32.xlu0 %v5520_v49, %s4356_s28 }
 0x2f4   : > { %2406 = vst.msk [vmem:[#allocation3 + $0x10] sm:$0xff] %vm273_vm0, %v5522_v34  ;;  %v5530_v16 = vld [vmem:[#allocation2 + $0x38] sm:$0xff]  ;;  %v5532_v35 = vld [vmem:[#allocation2 + $0x21] sm:$0xff] }
 0x2f5   : > { %v5534_v23 = vld [vmem:[#allocation2 + $0x20] sm:$0xff]  ;;  %2409 = vst.msk [vmem:[#allocation3 + $0x28] sm:$0xff] %vm273_vm0, %v5530_v16  ;;  %v4288_v38 = vpop.f32.mrb[4].mxu0  ;;  %2506 = vrot.lane.b32.xlu1 %v5532_v35, %s4356_s28 }
 0x2f6   : > { %2407 = vst.msk [vmem:[#allocation3 + $0x18] sm:$0xff] %vm273_vm0, %v5534_v23  ;;  %v2206_v20 = vadd.f32 %v4288_v38, %v5507_v2  ;;  %v2197_v37 = vpop.f32.mrb[5].mxu0  ;;  %v5549_v59 = vld [vmem:[#allocation2 + $0x39] sm:$0xff] }
 0x2f7   : > { %v2198_v33 = vadd.f32 %v5507_v2, %v2197_v37  ;;  %v4289_v54 = vpop.f32.mrb[6].mxu0  ;;  %2508 = vrot.lane.b32.xlu0 %v5543_v51, %s4356_s28 }
 0x2f8   : > { %v2314_v52 = vmax.f32 %v2206_v20, 0.0  ;;  %v2209_v57 = vadd.f32 %v4289_v54, %v5507_v2  ;;  %v2200_v55 = vpop.f32.mrb[7].mxu0 }
 0x2f9   : > { %v2312_v19 = vmax.f32 %v2198_v33, 0.0  ;;  %v2201_v58 = vadd.f32 %v5507_v2, %v2200_v55  ;;  %2510 = vrot.lane.b32.xlu1 %v5549_v59, %s4356_s28 }
 0x2fa   : > { %2346 = vst.msk [vmem:[#allocation2 + $0x61] sm:$0xff] %vm273_vm0, %v2314_v52  ;;  %v2315_v61 = vmax.f32 %v2209_v57, 0.0 }
 0x2fb   : > { %2344 = vst.msk [vmem:[#allocation2 + $0x49] sm:$0xff] %vm273_vm0, %v2312_v19  ;;  %v2313_v24 = vmax.f32 %v2201_v58, 0.0 }
 0x2fc   : > { %2347 = vst.msk [vmem:[#allocation2 + $0x69] sm:$0xff] %vm273_vm0, %v2315_v61 }
 0x2fd   : > { %2345 = vst.msk [vmem:[#allocation2 + $0x51] sm:$0xff] %vm273_vm0, %v2313_v24 }
 0x301   : > { %v5558_v60 = vld [vmem:[#allocation2 + $0x60] sm:$0xff] }
 0x302   : > { %v5560_v25 = vld [vmem:[#allocation2 + $0x49] sm:$0xff]  ;;  %2412 = vst.msk [vmem:[#allocation3 + $0x40] sm:$0xff] %vm273_vm0, %v5558_v60  ;;  %v2444_v31 = vld [vmem:[#allocation2 + $0x61] sm:$0xff] }
 0x303   : > { %v5562_v45 = vld [vmem:[#allocation2 + $0x48] sm:$0xff]  ;;  %2512 = vrot.lane.b32.xlu0 %v5560_v25, %s4356_s28 }
 0x304   : > { %2410 = vst.msk [vmem:[#allocation3 + $0x30] sm:$0xff] %vm273_vm0, %v5562_v45  ;;  %v5570_v0 = vld [vmem:[#allocation2 + $0x68] sm:$0xff]  ;;  %v5572_v46 = vld [vmem:[#allocation2 + $0x51] sm:$0xff] }
 0x305   : > { %v5574_v62 = vld [vmem:[#allocation2 + $0x50] sm:$0xff]  ;;  %2413 = vst.msk [vmem:[#allocation3 + $0x48] sm:$0xff] %vm273_vm0, %v5570_v0  ;;  %v4292_v26 = vpop.f32.mrb[8].mxu0  ;;  %2514 = vrot.lane.b32.xlu1 %v5572_v46, %s4356_s28 }
 0x306   : > { %2411 = vst.msk [vmem:[#allocation3 + $0x38] sm:$0xff] %vm273_vm0, %v5574_v62  ;;  %v2222_v27 = vadd.f32 %v4292_v26, %v5507_v2  ;;  %v2213_v30 = vpop.f32.mrb[9].mxu0  ;;  %v2445_v42 = vld [vmem:[#allocation2 + $0x69] sm:$0xff] }
 0x307   : > { %v2214_v32 = vadd.f32 %v5507_v2, %v2213_v30  ;;  %v4293_v1 = vpop.f32.mrb[10].mxu0  ;;  %2516 = vrot.lane.b32.xlu0 %v2444_v31, %s4356_s28 }
 0x308   : > { %v2318_v39 = vmax.f32 %v2222_v27, 0.0  ;;  %v2225_v40 = vadd.f32 %v4293_v1, %v5507_v2  ;;  %v2216_v41 = vpop.f32.mrb[11].mxu0 }
 0x309   : > { %v2316_v43 = vmax.f32 %v2214_v32, 0.0  ;;  %v2217_v44 = vadd.f32 %v5507_v2, %v2216_v41  ;;  %2518 = vrot.lane.b32.xlu1 %v2445_v42, %s4356_s28 }
 0x30a   : > { %2350 = vst.msk [vmem:[#allocation2 + $0x91] sm:$0xff] %vm273_vm0, %v2318_v39  ;;  %v2319_v47 = vmax.f32 %v2225_v40, 0.0 }
 0x30b   : > { %2348 = vst.msk [vmem:[#allocation2 + $0x79] sm:$0xff] %vm273_vm0, %v2316_v43  ;;  %v2317_v50 = vmax.f32 %v2217_v44, 0.0 }
 0x30c   : > { %2351 = vst.msk [vmem:[#allocation2 + $0x99] sm:$0xff] %vm273_vm0, %v2319_v47 }
 0x30d   : > { %2349 = vst.msk [vmem:[#allocation2 + $0x81] sm:$0xff] %vm273_vm0, %v2317_v50 }
 0x311   : > { %v5592_v53 = vld [vmem:[#allocation2 + $0x90] sm:$0xff] }
 0x312   : > { %v2446_v56 = vld [vmem:[#allocation2 + $0x79] sm:$0xff]  ;;  %2416 = vst.msk [vmem:[#allocation3 + $0x60] sm:$0xff] %vm273_vm0, %v5592_v53  ;;  %v2448_v17 = vld [vmem:[#allocation2 + $0x91] sm:$0xff] }
 0x313   : > { %v5594_v63 = vld [vmem:[#allocation2 + $0x78] sm:$0xff]  ;;  %2520 = vrot.lane.b32.xlu0 %v2446_v56, %s4356_s28 }
 0x314   : > { %2414 = vst.msk [vmem:[#allocation3 + $0x50] sm:$0xff] %vm273_vm0, %v5594_v63  ;;  %v5601_v10 = vld [vmem:[#allocation2 + $0x98] sm:$0xff]  ;;  %v2447_v13 = vld [vmem:[#allocation2 + $0x81] sm:$0xff] }
 0x315   : > { %v5603_v14 = vld [vmem:[#allocation2 + $0x80] sm:$0xff]  ;;  %2417 = vst.msk [vmem:[#allocation3 + $0x68] sm:$0xff] %vm273_vm0, %v5601_v10  ;;  %2522 = vrot.lane.b32.xlu1 %v2447_v13, %s4356_s28 }
 0x316   : > { %2415 = vst.msk [vmem:[#allocation3 + $0x58] sm:$0xff] %vm273_vm0, %v5603_v14  ;;  %v2449_v18 = vld [vmem:[#allocation2 + $0x99] sm:$0xff] }
 0x317   : > { %2524 = vrot.lane.b32.xlu0 %v2448_v17, %s4356_s28 }
 0x319   : > { %2526 = vrot.lane.b32.xlu1 %v2449_v18, %s4356_s28 }
 0x31d   : > { %v4296_v21 = vpop.f32.mrb[12].mxu0 }
 0x31e   : > { %v2238_v36 = vadd.f32 %v4296_v21, %v5507_v2  ;;  %v2229_v22 = vpop.f32.mrb[13].mxu0 }
 0x31f   : > { %v2230_v28 = vadd.f32 %v5507_v2, %v2229_v22  ;;  %v4297_v48 = vpop.f32.mrb[14].mxu0 }
 0x320   : > { %v2322_v4 = vmax.f32 %v2238_v36, 0.0  ;;  %v2241_v29 = vadd.f32 %v4297_v48, %v5507_v2  ;;  %v2232_v3 = vpop.f32.mrb[15].mxu0 }
 0x321   : > { %v2320_v6 = vmax.f32 %v2230_v28, 0.0  ;;  %v2233_v5 = vadd.f32 %v5507_v2, %v2232_v3 }
 0x322   : > { %2354 = vst.msk [vmem:[#allocation2 + $0xc1] sm:$0xff] %vm273_vm0, %v2322_v4  ;;  %v2323_v8 = vmax.f32 %v2241_v29, 0.0 }
 0x323   : > { %2352 = vst.msk [vmem:[#allocation2 + $0xa9] sm:$0xff] %vm273_vm0, %v2320_v6  ;;  %v2321_v7 = vmax.f32 %v2233_v5, 0.0 }
 0x324   : > { %2355 = vst.msk [vmem:[#allocation2 + $0xc9] sm:$0xff] %vm273_vm0, %v2323_v8 }
 0x325   : > { %2353 = vst.msk [vmem:[#allocation2 + $0xb1] sm:$0xff] %vm273_vm0, %v2321_v7 }
 0x329   : > { %v5620_v11 = vld [vmem:[#allocation2 + $0xc0] sm:$0xff] }
 0x32a   : > { %v2450_v9 = vld [vmem:[#allocation2 + $0xa9] sm:$0xff]  ;;  %2420 = vst.msk [vmem:[#allocation3 + $0x80] sm:$0xff] %vm273_vm0, %v5620_v11  ;;  %v2452_v33 = vld [vmem:[#allocation2 + $0xc1] sm:$0xff] }
 0x32b   : > { %v5622_v15 = vld [vmem:[#allocation2 + $0xa8] sm:$0xff]  ;;  %2528 = vrot.lane.b32.xlu0 %v2450_v9, %s4356_s28 }
 0x32c   : > { %2418 = vst.msk [vmem:[#allocation3 + $0x70] sm:$0xff] %vm273_vm0, %v5622_v15  ;;  %v5629_v38 = vld [vmem:[#allocation2 + $0xc8] sm:$0xff]  ;;  %v2451_v20 = vld [vmem:[#allocation2 + $0xb1] sm:$0xff] }
 0x32d   : > { %v5631_v37 = vld [vmem:[#allocation2 + $0xb0] sm:$0xff]  ;;  %2421 = vst.msk [vmem:[#allocation3 + $0x88] sm:$0xff] %vm273_vm0, %v5629_v38  ;;  %2530 = vrot.lane.b32.xlu1 %v2451_v20, %s4356_s28 }
 0x32e   : > { %2419 = vst.msk [vmem:[#allocation3 + $0x78] sm:$0xff] %vm273_vm0, %v5631_v37  ;;  %v2453_v54 = vld [vmem:[#allocation2 + $0xc9] sm:$0xff] }
 0x32f   : > { %2532 = vrot.lane.b32.xlu0 %v2452_v33, %s4356_s28 }
 0x331   : > { %2534 = vrot.lane.b32.xlu1 %v2453_v54, %s4356_s28 }
 0x335   : > { %v4300_v52 = vpop.f32.mrb[16].mxu0 }
 0x336   : > { %v2254_v57 = vadd.f32 %v4300_v52, %v5507_v2  ;;  %v2245_v55 = vpop.f32.mrb[17].mxu0 }
 0x337   : > { %v2246_v19 = vadd.f32 %v5507_v2, %v2245_v55  ;;  %v4301_v58 = vpop.f32.mrb[18].mxu0 }
 0x338   : > { %v2326_v61 = vmax.f32 %v2254_v57, 0.0  ;;  %v2257_v24 = vadd.f32 %v4301_v58, %v5507_v2  ;;  %v2248_v26 = vpop.f32.mrb[19].mxu0 }
 0x339   : > { %v2324_v27 = vmax.f32 %v2246_v19, 0.0  ;;  %v2249_v30 = vadd.f32 %v5507_v2, %v2248_v26 }
 0x33a   : > { %2358 = vst.msk [vmem:[#allocation2 + $0xf1] sm:$0xff] %vm273_vm0, %v2326_v61  ;;  %v2327_v31 = vmax.f32 %v2257_v24, 0.0 }
 0x33b   : > { %2356 = vst.msk [vmem:[#allocation2 + $0xd9] sm:$0xff] %vm273_vm0, %v2324_v27  ;;  %v2325_v32 = vmax.f32 %v2249_v30, 0.0 }
 0x33c   : > { %2359 = vst.msk [vmem:[#allocation2 + $0xf9] sm:$0xff] %vm273_vm0, %v2327_v31 }
 0x33d   : > { %2357 = vst.msk [vmem:[#allocation2 + $0xe1] sm:$0xff] %vm273_vm0, %v2325_v32 }
 0x341   : > { %v5648_v1 = vld [vmem:[#allocation2 + $0xf0] sm:$0xff] }
 0x342   : > { %v5650_v39 = vld [vmem:[#allocation2 + $0xd9] sm:$0xff]  ;;  %2424 = vst.msk [vmem:[#allocation3 + $0xa0] sm:$0xff] %vm273_vm0, %v5648_v1  ;;  %v5668_v44 = vld [vmem:[#allocation2 + $0xf1] sm:$0xff] }
 0x343   : > { %v5652_v40 = vld [vmem:[#allocation2 + $0xd8] sm:$0xff]  ;;  %2536 = vrot.lane.b32.xlu0 %v5650_v39, %s4356_s28 }
 0x344   : > { %2422 = vst.msk [vmem:[#allocation3 + $0x90] sm:$0xff] %vm273_vm0, %v5652_v40  ;;  %v5660_v41 = vld [vmem:[#allocation2 + $0xe1] sm:$0xff]  ;;  %v5666_v43 = vld [vmem:[#allocation2 + $0xf8] sm:$0xff] }
 0x345   : > { %2538 = vrot.lane.b32.xlu1 %v5660_v41, %s4356_s28  ;;  %v5664_v42 = vld [vmem:[#allocation2 + $0xe0] sm:$0xff]  ;;  %2425 = vst.msk [vmem:[#allocation3 + $0xa8] sm:$0xff] %vm273_vm0, %v5666_v43 }
 0x346   : > { %2423 = vst.msk [vmem:[#allocation3 + $0x98] sm:$0xff] %vm273_vm0, %v5664_v42  ;;  %v5676_v47 = vld [vmem:[#allocation2 + $0xf9] sm:$0xff] }
 0x347   : > { %2540 = vrot.lane.b32.xlu0 %v5668_v44, %s4356_s28 }
 0x349   : > { %2542 = vrot.lane.b32.xlu1 %v5676_v47, %s4356_s28 }
 0x34d   : > { %v4304_v50 = vpop.f32.mrb[20].mxu0 }
 0x34e   : > { %v2270_v56 = vadd.f32 %v4304_v50, %v5507_v2  ;;  %v2261_v13 = vpop.f32.mrb[21].mxu0 }
 0x34f   : > { %v2262_v17 = vadd.f32 %v5507_v2, %v2261_v13  ;;  %v4305_v18 = vpop.f32.mrb[22].mxu0 }
 0x350   : > { %v2330_v21 = vmax.f32 %v2270_v56, 0.0  ;;  %v2273_v36 = vadd.f32 %v4305_v18, %v5507_v2  ;;  %v2264_v22 = vpop.f32.mrb[23].mxu0 }
 0x351   : > { %v2328_v28 = vmax.f32 %v2262_v17, 0.0  ;;  %v2265_v48 = vadd.f32 %v5507_v2, %v2264_v22 }
 0x352   : > { %2362 = vst.msk [vmem:[#allocation2 + $0x121] sm:$0xff] %vm273_vm0, %v2330_v21  ;;  %v2331_v4 = vmax.f32 %v2273_v36, 0.0 }
 0x353   : > { %2360 = vst.msk [vmem:[#allocation2 + $0x109] sm:$0xff] %vm273_vm0, %v2328_v28  ;;  %v2329_v29 = vmax.f32 %v2265_v48, 0.0 }
 0x354   : > { %2363 = vst.msk [vmem:[#allocation2 + $0x129] sm:$0xff] %vm273_vm0, %v2331_v4 }
 0x355   : > { %2361 = vst.msk [vmem:[#allocation2 + $0x111] sm:$0xff] %vm273_vm0, %v2329_v29 }
 0x359   : > { %v5688_v3 = vld [vmem:[#allocation2 + $0x120] sm:$0xff] }
 0x35a   : > { %v5690_v6 = vld [vmem:[#allocation2 + $0x109] sm:$0xff]  ;;  %2428 = vst.msk [vmem:[#allocation3 + $0xc0] sm:$0xff] %vm273_vm0, %v5688_v3  ;;  %v5708_v20 = vld [vmem:[#allocation2 + $0x121] sm:$0xff] }
 0x35b   : > { %v5692_v5 = vld [vmem:[#allocation2 + $0x108] sm:$0xff]  ;;  %2544 = vrot.lane.b32.xlu0 %v5690_v6, %s4356_s28 }
 0x35c   : > { %2426 = vst.msk [vmem:[#allocation3 + $0xb0] sm:$0xff] %vm273_vm0, %v5692_v5  ;;  %v5700_v8 = vld [vmem:[#allocation2 + $0x111] sm:$0xff]  ;;  %v5706_v9 = vld [vmem:[#allocation2 + $0x128] sm:$0xff] }
 0x35d   : > { %2546 = vrot.lane.b32.xlu1 %v5700_v8, %s4356_s28  ;;  %v5704_v7 = vld [vmem:[#allocation2 + $0x110] sm:$0xff]  ;;  %2429 = vst.msk [vmem:[#allocation3 + $0xc8] sm:$0xff] %vm273_vm0, %v5706_v9 }
 0x35e   : > { %2427 = vst.msk [vmem:[#allocation3 + $0xb8] sm:$0xff] %vm273_vm0, %v5704_v7  ;;  %v5716_v33 = vld [vmem:[#allocation2 + $0x129] sm:$0xff] }
 0x35f   : > { %2548 = vrot.lane.b32.xlu0 %v5708_v20, %s4356_s28 }
 0x361   : > { %2550 = vrot.lane.b32.xlu1 %v5716_v33, %s4356_s28 }
 0x365   : > { %v4308_v54 = vpop.f32.mrb[24].mxu0  ;;  %v2505_v52 = vpop.permute.xlu0 %2504 }
 0x366   : > { %v2286_v57 = vadd.f32 %v4308_v54, %v5507_v2  ;;  %2598 = vst.msk [vmem:[#allocation3 + $0x10] sm:$0xff] %vm618_vm2, %v2505_v52  ;;  %v2277_v55 = vpop.f32.mrb[25].mxu0 }
 0x367   : > { %v2278_v19 = vadd.f32 %v5507_v2, %v2277_v55  ;;  %v4309_v58 = vpop.f32.mrb[26].mxu0  ;;  %v2507_v61 = vpop.permute.xlu1 %2506 }
 0x368   : > { %v2334_v24 = vmax.f32 %v2286_v57, 0.0  ;;  %v2289_v26 = vadd.f32 %v4309_v58, %v5507_v2  ;;  %2599 = vst.msk [vmem:[#allocation3 + $0x18] sm:$0xff] %vm618_vm2, %v2507_v61  ;;  %v2280_v27 = vpop.f32.mrb[27].mxu0 }
 0x369   : > { %v2332_v30 = vmax.f32 %v2278_v19, 0.0  ;;  %v2281_v31 = vadd.f32 %v5507_v2, %v2280_v27  ;;  %v2509_v32 = vpop.permute.xlu0 %2508 }
 0x36a   : > { %2366 = vst.msk [vmem:[#allocation2 + $0x151] sm:$0xff] %vm273_vm0, %v2334_v24  ;;  %v2335_v50 = vmax.f32 %v2289_v26, 0.0 }
 0x36b   : > { %2600 = vst.msk [vmem:[#allocation3 + $0x20] sm:$0xff] %vm618_vm2, %v2509_v32  ;;  %v2333_v56 = vmax.f32 %v2281_v31, 0.0  ;;  %v2511_v13 = vpop.permute.xlu1 %2510 }
 0x36c   : > { %2364 = vst.msk [vmem:[#allocation2 + $0x139] sm:$0xff] %vm273_vm0, %v2332_v30  ;;  %2367 = vst.msk [vmem:[#allocation2 + $0x159] sm:$0xff] %vm273_vm0, %v2335_v50 }
 0x36d   : > { %2601 = vst.msk [vmem:[#allocation3 + $0x28] sm:$0xff] %vm618_vm2, %v2511_v13 }
 0x36e   : > { %2365 = vst.msk [vmem:[#allocation2 + $0x141] sm:$0xff] %vm273_vm0, %v2333_v56 }
 0x371   : > { %v5732_v17 = vld [vmem:[#allocation2 + $0x150] sm:$0xff] }
 0x372   : > { %6554 = vst [vmem:[#allocation4_spill] sm:$0xff] %v5732_v17  ;;  %2432 = vst.msk [vmem:[#allocation3 + $0xe0] sm:$0xff] %vm273_vm0, %v5732_v17  ;;  %v2464_v4 = vld [vmem:[#allocation2 + $0x151] sm:$0xff] }
 0x373   : > { %v2462_v18 = vld [vmem:[#allocation2 + $0x139] sm:$0xff] }
 0x374   : > { %v5734_v21 = vld [vmem:[#allocation2 + $0x138] sm:$0xff]  ;;  %2552 = vrot.lane.b32.xlu0 %v2462_v18, %s4356_s28 }
 0x375   : > { %2430 = vst.msk [vmem:[#allocation3 + $0xd0] sm:$0xff] %vm273_vm0, %v5734_v21  ;;  %v2463_v36 = vld [vmem:[#allocation2 + $0x141] sm:$0xff]  ;;  %v2513_v22 = vpop.permute.xlu0 %2512  ;;  %v5744_v48 = vld [vmem:[#allocation2 + $0x158] sm:$0xff] }
 0x376   : > { %2554 = vrot.lane.b32.xlu1 %v2463_v36, %s4356_s28  ;;  %v5742_v28 = vld [vmem:[#allocation2 + $0x140] sm:$0xff]  ;;  %6555 = vst [vmem:[#allocation5_spill] sm:$0xff] %v5744_v48  ;;  %2602 = vst.msk [vmem:[#allocation3 + $0x30] sm:$0xff] %vm618_vm2, %v2513_v22 }
 0x377   : > { %2431 = vst.msk [vmem:[#allocation3 + $0xd8] sm:$0xff] %vm273_vm0, %v5742_v28  ;;  %2433 = vst.msk [vmem:[#allocation3 + $0xe8] sm:$0xff] %vm273_vm0, %v5744_v48  ;;  %v2515_v29 = vpop.permute.xlu1 %2514  ;;  %v2465_v54 = vld [vmem:[#allocation2 + $0x159] sm:$0xff] }
 0x378   : > { %2556 = vrot.lane.b32.xlu0 %v2464_v4, %s4356_s28  ;;  %2603 = vst.msk [vmem:[#allocation3 + $0x38] sm:$0xff] %vm618_vm2, %v2515_v29 }
 0x379   : > { %v2517_v52 = vpop.permute.xlu0 %2516 }
 0x37a   : > { %2558 = vrot.lane.b32.xlu1 %v2465_v54, %s4356_s28  ;;  %2604 = vst.msk [vmem:[#allocation3 + $0x40] sm:$0xff] %vm618_vm2, %v2517_v52  ;;  %v2628_v54 = vld [vmem:[#allocation2 + $0x2] sm:$0xff] }
 0x37b   : > { %v2519_v57 = vpop.permute.xlu1 %2518 }
 0x37c   : > { %2605 = vst.msk [vmem:[#allocation3 + $0x48] sm:$0xff] %vm618_vm2, %v2519_v57  ;;  %v2629_v57 = vld [vmem:[#allocation2 + $0xa] sm:$0xff] }
 0x37d   : > { %v4312_v55 = vpop.f32.mrb[28].mxu0 }
 0x37e   : > { %v2302_v19 = vadd.f32 %v4312_v55, %v5507_v2  ;;  %v2293_v58 = vpop.f32.mrb[29].mxu0  ;;  %v5780_v55 = vld [vmem:[#allocation2 + $0x1a] sm:$0xff] }
 0x37f   : > { %v2294_v61 = vadd.f32 %v5507_v2, %v2293_v58  ;;  %v4313_v24 = vpop.f32.mrb[30].mxu0  ;;  %v5788_v58 = vld [vmem:[#allocation2 + $0x32] sm:$0xff] }
 0x380   : > { %v2338_v26 = vmax.f32 %v2302_v19, 0.0  ;;  %v2305_v27 = vadd.f32 %v4313_v24, %v5507_v2  ;;  %v2296_v30 = vpop.f32.mrb[31].mxu0  ;;  %v5784_v19 = vld [vmem:[#allocation2 + $0x22] sm:$0xff]  ;;  %v5796_v24 = vld [vmem:[#allocation2 + $0x4a] sm:$0xff] }
 0x381   : > { %v2336_v31 = vmax.f32 %v2294_v61, 0.0  ;;  %v2297_v32 = vadd.f32 %v5507_v2, %v2296_v30  ;;  %v5792_v61 = vld [vmem:[#allocation2 + $0x3a] sm:$0xff]  ;;  %v5805_v30 = vld [vmem:[#allocation2 + $0x62] sm:$0xff] }
 0x382   : > { %2370 = vst.msk [vmem:[#allocation2 + $0x181] sm:$0xff] %vm273_vm0, %v2338_v26  ;;  %v2339_v50 = vmax.f32 %v2305_v27, 0.0  ;;  %v5800_v26 = vld [vmem:[#allocation2 + $0x52] sm:$0xff] }
 0x383   : > { %2368 = vst.msk [vmem:[#allocation2 + $0x169] sm:$0xff] %vm273_vm0, %v2336_v31  ;;  %v2337_v56 = vmax.f32 %v2297_v32, 0.0  ;;  %v5810_v32 = vld [vmem:[#allocation2 + $0x6a] sm:$0xff] }
 0x384   : > { %2371 = vst.msk [vmem:[#allocation2 + $0x189] sm:$0xff] %vm273_vm0, %v2339_v50 }
 0x385   : > { %2369 = vst.msk [vmem:[#allocation2 + $0x171] sm:$0xff] %vm273_vm0, %v2337_v56  ;;  %v2521_v13 = vpop.permute.xlu0 %2520  ;;  %v5815_v56 = vld [vmem:[#allocation2 + $0x7a] sm:$0xff] }
 0x386   : > { %2606 = vst.msk [vmem:[#allocation3 + $0x50] sm:$0xff] %vm618_vm2, %v2521_v13 }
 0x387   : > { %v2523_v18 = vpop.permute.xlu1 %2522 }
 0x388   : > { %2607 = vst.msk [vmem:[#allocation3 + $0x58] sm:$0xff] %vm618_vm2, %v2523_v18  ;;  %v5820_v18 = vld [vmem:[#allocation2 + $0x82] sm:$0xff] }
 0x389   : > { %v2525_v36 = vpop.permute.xlu0 %2524  ;;  %6558 = vst [vmem:[#allocation8_spill] sm:$0xff] %v5820_v18 }
 0x38a   : > { %2608 = vst.msk [vmem:[#allocation3 + $0x60] sm:$0xff] %vm618_vm2, %v2525_v36  ;;  %v2466_v2 = vld [vmem:[#allocation2 + $0x169] sm:$0xff]  ;;  %v2640_v36 = vld [vmem:[#allocation2 + $0x92] sm:$0xff] }
 0x38b   : > { %v5767_v22 = vld [vmem:[#allocation2 + $0x168] sm:$0xff]  ;;  %v2527_v4 = vpop.permute.xlu1 %2526  ;;  %2560 = vrot.lane.b32.xlu0 %v2466_v2, %s4356_s28  ;;  %v2641_v2 = vld [vmem:[#allocation2 + $0x9a] sm:$0xff] }
 0x38c   : > { %6556 = vst [vmem:[#allocation6_spill] sm:$0xff] %v5767_v22  ;;  %2434 = vst.msk [vmem:[#allocation3 + $0xf0] sm:$0xff] %vm273_vm0, %v5767_v22  ;;  %v2467_v29 = vld [vmem:[#allocation2 + $0x171] sm:$0xff]  ;;  %v2657_v22 = vld [vmem:[#allocation2 + $0x15a] sm:$0xff] }
 0x38d   : > { %2609 = vst.msk [vmem:[#allocation3 + $0x68] sm:$0xff] %vm618_vm2, %v2527_v4  ;;  %2562 = vrot.lane.b32.xlu1 %v2467_v29, %s4356_s28  ;;  %v5774_v52 = vld [vmem:[#allocation2 + $0x170] sm:$0xff] }
 0x38e   : > { %6557 = vst [vmem:[#allocation7_spill] sm:$0xff] %v5774_v52  ;;  %2435 = vst.msk [vmem:[#allocation3 + $0xf8] sm:$0xff] %vm273_vm0, %v5774_v52  ;;  %v2642_v4 = vld [vmem:[#allocation2 + $0xaa] sm:$0xff]  ;;  %v2643_v29 = vld [vmem:[#allocation2 + $0xb2] sm:$0xff] }
 0x38f   : > { %2692 = vrot.lane.b32.xlu0 %v2628_v54, %s4357_s29  ;;  %v2644_v54 = vld [vmem:[#allocation2 + $0xc2] sm:$0xff]  ;;  %v2656_v52 = vld [vmem:[#allocation2 + $0x152] sm:$0xff]  ;;  %v2658_v48 = vld [vmem:[#allocation2 + $0x16a] sm:$0xff] }
 0x390   : > { %v2659_v17 = vld [vmem:[#allocation2 + $0x172] sm:$0xff] }
 0x391   : > { %2694 = vrot.lane.b32.xlu1 %v2629_v57, %s4357_s29  ;;  %v2645_v57 = vld [vmem:[#allocation2 + $0xca] sm:$0xff] }
 0x393   : > { %2696 = vrot.lane.b32.xlu0 %v5780_v55, %s4357_s29 }
 0x395   : > { %2698 = vrot.lane.b32.xlu1 %v5784_v19, %s4357_s29 }
 0x397   : > { %2700 = vrot.lane.b32.xlu0 %v5788_v58, %s4357_s29 }
 0x399   : > { %2702 = vrot.lane.b32.xlu1 %v5792_v61, %s4357_s29 }
 0x39b   : > { %2704 = vrot.lane.b32.xlu0 %v5796_v24, %s4357_s29 }
 0x39d   : > { %2706 = vrot.lane.b32.xlu1 %v5800_v26, %s4357_s29  ;;  %v2529_v27 = vpop.permute.xlu0 %2528 }
 0x39e   : > { %2610 = vst.msk [vmem:[#allocation3 + $0x70] sm:$0xff] %vm618_vm2, %v2529_v27  ;;  %v5830_v27 = vld [vmem:[#allocation2 + $0xda] sm:$0xff] }
 0x39f   : > { %v2531_v31 = vpop.permute.xlu1 %2530  ;;  %2708 = vrot.lane.b32.xlu0 %v5805_v30, %s4357_s29 }
 0x3a0   : > { %2611 = vst.msk [vmem:[#allocation3 + $0x78] sm:$0xff] %vm618_vm2, %v2531_v31  ;;  %v5834_v31 = vld [vmem:[#allocation2 + $0xe2] sm:$0xff] }
 0x3a1   : > { %2710 = vrot.lane.b32.xlu1 %v5810_v32, %s4357_s29  ;;  %v2533_v50 = vpop.permute.xlu0 %2532 }
 0x3a2   : > { %2612 = vst.msk [vmem:[#allocation3 + $0x80] sm:$0xff] %vm618_vm2, %v2533_v50 }
 0x3a3   : > { %v2535_v13 = vpop.permute.xlu1 %2534  ;;  %2712 = vrot.lane.b32.xlu0 %v5815_v56, %s4357_s29 }
 0x3a4   : > { %2613 = vst.msk [vmem:[#allocation3 + $0x88] sm:$0xff] %vm618_vm2, %v2535_v13  ;;  %v5839_v13 = vld [vmem:[#allocation2 + $0xf2] sm:$0xff] }
 0x3a5   : > { %2714 = vrot.lane.b32.xlu1 %v5820_v18, %s4357_s29 }
 0x3a7   : > { %2716 = vrot.lane.b32.xlu0 %v2640_v36, %s4357_s29 }
 0x3a9   : > { %2718 = vrot.lane.b32.xlu1 %v2641_v2, %s4357_s29  ;;  %v5844_v2 = vld [vmem:[#allocation2 + $0xfa] sm:$0xff] }
 0x3ab   : > { %2720 = vrot.lane.b32.xlu0 %v2642_v4, %s4357_s29 }
 0x3ad   : > { %2722 = vrot.lane.b32.xlu1 %v2643_v29, %s4357_s29  ;;  %v5849_v29 = vld [vmem:[#allocation2 + $0x10a] sm:$0xff] }
 0x3af   : > { %2724 = vrot.lane.b32.xlu0 %v2644_v54, %s4357_s29 }
 0x3b1   : > { %2726 = vrot.lane.b32.xlu1 %v2645_v57, %s4357_s29  ;;  %v5854_v57 = vld [vmem:[#allocation2 + $0x112] sm:$0xff] }
 0x3b3   : > { %2728 = vrot.lane.b32.xlu0 %v5830_v27, %s4357_s29 }
 0x3b5   : > { %2730 = vrot.lane.b32.xlu1 %v5834_v31, %s4357_s29  ;;  %v2537_v50 = vpop.permute.xlu0 %2536 }
 0x3b6   : > { %2614 = vst.msk [vmem:[#allocation3 + $0x90] sm:$0xff] %vm618_vm2, %v2537_v50  ;;  %v5858_v50 = vld [vmem:[#allocation2 + $0x122] sm:$0xff] }
 0x3b7   : > { %v2539_v36 = vpop.permute.xlu1 %2538  ;;  %2732 = vrot.lane.b32.xlu0 %v5839_v13, %s4357_s29 }
 0x3b8   : > { %2615 = vst.msk [vmem:[#allocation3 + $0x98] sm:$0xff] %vm618_vm2, %v2539_v36  ;;  %v5862_v36 = vld [vmem:[#allocation2 + $0x12a] sm:$0xff] }
 0x3b9   : > { %2734 = vrot.lane.b32.xlu1 %v5844_v2, %s4357_s29  ;;  %v2541_v4 = vpop.permute.xlu0 %2540 }
 0x3ba   : > { %2616 = vst.msk [vmem:[#allocation3 + $0xa0] sm:$0xff] %vm618_vm2, %v2541_v4  ;;  %v5866_v4 = vld [vmem:[#allocation2 + $0x13a] sm:$0xff] }
 0x3bb   : > { %v2543_v54 = vpop.permute.xlu1 %2542  ;;  %2736 = vrot.lane.b32.xlu0 %v5849_v29, %s4357_s29  ;;  %6559 = vst [vmem:[#allocation9_spill] sm:$0xff] %v5866_v4 }
 0x3bc   : > { %2617 = vst.msk [vmem:[#allocation3 + $0xa8] sm:$0xff] %vm618_vm2, %v2543_v54  ;;  %v5870_v54 = vld [vmem:[#allocation2 + $0x142] sm:$0xff] }
 0x3bd   : > { %2738 = vrot.lane.b32.xlu1 %v5854_v57, %s4357_s29 }
 0x3bf   : > { %2740 = vrot.lane.b32.xlu0 %v5858_v50, %s4357_s29 }
 0x3c1   : > { %2742 = vrot.lane.b32.xlu1 %v5862_v36, %s4357_s29 }
 0x3c3   : > { %2744 = vrot.lane.b32.xlu0 %v5866_v4, %s4357_s29 }
 0x3c5   : > { %2746 = vrot.lane.b32.xlu1 %v5870_v54, %s4357_s29 }
 0x3c7   : > { %2748 = vrot.lane.b32.xlu0 %v2656_v52, %s4357_s29 }
 0x3c9   : > { %2750 = vrot.lane.b32.xlu1 %v2657_v22, %s4357_s29 }
 0x3cb   : > { %2752 = vrot.lane.b32.xlu0 %v2658_v48, %s4357_s29 }
 0x3cd   : > { %2754 = vrot.lane.b32.xlu1 %v2659_v17, %s4357_s29  ;;  %v2545_v18 = vpop.permute.xlu0 %2544 }
 0x3ce   : > { %2618 = vst.msk [vmem:[#allocation3 + $0xb0] sm:$0xff] %vm618_vm2, %v2545_v18 }
 0x3cf   : > { %v2547_v4 = vpop.permute.xlu1 %2546  ;;  %2884 = vrot.lane.b32.xlu0 %v5522_v34, %s4358_s30 }
 0x3d0   : > { %2619 = vst.msk [vmem:[#allocation3 + $0xb8] sm:$0xff] %vm618_vm2, %v2547_v4 }
 0x3d1   : > { %2886 = vrot.lane.b32.xlu1 %v5534_v23, %s4358_s30  ;;  %v2549_v52 = vpop.permute.xlu0 %2548 }
 0x3d2   : > { %2620 = vst.msk [vmem:[#allocation3 + $0xc0] sm:$0xff] %vm618_vm2, %v2549_v52 }
 0x3d3   : > { %v2551_v22 = vpop.permute.xlu1 %2550  ;;  %2888 = vrot.lane.b32.xlu0 %v5518_v12, %s4358_s30 }
 0x3d4   : > { %2621 = vst.msk [vmem:[#allocation3 + $0xc8] sm:$0xff] %vm618_vm2, %v2551_v22 }
 0x3d5   : > { %2890 = vrot.lane.b32.xlu1 %v5530_v16, %s4358_s30 }
 0x3d7   : > { %2892 = vrot.lane.b32.xlu0 %v5562_v45, %s4358_s30 }
 0x3d9   : > { %2894 = vrot.lane.b32.xlu1 %v5574_v62, %s4358_s30 }
 0x3db   : > { %2896 = vrot.lane.b32.xlu0 %v5558_v60, %s4358_s30 }
 0x3dd   : > { %2898 = vrot.lane.b32.xlu1 %v5570_v0, %s4358_s30 }
 0x3df   : > { %2900 = vrot.lane.b32.xlu0 %v5594_v63, %s4358_s30 }
 0x3e1   : > { %2902 = vrot.lane.b32.xlu1 %v5603_v14, %s4358_s30 }
 0x3e3   : > { %2904 = vrot.lane.b32.xlu0 %v5592_v53, %s4358_s30 }
 0x3e5   : > { %2906 = vrot.lane.b32.xlu1 %v5601_v10, %s4358_s30 }
 0x3e6   : > { %v2553_v34 = vpop.permute.xlu0 %2552 }
 0x3e7   : > { %2622 = vst.msk [vmem:[#allocation3 + $0xd0] sm:$0xff] %vm618_vm2, %v2553_v34  ;;  %2908 = vrot.lane.b32.xlu0 %v5622_v15, %s4358_s30 }
 0x3e8   : > { %v2555_v23 = vpop.permute.xlu1 %2554 }
 0x3e9   : > { %2623 = vst.msk [vmem:[#allocation3 + $0xd8] sm:$0xff] %vm618_vm2, %v2555_v23  ;;  %2910 = vrot.lane.b32.xlu1 %v5631_v37, %s4358_s30 }
 0x3ea   : > { %v2557_v17 = vpop.permute.xlu0 %2556 }
 0x3eb   : > { %2624 = vst.msk [vmem:[#allocation3 + $0xe0] sm:$0xff] %vm618_vm2, %v2557_v17  ;;  %2912 = vrot.lane.b32.xlu0 %v5620_v11, %s4358_s30 }
 0x3ec   : > { %v2559_v48 = vpop.permute.xlu1 %2558 }
 0x3ed   : > { %2625 = vst.msk [vmem:[#allocation3 + $0xe8] sm:$0xff] %vm618_vm2, %v2559_v48  ;;  %2914 = vrot.lane.b32.xlu1 %v5629_v38, %s4358_s30  ;;  %v3016_v48 = vld [vmem:[#allocation2 + $0x49] sm:$0xff] }
 0x3ef   : > { %2916 = vrot.lane.b32.xlu0 %v5652_v40, %s4358_s30 }
 0x3f1   : > { %2918 = vrot.lane.b32.xlu1 %v5664_v42, %s4358_s30 }
 0x3f3   : > { %3076 = vrot.lane.b32.xlu0 %v5520_v49, %s4359_s7 }
 0x3f5   : > { %3078 = vrot.lane.b32.xlu1 %v5532_v35, %s4359_s7 }
 0x3f7   : > { %3108 = vrot.lane.b32.xlu0 %v5650_v39, %s4359_s7 }
 0x3f9   : > { %3110 = vrot.lane.b32.xlu1 %v5660_v41, %s4359_s7 }
 0x3fb   : > { %3268 = vrot.lane.b32.xlu0 %v5780_v55, %s4360_s8 }
 0x3fd   : > { %3270 = vrot.lane.b32.xlu1 %v5784_v19, %s4360_s8  ;;  %v2561_v53 = vpop.permute.xlu0 %2560 }
 0x3fe   : > { %2626 = vst.msk [vmem:[#allocation3 + $0xf0] sm:$0xff] %vm618_vm2, %v2561_v53 }
 0x3ff   : > { %v2563_v10 = vpop.permute.xlu1 %2562  ;;  %3300 = vrot.lane.b32.xlu0 %v5830_v27, %s4360_s8 }
 0x400   : > { %2627 = vst.msk [vmem:[#allocation3 + $0xf8] sm:$0xff] %vm618_vm2, %v2563_v10  ;;  %v3017_v10 = vld [vmem:[#allocation2 + $0x51] sm:$0xff] }
 0x401   : > { %3302 = vrot.lane.b32.xlu1 %v5834_v31, %s4360_s8  ;;  %v2693_v49 = vpop.permute.xlu0 %2692 }
 0x402   : > { %2788 = vst.msk [vmem:[#allocation3] sm:$0xff] %vm811_vm3, %v2693_v49 }
 0x403   : > { %v2695_v35 = vpop.permute.xlu1 %2694  ;;  %3460 = vrot.lane.b32.xlu0 %v5518_v12, %s4361_s9 }
 0x404   : > { %2789 = vst.msk [vmem:[#allocation3 + $0x8] sm:$0xff] %vm811_vm3, %v2695_v35 }
 0x405   : > { %3462 = vrot.lane.b32.xlu1 %v5530_v16, %s4361_s9  ;;  %v2697_v11 = vpop.permute.xlu0 %2696 }
 0x406   : > { %2790 = vst.msk [vmem:[#allocation3 + $0x10] sm:$0xff] %vm811_vm3, %v2697_v11 }
 0x407   : > { %v2699_v15 = vpop.permute.xlu1 %2698  ;;  %3492 = vrot.lane.b32.xlu0 %v5648_v1, %s4361_s9 }
 0x408   : > { %2791 = vst.msk [vmem:[#allocation3 + $0x18] sm:$0xff] %vm811_vm3, %v2699_v15 }
 0x409   : > { %3494 = vrot.lane.b32.xlu1 %v5666_v43, %s4361_s9  ;;  %v2701_v38 = vpop.permute.xlu0 %2700 }
 0x40a   : > { %2792 = vst.msk [vmem:[#allocation3 + $0x20] sm:$0xff] %vm811_vm3, %v2701_v38 }
 0x40b   : > { %v2703_v12 = vpop.permute.xlu1 %2702  ;;  %3652 = vrot.lane.b32.xlu0 %v5543_v51, %s4362_s14 }
 0x40c   : > { %2793 = vst.msk [vmem:[#allocation3 + $0x28] sm:$0xff] %vm811_vm3, %v2703_v12 }
 0x40d   : > { %3654 = vrot.lane.b32.xlu1 %v5549_v59, %s4362_s14  ;;  %v2705_v16 = vpop.permute.xlu0 %2704 }
 0x40e   : > { %2794 = vst.msk [vmem:[#allocation3 + $0x30] sm:$0xff] %vm811_vm3, %v2705_v16 }
 0x40f   : > { %v2707_v37 = vpop.permute.xlu1 %2706  ;;  %3684 = vrot.lane.b32.xlu0 %v5668_v44, %s4362_s14 }
 0x410   : > { %2795 = vst.msk [vmem:[#allocation3 + $0x38] sm:$0xff] %vm811_vm3, %v2707_v37 }
 0x411   : > { %3686 = vrot.lane.b32.xlu1 %v5676_v47, %s4362_s14  ;;  %v2709_v39 = vpop.permute.xlu0 %2708 }
 0x412   : > { %2796 = vst.msk [vmem:[#allocation3 + $0x40] sm:$0xff] %vm811_vm3, %v2709_v39 }
 0x413   : > { %v2711_v40 = vpop.permute.xlu1 %2710  ;;  %3844 = vrot.lane.b32.xlu0 %v5788_v58, %s4363_s19 }
 0x414   : > { %2797 = vst.msk [vmem:[#allocation3 + $0x48] sm:$0xff] %vm811_vm3, %v2711_v40 }
 0x415   : > { %3846 = vrot.lane.b32.xlu1 %v5792_v61, %s4363_s19  ;;  %v2713_v41 = vpop.permute.xlu0 %2712 }
 0x416   : > { %2798 = vst.msk [vmem:[#allocation3 + $0x50] sm:$0xff] %vm811_vm3, %v2713_v41 }
 0x417   : > { %v2715_v42 = vpop.permute.xlu1 %2714  ;;  %3876 = vrot.lane.b32.xlu0 %v5839_v13, %s4363_s19 }
 0x418   : > { %2799 = vst.msk [vmem:[#allocation3 + $0x58] sm:$0xff] %vm811_vm3, %v2715_v42 }
 0x419   : > { %3878 = vrot.lane.b32.xlu1 %v5844_v2, %s4363_s19  ;;  %v2717_v55 = vpop.permute.xlu0 %2716 }
 0x41a   : > { %2800 = vst.msk [vmem:[#allocation3 + $0x60] sm:$0xff] %vm811_vm3, %v2717_v55 }
 0x41b   : > { %v2719_v19 = vpop.permute.xlu1 %2718  ;;  %2920 = vrot.lane.b32.xlu0 %v5648_v1, %s4358_s30 }
 0x41c   : > { %2801 = vst.msk [vmem:[#allocation3 + $0x68] sm:$0xff] %vm811_vm3, %v2719_v19  ;;  %v3034_v19 = vld [vmem:[#allocation2 + $0x121] sm:$0xff] }
 0x41d   : > { %2922 = vrot.lane.b32.xlu1 %v5666_v43, %s4358_s30  ;;  %v2721_v18 = vpop.permute.xlu0 %2720 }
 0x41e   : > { %2802 = vst.msk [vmem:[#allocation3 + $0x70] sm:$0xff] %vm811_vm3, %v2721_v18 }
 0x41f   : > { %v2723_v27 = vpop.permute.xlu1 %2722  ;;  %3080 = vrot.lane.b32.xlu0 %v5543_v51, %s4359_s7 }
 0x420   : > { %2803 = vst.msk [vmem:[#allocation3 + $0x78] sm:$0xff] %vm811_vm3, %v2723_v27 }
 0x421   : > { %3082 = vrot.lane.b32.xlu1 %v5549_v59, %s4359_s7  ;;  %v2725_v31 = vpop.permute.xlu0 %2724 }
 0x422   : > { %2804 = vst.msk [vmem:[#allocation3 + $0x80] sm:$0xff] %vm811_vm3, %v2725_v31 }
 0x423   : > { %v2727_v1 = vpop.permute.xlu1 %2726  ;;  %3112 = vrot.lane.b32.xlu0 %v5668_v44, %s4359_s7 }
 0x424   : > { %2805 = vst.msk [vmem:[#allocation3 + $0x88] sm:$0xff] %vm811_vm3, %v2727_v1 }
 0x425   : > { %3114 = vrot.lane.b32.xlu1 %v5676_v47, %s4359_s7  ;;  %v2729_v43 = vpop.permute.xlu0 %2728 }
 0x426   : > { %2806 = vst.msk [vmem:[#allocation3 + $0x90] sm:$0xff] %vm811_vm3, %v2729_v43 }
 0x427   : > { %v2731_v51 = vpop.permute.xlu1 %2730  ;;  %3272 = vrot.lane.b32.xlu0 %v5788_v58, %s4360_s8 }
 0x428   : > { %2807 = vst.msk [vmem:[#allocation3 + $0x98] sm:$0xff] %vm811_vm3, %v2731_v51 }
 0x429   : > { %3274 = vrot.lane.b32.xlu1 %v5792_v61, %s4360_s8  ;;  %v2733_v59 = vpop.permute.xlu0 %2732 }
 0x42a   : > { %2808 = vst.msk [vmem:[#allocation3 + $0xa0] sm:$0xff] %vm811_vm3, %v2733_v59  ;;  %v3595_v59 = vld [vmem:[#allocation2 + $0x81] sm:$0xff] }
 0x42b   : > { %v2735_v44 = vpop.permute.xlu1 %2734  ;;  %3304 = vrot.lane.b32.xlu0 %v5839_v13, %s4360_s8 }
 0x42c   : > { %2809 = vst.msk [vmem:[#allocation3 + $0xa8] sm:$0xff] %vm811_vm3, %v2735_v44 }
 0x42d   : > { %3306 = vrot.lane.b32.xlu1 %v5844_v2, %s4360_s8  ;;  %v2737_v47 = vpop.permute.xlu0 %2736 }
 0x42e   : > { %2810 = vst.msk [vmem:[#allocation3 + $0xb0] sm:$0xff] %vm811_vm3, %v2737_v47 }
 0x42f   : > { %v2739_v58 = vpop.permute.xlu1 %2738  ;;  %3464 = vrot.lane.b32.xlu0 %v5562_v45, %s4361_s9 }
 0x430   : > { %2811 = vst.msk [vmem:[#allocation3 + $0xb8] sm:$0xff] %vm811_vm3, %v2739_v58  ;;  %v3610_v58 = vld [vmem:[#allocation2 + $0x139] sm:$0xff] }
 0x431   : > { %3466 = vrot.lane.b32.xlu1 %v5574_v62, %s4361_s9  ;;  %v2741_v61 = vpop.permute.xlu0 %2740 }
 0x432   : > { %2812 = vst.msk [vmem:[#allocation3 + $0xc0] sm:$0xff] %vm811_vm3, %v2741_v61 }
 0x433   : > { %v2743_v13 = vpop.permute.xlu1 %2742  ;;  %3496 = vrot.lane.b32.xlu0 %v5692_v5, %s4361_s9 }
 0x434   : > { %2813 = vst.msk [vmem:[#allocation3 + $0xc8] sm:$0xff] %vm811_vm3, %v2743_v13 }
 0x435   : > { %3498 = vrot.lane.b32.xlu1 %v5704_v7, %s4361_s9  ;;  %v2745_v2 = vpop.permute.xlu0 %2744 }
 0x436   : > { %2814 = vst.msk [vmem:[#allocation3 + $0xd0] sm:$0xff] %vm811_vm3, %v2745_v2 }
 0x437   : > { %v2747_v45 = vpop.permute.xlu1 %2746  ;;  %3656 = vrot.lane.b32.xlu0 %v5560_v25, %s4362_s14 }
 0x438   : > { %2815 = vst.msk [vmem:[#allocation3 + $0xd8] sm:$0xff] %vm811_vm3, %v2747_v45 }
 0x439   : > { %3658 = vrot.lane.b32.xlu1 %v5572_v46, %s4362_s14  ;;  %v2749_v62 = vpop.permute.xlu0 %2748 }
 0x43a   : > { %2816 = vst.msk [vmem:[#allocation3 + $0xe0] sm:$0xff] %vm811_vm3, %v2749_v62  ;;  %v3611_v62 = vld [vmem:[#allocation2 + $0x141] sm:$0xff] }
 0x43b   : > { %v2751_v4 = vpop.permute.xlu1 %2750  ;;  %3688 = vrot.lane.b32.xlu0 %v5690_v6, %s4362_s14 }
 0x43c   : > { %2817 = vst.msk [vmem:[#allocation3 + $0xe8] sm:$0xff] %vm811_vm3, %v2751_v4 }
 0x43d   : > { %3690 = vrot.lane.b32.xlu1 %v5700_v8, %s4362_s14  ;;  %v2753_v52 = vpop.permute.xlu0 %2752 }
 0x43e   : > { %2818 = vst.msk [vmem:[#allocation3 + $0xf0] sm:$0xff] %vm811_vm3, %v2753_v52 }
 0x43f   : > { %v2755_v25 = vpop.permute.xlu1 %2754  ;;  %3848 = vrot.lane.b32.xlu0 %v5796_v24, %s4363_s19 }
 0x440   : > { %2819 = vst.msk [vmem:[#allocation3 + $0xf8] sm:$0xff] %vm811_vm3, %v2755_v25 }
 0x441   : > { %3850 = vrot.lane.b32.xlu1 %v5800_v26, %s4363_s19  ;;  %v2885_v46 = vpop.permute.xlu0 %2884 }
 0x442   : > { %2980 = vst.msk [vmem:[#allocation3] sm:$0xff] %vm1004_vm4, %v2885_v46 }
 0x443   : > { %v2887_v22 = vpop.permute.xlu1 %2886  ;;  %3880 = vrot.lane.b32.xlu0 %v5849_v29, %s4363_s19 }
 0x444   : > { %2981 = vst.msk [vmem:[#allocation3 + $0x8] sm:$0xff] %vm1004_vm4, %v2887_v22  ;;  %v6560_v22 = vld [vmem:[#allocation8_spill] sm:$0xff] }
 0x445   : > { %3882 = vrot.lane.b32.xlu1 %v5854_v57, %s4363_s19  ;;  %v2889_v34 = vpop.permute.xlu0 %2888 }
 0x446   : > { %2982 = vst.msk [vmem:[#allocation3 + $0x10] sm:$0xff] %vm1004_vm4, %v2889_v34 }
 0x447   : > { %v2891_v23 = vpop.permute.xlu1 %2890  ;;  %2924 = vrot.lane.b32.xlu0 %v5692_v5, %s4358_s30 }
 0x448   : > { %2983 = vst.msk [vmem:[#allocation3 + $0x18] sm:$0xff] %vm1004_vm4, %v2891_v23 }
 0x449   : > { %2926 = vrot.lane.b32.xlu1 %v5704_v7, %s4358_s30  ;;  %v2893_v17 = vpop.permute.xlu0 %2892 }
 0x44a   : > { %2984 = vst.msk [vmem:[#allocation3 + $0x20] sm:$0xff] %vm1004_vm4, %v2893_v17  ;;  %v6561_v17 = vld [vmem:[#allocation9_spill] sm:$0xff] }
 0x44b   : > { %v2895_v53 = vpop.permute.xlu1 %2894  ;;  %3084 = vrot.lane.b32.xlu0 %v3016_v48, %s4359_s7 }
 0x44c   : > { %2985 = vst.msk [vmem:[#allocation3 + $0x28] sm:$0xff] %vm1004_vm4, %v2895_v53 }
 0x44d   : > { %3086 = vrot.lane.b32.xlu1 %v3017_v10, %s4359_s7  ;;  %v2897_v49 = vpop.permute.xlu0 %2896 }
 0x44e   : > { %2986 = vst.msk [vmem:[#allocation3 + $0x30] sm:$0xff] %vm1004_vm4, %v2897_v49 }
 0x44f   : > { %v2899_v5 = vpop.permute.xlu1 %2898  ;;  %3116 = vrot.lane.b32.xlu0 %v5690_v6, %s4359_s7 }
 0x450   : > { %2987 = vst.msk [vmem:[#allocation3 + $0x38] sm:$0xff] %vm1004_vm4, %v2899_v5 }
 0x451   : > { %3118 = vrot.lane.b32.xlu1 %v5700_v8, %s4359_s7  ;;  %v2901_v7 = vpop.permute.xlu0 %2900 }
 0x452   : > { %2988 = vst.msk [vmem:[#allocation3 + $0x40] sm:$0xff] %vm1004_vm4, %v2901_v7 }
 0x453   : > { %v2903_v35 = vpop.permute.xlu1 %2902  ;;  %3276 = vrot.lane.b32.xlu0 %v5796_v24, %s4360_s8 }
 0x454   : > { %2989 = vst.msk [vmem:[#allocation3 + $0x48] sm:$0xff] %vm1004_vm4, %v2903_v35 }
 0x455   : > { %3278 = vrot.lane.b32.xlu1 %v5800_v26, %s4360_s8  ;;  %v2905_v11 = vpop.permute.xlu0 %2904 }
 0x456   : > { %2990 = vst.msk [vmem:[#allocation3 + $0x50] sm:$0xff] %vm1004_vm4, %v2905_v11 }
 0x457   : > { %v2907_v6 = vpop.permute.xlu1 %2906  ;;  %3308 = vrot.lane.b32.xlu0 %v5849_v29, %s4360_s8 }
 0x458   : > { %2991 = vst.msk [vmem:[#allocation3 + $0x58] sm:$0xff] %vm1004_vm4, %v2907_v6 }
 0x459   : > { %3310 = vrot.lane.b32.xlu1 %v5854_v57, %s4360_s8  ;;  %v2909_v8 = vpop.permute.xlu0 %2908 }
 0x45a   : > { %2992 = vst.msk [vmem:[#allocation3 + $0x60] sm:$0xff] %vm1004_vm4, %v2909_v8 }
 0x45b   : > { %v2911_v24 = vpop.permute.xlu1 %2910  ;;  %3468 = vrot.lane.b32.xlu0 %v5558_v60, %s4361_s9  ;;  %v3592_v60 = vld [vmem:[#allocation2 + $0x61] sm:$0xff] }
 0x45c   : > { %2993 = vst.msk [vmem:[#allocation3 + $0x68] sm:$0xff] %vm1004_vm4, %v2911_v24  ;;  %v3405_v24 = vld [vmem:[#allocation2 + $0x98] sm:$0xff] }
 0x45d   : > { %3470 = vrot.lane.b32.xlu1 %v5570_v0, %s4361_s9  ;;  %v2913_v26 = vpop.permute.xlu0 %2912  ;;  %v3593_v0 = vld [vmem:[#allocation2 + $0x69] sm:$0xff] }
 0x45e   : > { %2994 = vst.msk [vmem:[#allocation3 + $0x70] sm:$0xff] %vm1004_vm4, %v2913_v26 }
 0x45f   : > { %v2915_v29 = vpop.permute.xlu1 %2914  ;;  %3500 = vrot.lane.b32.xlu0 %v5688_v3, %s4361_s9 }
 0x460   : > { %2995 = vst.msk [vmem:[#allocation3 + $0x78] sm:$0xff] %vm1004_vm4, %v2915_v29 }
 0x461   : > { %3502 = vrot.lane.b32.xlu1 %v5706_v9, %s4361_s9  ;;  %v2917_v57 = vpop.permute.xlu0 %2916 }
 0x462   : > { %2996 = vst.msk [vmem:[#allocation3 + $0x80] sm:$0xff] %vm1004_vm4, %v2917_v57  ;;  %v6562_v57 = vld [vmem:[#allocation4_spill] sm:$0xff] }
 0x463   : > { %v2919_v15 = vpop.permute.xlu1 %2918  ;;  %3660 = vrot.lane.b32.xlu0 %v3592_v60, %s4362_s14 }
 0x464   : > { %2997 = vst.msk [vmem:[#allocation3 + $0x88] sm:$0xff] %vm1004_vm4, %v2919_v15  ;;  %v3596_v15 = vld [vmem:[#allocation2 + $0x91] sm:$0xff] }
 0x465   : > { %3662 = vrot.lane.b32.xlu1 %v3593_v0, %s4362_s14  ;;  %v3077_v38 = vpop.permute.xlu0 %3076 }
 0x466   : > { %3172 = vst.msk [vmem:[#allocation3] sm:$0xff] %vm1197_vm5, %v3077_v38 }
 0x467   : > { %v3079_v12 = vpop.permute.xlu1 %3078  ;;  %3692 = vrot.lane.b32.xlu0 %v5708_v20, %s4362_s14 }
 0x468   : > { %3173 = vst.msk [vmem:[#allocation3 + $0x8] sm:$0xff] %vm1197_vm5, %v3079_v12  ;;  %v3597_v12 = vld [vmem:[#allocation2 + $0x99] sm:$0xff] }
 0x469   : > { %3694 = vrot.lane.b32.xlu1 %v5716_v33, %s4362_s14  ;;  %v3109_v16 = vpop.permute.xlu0 %3108 }
 0x46a   : > { %3188 = vst.msk [vmem:[#allocation3 + $0x80] sm:$0xff] %vm1197_vm5, %v3109_v16 }
 0x46b   : > { %v3111_v37 = vpop.permute.xlu1 %3110  ;;  %3852 = vrot.lane.b32.xlu0 %v5805_v30, %s4363_s19 }
 0x46c   : > { %3189 = vst.msk [vmem:[#allocation3 + $0x88] sm:$0xff] %vm1197_vm5, %v3111_v37 }
 0x46d   : > { %3854 = vrot.lane.b32.xlu1 %v5810_v32, %s4363_s19  ;;  %v3269_v39 = vpop.permute.xlu0 %3268 }
 0x46e   : > { %3364 = vst.msk [vmem:[#allocation3] sm:$0xff] %vm1390_vm7, %v3269_v39  ;;  %v3612_v39 = vld [vmem:[#allocation2 + $0x151] sm:$0xff] }
 0x46f   : > { %v3271_v20 = vpop.permute.xlu1 %3270  ;;  %3884 = vrot.lane.b32.xlu0 %v5858_v50, %s4363_s19 }
 0x470   : > { %3365 = vst.msk [vmem:[#allocation3 + $0x8] sm:$0xff] %vm1390_vm7, %v3271_v20 }
 0x471   : > { %3886 = vrot.lane.b32.xlu1 %v5862_v36, %s4363_s19  ;;  %v3301_v33 = vpop.permute.xlu0 %3300 }
 0x472   : > { %3380 = vst.msk [vmem:[#allocation3 + $0x80] sm:$0xff] %vm1390_vm7, %v3301_v33 }
 0x473   : > { %v3303_v40 = vpop.permute.xlu1 %3302  ;;  %2928 = vrot.lane.b32.xlu0 %v5688_v3, %s4358_s30 }
 0x474   : > { %3381 = vst.msk [vmem:[#allocation3 + $0x88] sm:$0xff] %vm1390_vm7, %v3303_v40 }
 0x475   : > { %2930 = vrot.lane.b32.xlu1 %v5706_v9, %s4358_s30  ;;  %v3461_v41 = vpop.permute.xlu0 %3460  ;;  %v3035_v9 = vld [vmem:[#allocation2 + $0x129] sm:$0xff] }
 0x476   : > { %3556 = vst.msk [vmem:[#allocation3] sm:$0xff] %vm1584_vm8, %v3461_v41 }
 0x477   : > { %v3463_v42 = vpop.permute.xlu1 %3462  ;;  %3088 = vrot.lane.b32.xlu0 %v3592_v60, %s4359_s7 }
 0x478   : > { %3557 = vst.msk [vmem:[#allocation3 + $0x8] sm:$0xff] %vm1584_vm8, %v3463_v42  ;;  %v3613_v42 = vld [vmem:[#allocation2 + $0x159] sm:$0xff] }
 0x479   : > { %3090 = vrot.lane.b32.xlu1 %v3593_v0, %s4359_s7  ;;  %v3493_v55 = vpop.permute.xlu0 %3492 }
 0x47a   : > { %3572 = vst.msk [vmem:[#allocation3 + $0x80] sm:$0xff] %vm1584_vm8, %v3493_v55 }
 0x47b   : > { %v3495_v3 = vpop.permute.xlu1 %3494  ;;  %3120 = vrot.lane.b32.xlu0 %v3034_v19, %s4359_s7 }
 0x47c   : > { %3573 = vst.msk [vmem:[#allocation3 + $0x88] sm:$0xff] %vm1584_vm8, %v3495_v3  ;;  %v3788_v3 = vld [vmem:[#allocation2 + $0x92] sm:$0xff] }
 0x47d   : > { %3122 = vrot.lane.b32.xlu1 %v3035_v9, %s4359_s7  ;;  %v3653_v18 = vpop.permute.xlu0 %3652 }
 0x47e   : > { %3748 = vst.msk [vmem:[#allocation3] sm:$0xff] %vm1777_vm9, %v3653_v18 }
 0x47f   : > { %v3655_v27 = vpop.permute.xlu1 %3654  ;;  %3280 = vrot.lane.b32.xlu0 %v5805_v30, %s4360_s8 }
 0x480   : > { %3749 = vst.msk [vmem:[#allocation3 + $0x8] sm:$0xff] %vm1777_vm9, %v3655_v27  ;;  %v3789_v27 = vld [vmem:[#allocation2 + $0x9a] sm:$0xff] }
 0x481   : > { %3282 = vrot.lane.b32.xlu1 %v5810_v32, %s4360_s8  ;;  %v3685_v31 = vpop.permute.xlu0 %3684 }
 0x482   : > { %3764 = vst.msk [vmem:[#allocation3 + $0x80] sm:$0xff] %vm1777_vm9, %v3685_v31 }
 0x483   : > { %v3687_v1 = vpop.permute.xlu1 %3686  ;;  %3312 = vrot.lane.b32.xlu0 %v5858_v50, %s4360_s8 }
 0x484   : > { %3765 = vst.msk [vmem:[#allocation3 + $0x88] sm:$0xff] %vm1777_vm9, %v3687_v1  ;;  %v3804_v1 = vld [vmem:[#allocation2 + $0x152] sm:$0xff] }
 0x485   : > { %3314 = vrot.lane.b32.xlu1 %v5862_v36, %s4360_s8  ;;  %v3845_v43 = vpop.permute.xlu0 %3844 }
 0x486   : > { %3940 = vst.msk [vmem:[#allocation3] sm:$0xff] %vm1970_vm10, %v3845_v43 }
 0x487   : > { %v3847_v30 = vpop.permute.xlu1 %3846  ;;  %3472 = vrot.lane.b32.xlu0 %v5594_v63, %s4361_s9  ;;  %v3594_v63 = vld [vmem:[#allocation2 + $0x79] sm:$0xff] }
 0x488   : > { %3941 = vst.msk [vmem:[#allocation3 + $0x8] sm:$0xff] %vm1970_vm10, %v3847_v30  ;;  %v3805_v30 = vld [vmem:[#allocation2 + $0x15a] sm:$0xff] }
 0x489   : > { %3474 = vrot.lane.b32.xlu1 %v5603_v14, %s4361_s9  ;;  %v3877_v32 = vpop.permute.xlu0 %3876 }
 0x48a   : > { %3956 = vst.msk [vmem:[#allocation3 + $0x80] sm:$0xff] %vm1970_vm10, %v3877_v32 }
 0x48b   : > { %v3879_v50 = vpop.permute.xlu1 %3878  ;;  %3504 = vrot.lane.b32.xlu0 %v5734_v21, %s4361_s9 }
 0x48c   : > { %3957 = vst.msk [vmem:[#allocation3 + $0x88] sm:$0xff] %vm1970_vm10, %v3879_v50 }
 0x48d   : > { %3506 = vrot.lane.b32.xlu1 %v5742_v28, %s4361_s9  ;;  %v2921_v36 = vpop.permute.xlu0 %2920  ;;  %v3972_v47 = vld [vmem:[#allocation3] sm:$0xff] }
 0x48e   : > { %2998 = vst.msk [vmem:[#allocation3 + $0x90] sm:$0xff] %vm1004_vm4, %v2921_v36 }
 0x48f   : > { %v2923_v51 = vpop.permute.xlu1 %2922  ;;  %3664 = vrot.lane.b32.xlu0 %v3594_v63, %s4362_s14  ;;  %v3973_v14 = vld [vmem:[#allocation3 + $0x8] sm:$0xff] }
 0x490   : > { %2999 = vst.msk [vmem:[#allocation3 + $0x98] sm:$0xff] %vm1004_vm4, %v2923_v51  ;;  %v4004_v61 = vpack.c.bf16 %v3973_v14, %v3972_v47 }
 0x491   : > { %3666 = vrot.lane.b32.xlu1 %v3595_v59, %s4362_s14  ;;  %v3081_v44 = vpop.permute.xlu0 %3080  ;;  %v3988_v2 = vld [vmem:[#allocation3 + $0x80] sm:$0xff] }
 0x492   : > { %3174 = vst.msk [vmem:[#allocation3 + $0x10] sm:$0xff] %vm1197_vm5, %v3081_v44  ;;  %v4031_v25 = vsel %vm2094_vm11, %v4004_v61, 0 }
 0x493   : > { %v3083_v13 = vpop.permute.xlu1 %3082  ;;  %3696 = vrot.lane.b32.xlu0 %v3610_v58, %s4362_s14  ;;  %v3989_v45 = vld [vmem:[#allocation3 + $0x88] sm:$0xff] }
 0x494   : > { %3175 = vst.msk [vmem:[#allocation3 + $0x18] sm:$0xff] %vm1197_vm5, %v3083_v13  ;;  %v4012_v4 = vpack.c.bf16 %v3989_v45, %v3988_v2  ;;  %v3406_v13 = vld [vmem:[#allocation2 + $0xa8] sm:$0xff]  ;;  %v3407_v45 = vld [vmem:[#allocation2 + $0xb0] sm:$0xff] }
 0x495   : > { %3698 = vrot.lane.b32.xlu1 %v3611_v62, %s4362_s14  ;;  %v3113_v52 = vpop.permute.xlu0 %3112 }
 0x496   : > { %3190 = vst.msk [vmem:[#allocation3 + $0x90] sm:$0xff] %vm1197_vm5, %v3113_v52  ;;  %4315 = vmatprep.subr.msk.bf16.mxu1 %vm2094_vm11, %v4012_v4  ;;  %v6564_v52 = vld [vmem:[#allocation6_spill] sm:$0xff] }
 0x497   : > { %v3115_v46 = vpop.permute.xlu1 %3114  ;;  %3856 = vrot.lane.b32.xlu0 %v5815_v56, %s4363_s19  ;;  %4255 = vmatpush3.bf16.xpose.msra.mxu1 %v4031_v25  ;;  %v6565_v25 = vld [vmem:[#allocation7_spill] sm:$0xff] }
 0x498   : > { %3191 = vst.msk [vmem:[#allocation3 + $0x98] sm:$0xff] %vm1197_vm5, %v3115_v46 }
 0x499   : > { %3858 = vrot.lane.b32.xlu1 %v6560_v22, %s4363_s19  ;;  %v3273_v34 = vpop.permute.xlu0 %3272 }
 0x49a   : > { %3366 = vst.msk [vmem:[#allocation3 + $0x10] sm:$0xff] %vm1390_vm7, %v3273_v34 }
 0x49b   : > { %v3275_v23 = vpop.permute.xlu1 %3274  ;;  %3888 = vrot.lane.b32.xlu0 %v6561_v17, %s4363_s19 }
 0x49c   : > { %3367 = vst.msk [vmem:[#allocation3 + $0x18] sm:$0xff] %vm1390_vm7, %v3275_v23 }
 0x49d   : > { %3890 = vrot.lane.b32.xlu1 %v5870_v54, %s4363_s19  ;;  %v3305_v48 = vpop.permute.xlu0 %3304 }
 0x49e   : > { %3382 = vst.msk [vmem:[#allocation3 + $0x90] sm:$0xff] %vm1390_vm7, %v3305_v48 }
 0x49f   : > { %v3307_v53 = vpop.permute.xlu1 %3306  ;;  %2932 = vrot.lane.b32.xlu0 %v5734_v21, %s4358_s30 }
 0x4a0   : > { %3383 = vst.msk [vmem:[#allocation3 + $0x98] sm:$0xff] %vm1390_vm7, %v3307_v53 }
 0x4a1   : > { %2934 = vrot.lane.b32.xlu1 %v5742_v28, %s4358_s30  ;;  %v3465_v10 = vpop.permute.xlu0 %3464 }
 0x4a2   : > { %3558 = vst.msk [vmem:[#allocation3 + $0x10] sm:$0xff] %vm1584_vm8, %v3465_v10  ;;  %v3614_v10 = vld [vmem:[#allocation2 + $0x169] sm:$0xff] }
 0x4a3   : > { %v3467_v49 = vpop.permute.xlu1 %3466  ;;  %3092 = vrot.lane.b32.xlu0 %v3594_v63, %s4359_s7 }
 0x4a4   : > { %3559 = vst.msk [vmem:[#allocation3 + $0x18] sm:$0xff] %vm1584_vm8, %v3467_v49 }
 0x4a5   : > { %3094 = vrot.lane.b32.xlu1 %v3595_v59, %s4359_s7  ;;  %v3497_v5 = vpop.permute.xlu0 %3496 }
 0x4a6   : > { %3574 = vst.msk [vmem:[#allocation3 + $0x90] sm:$0xff] %vm1584_vm8, %v3497_v5 }
 0x4a7   : > { %v3499_v7 = vpop.permute.xlu1 %3498  ;;  %3124 = vrot.lane.b32.xlu0 %v3610_v58, %s4359_s7 }
 0x4a8   : > { %3575 = vst.msk [vmem:[#allocation3 + $0x98] sm:$0xff] %vm1584_vm8, %v3499_v7 }
 0x4a9   : > { %3126 = vrot.lane.b32.xlu1 %v3611_v62, %s4359_s7  ;;  %v3657_v21 = vpop.permute.xlu0 %3656 }
 0x4aa   : > { %3750 = vst.msk [vmem:[#allocation3 + $0x10] sm:$0xff] %vm1777_vm9, %v3657_v21 }
 0x4ab   : > { %v3659_v28 = vpop.permute.xlu1 %3658  ;;  %3284 = vrot.lane.b32.xlu0 %v5815_v56, %s4360_s8  ;;  %v3404_v56 = vld [vmem:[#allocation2 + $0x90] sm:$0xff] }
 0x4ac   : > { %3751 = vst.msk [vmem:[#allocation3 + $0x18] sm:$0xff] %vm1777_vm9, %v3659_v28  ;;  %v3615_v28 = vld [vmem:[#allocation2 + $0x171] sm:$0xff] }
 0x4ad   : > { %3286 = vrot.lane.b32.xlu1 %v6560_v22, %s4360_s8  ;;  %v3689_v35 = vpop.permute.xlu0 %3688  ;;  %v3598_v22 = vld [vmem:[#allocation2 + $0xa9] sm:$0xff] }
 0x4ae   : > { %3766 = vst.msk [vmem:[#allocation3 + $0x90] sm:$0xff] %vm1777_vm9, %v3689_v35 }
 0x4af   : > { %v3691_v11 = vpop.permute.xlu1 %3690  ;;  %3316 = vrot.lane.b32.xlu0 %v6561_v17, %s4360_s8  ;;  %v3599_v17 = vld [vmem:[#allocation2 + $0xb1] sm:$0xff] }
 0x4b0   : > { %3767 = vst.msk [vmem:[#allocation3 + $0x98] sm:$0xff] %vm1777_vm9, %v3691_v11 }
 0x4b1   : > { %3318 = vrot.lane.b32.xlu1 %v5870_v54, %s4360_s8  ;;  %v3849_v6 = vpop.permute.xlu0 %3848  ;;  %v6563_v54 = vld [vmem:[#allocation5_spill] sm:$0xff] }
 0x4b2   : > { %3942 = vst.msk [vmem:[#allocation3 + $0x10] sm:$0xff] %vm1970_vm10, %v3849_v6  ;;  %v3790_v6 = vld [vmem:[#allocation2 + $0xaa] sm:$0xff] }
 0x4b3   : > { %v3851_v8 = vpop.permute.xlu1 %3850  ;;  %3476 = vrot.lane.b32.xlu0 %v3404_v56, %s4361_s9 }
 0x4b4   : > { %3943 = vst.msk [vmem:[#allocation3 + $0x18] sm:$0xff] %vm1970_vm10, %v3851_v8 }
 0x4b5   : > { %3478 = vrot.lane.b32.xlu1 %v3405_v24, %s4361_s9  ;;  %v3881_v26 = vpop.permute.xlu0 %3880  ;;  %v3791_v24 = vld [vmem:[#allocation2 + $0xb2] sm:$0xff] }
 0x4b6   : > { %3958 = vst.msk [vmem:[#allocation3 + $0x90] sm:$0xff] %vm1970_vm10, %v3881_v26 }
 0x4b7   : > { %v3883_v29 = vpop.permute.xlu1 %3882  ;;  %3508 = vrot.lane.b32.xlu0 %v6562_v57, %s4361_s9 }
 0x4b8   : > { %3959 = vst.msk [vmem:[#allocation3 + $0x98] sm:$0xff] %vm1970_vm10, %v3883_v29  ;;  %v3806_v29 = vld [vmem:[#allocation2 + $0x16a] sm:$0xff] }
 0x4b9   : > { %3510 = vrot.lane.b32.xlu1 %v6563_v54, %s4361_s9  ;;  %v2925_v60 = vpop.permute.xlu0 %2924  ;;  %v3974_v37 = vld [vmem:[#allocation3 + $0x10] sm:$0xff] }
 0x4ba   : > { %3000 = vst.msk [vmem:[#allocation3 + $0xa0] sm:$0xff] %vm1004_vm4, %v2925_v60 }
 0x4bb   : > { %v2927_v0 = vpop.permute.xlu1 %2926  ;;  %3668 = vrot.lane.b32.xlu0 %v3596_v15, %s4362_s14  ;;  %v3975_v38 = vld [vmem:[#allocation3 + $0x18] sm:$0xff] }
 0x4bc   : > { %3001 = vst.msk [vmem:[#allocation3 + $0xa8] sm:$0xff] %vm1004_vm4, %v2927_v0  ;;  %v4005_v20 = vpack.c.bf16 %v3975_v38, %v3974_v37  ;;  %v2849_v38 = vld [vmem:[#allocation2 + $0x170] sm:$0xff] }
 0x4bd   : > { %3670 = vrot.lane.b32.xlu1 %v3597_v12, %s4362_s14  ;;  %v3085_v16 = vpop.permute.xlu0 %3084  ;;  %v3990_v40 = vld [vmem:[#allocation3 + $0x90] sm:$0xff] }
 0x4be   : > { %3176 = vst.msk [vmem:[#allocation3 + $0x20] sm:$0xff] %vm1197_vm5, %v3085_v16  ;;  %v4034_v9 = vsel %vm2094_vm11, %v4005_v20, 0 }
 0x4bf   : > { %v3087_v33 = vpop.permute.xlu1 %3086  ;;  %3700 = vrot.lane.b32.xlu0 %v3612_v39, %s4362_s14  ;;  %v3991_v41 = vld [vmem:[#allocation3 + $0x98] sm:$0xff] }
 0x4c0   : > { %3177 = vst.msk [vmem:[#allocation3 + $0x28] sm:$0xff] %vm1197_vm5, %v3087_v33  ;;  %v4013_v55 = vpack.c.bf16 %v3991_v41, %v3990_v40 }
 0x4c1   : > { %3702 = vrot.lane.b32.xlu1 %v3613_v42, %s4362_s14  ;;  %v3117_v19 = vpop.permute.xlu0 %3116 }
 0x4c2   : > { %3192 = vst.msk [vmem:[#allocation3 + $0xa0] sm:$0xff] %vm1197_vm5, %v3117_v19  ;;  %4316 = vmatprep.subr.msk.bf16.mxu1 %vm2094_vm11, %v4013_v55  ;;  %v3408_v55 = vld [vmem:[#allocation2 + $0xc0] sm:$0xff] }
 0x4c3   : > { %v3119_v18 = vpop.permute.xlu1 %3118  ;;  %3860 = vrot.lane.b32.xlu0 %v3788_v3, %s4363_s19  ;;  %4257 = vmatpush3.bf16.xpose.msra.mxu1 %v4034_v9 }
 0x4c4   : > { %3193 = vst.msk [vmem:[#allocation3 + $0xa8] sm:$0xff] %vm1197_vm5, %v3119_v18  ;;  %v3424_v18 = vld [vmem:[#allocation2 + $0x180] sm:$0xff] }
 0x4c5   : > { %3862 = vrot.lane.b32.xlu1 %v3789_v27, %s4363_s19  ;;  %v3277_v31 = vpop.permute.xlu0 %3276 }
 0x4c6   : > { %3368 = vst.msk [vmem:[#allocation3 + $0x20] sm:$0xff] %vm1390_vm7, %v3277_v31  ;;  %v3425_v31 = vld [vmem:[#allocation2 + $0x188] sm:$0xff] }
 0x4c7   : > { %v3279_v43 = vpop.permute.xlu1 %3278  ;;  %3892 = vrot.lane.b32.xlu0 %v3804_v1, %s4363_s19 }
 0x4c8   : > { %3369 = vst.msk [vmem:[#allocation3 + $0x28] sm:$0xff] %vm1390_vm7, %v3279_v43  ;;  %v3600_v43 = vld [vmem:[#allocation2 + $0xc1] sm:$0xff] }
 0x4c9   : > { %3894 = vrot.lane.b32.xlu1 %v3805_v30, %s4363_s19  ;;  %v3309_v32 = vpop.permute.xlu0 %3308 }
 0x4ca   : > { %3384 = vst.msk [vmem:[#allocation3 + $0xa0] sm:$0xff] %vm1390_vm7, %v3309_v32 }
 0x4cb   : > { %v3311_v50 = vpop.permute.xlu1 %3310  ;;  %2936 = vrot.lane.b32.xlu0 %v6562_v57, %s4358_s30 }
 0x4cc   : > { %3385 = vst.msk [vmem:[#allocation3 + $0xa8] sm:$0xff] %vm1390_vm7, %v3311_v50  ;;  %v3601_v50 = vld [vmem:[#allocation2 + $0xc9] sm:$0xff] }
 0x4cd   : > { %2938 = vrot.lane.b32.xlu1 %v6563_v54, %s4358_s30  ;;  %v3469_v36 = vpop.permute.xlu0 %3468  ;;  %v3807_v54 = vld [vmem:[#allocation2 + $0x172] sm:$0xff] }
 0x4ce   : > { %3560 = vst.msk [vmem:[#allocation3 + $0x20] sm:$0xff] %vm1584_vm8, %v3469_v36 }
 0x4cf   : > { %v3471_v63 = vpop.permute.xlu1 %3470  ;;  %3096 = vrot.lane.b32.xlu0 %v3596_v15, %s4359_s7  ;;  %v2848_v15 = vld [vmem:[#allocation2 + $0x168] sm:$0xff] }
 0x4d0   : > { %3561 = vst.msk [vmem:[#allocation3 + $0x28] sm:$0xff] %vm1584_vm8, %v3471_v63 }
 0x4d1   : > { %3098 = vrot.lane.b32.xlu1 %v3597_v12, %s4359_s7  ;;  %v3501_v51 = vpop.permute.xlu0 %3500 }
 0x4d2   : > { %3576 = vst.msk [vmem:[#allocation3 + $0xa0] sm:$0xff] %vm1584_vm8, %v3501_v51  ;;  %v3616_v51 = vld [vmem:[#allocation2 + $0x181] sm:$0xff] }
 0x4d3   : > { %v3503_v14 = vpop.permute.xlu1 %3502  ;;  %3128 = vrot.lane.b32.xlu0 %v3612_v39, %s4359_s7 }
 0x4d4   : > { %3577 = vst.msk [vmem:[#allocation3 + $0xa8] sm:$0xff] %vm1584_vm8, %v3503_v14 }
 0x4d5   : > { %3130 = vrot.lane.b32.xlu1 %v3613_v42, %s4359_s7  ;;  %v3661_v59 = vpop.permute.xlu0 %3660 }
 0x4d6   : > { %3752 = vst.msk [vmem:[#allocation3 + $0x20] sm:$0xff] %vm1777_vm9, %v3661_v59 }
 0x4d7   : > { %v3663_v44 = vpop.permute.xlu1 %3662  ;;  %3288 = vrot.lane.b32.xlu0 %v3788_v3, %s4360_s8  ;;  %v3409_v3 = vld [vmem:[#allocation2 + $0xc8] sm:$0xff] }
 0x4d8   : > { %3753 = vst.msk [vmem:[#allocation3 + $0x28] sm:$0xff] %vm1777_vm9, %v3663_v44 }
 0x4d9   : > { %3290 = vrot.lane.b32.xlu1 %v3789_v27, %s4360_s8  ;;  %v3693_v47 = vpop.permute.xlu0 %3692 }
 0x4da   : > { %3768 = vst.msk [vmem:[#allocation3 + $0xa0] sm:$0xff] %vm1777_vm9, %v3693_v47 }
 0x4db   : > { %v3695_v58 = vpop.permute.xlu1 %3694  ;;  %3320 = vrot.lane.b32.xlu0 %v3804_v1, %s4360_s8 }
 0x4dc   : > { %3769 = vst.msk [vmem:[#allocation3 + $0xa8] sm:$0xff] %vm1777_vm9, %v3695_v58  ;;  %v3617_v58 = vld [vmem:[#allocation2 + $0x189] sm:$0xff] }
 0x4dd   : > { %3322 = vrot.lane.b32.xlu1 %v3805_v30, %s4360_s8  ;;  %v3853_v61 = vpop.permute.xlu0 %3852 }
 0x4de   : > { %3944 = vst.msk [vmem:[#allocation3 + $0x20] sm:$0xff] %vm1970_vm10, %v3853_v61 }
 0x4df   : > { %v3855_v2 = vpop.permute.xlu1 %3854  ;;  %3480 = vrot.lane.b32.xlu0 %v3406_v13, %s4361_s9 }
 0x4e0   : > { %3945 = vst.msk [vmem:[#allocation3 + $0x28] sm:$0xff] %vm1970_vm10, %v3855_v2  ;;  %v3792_v2 = vld [vmem:[#allocation2 + $0xc2] sm:$0xff] }
 0x4e1   : > { %3482 = vrot.lane.b32.xlu1 %v3407_v45, %s4361_s9  ;;  %v3885_v62 = vpop.permute.xlu0 %3884 }
 0x4e2   : > { %3960 = vst.msk [vmem:[#allocation3 + $0xa0] sm:$0xff] %vm1970_vm10, %v3885_v62 }
 0x4e3   : > { %v3887_v4 = vpop.permute.xlu1 %3886  ;;  %3512 = vrot.lane.b32.xlu0 %v6564_v52, %s4361_s9 }
 0x4e4   : > { %3961 = vst.msk [vmem:[#allocation3 + $0xa8] sm:$0xff] %vm1970_vm10, %v3887_v4  ;;  %v3793_v4 = vld [vmem:[#allocation2 + $0xca] sm:$0xff] }
 0x4e5   : > { %3514 = vrot.lane.b32.xlu1 %v6565_v25, %s4361_s9  ;;  %v2929_v46 = vpop.permute.xlu0 %2928  ;;  %v3976_v53 = vld [vmem:[#allocation3 + $0x20] sm:$0xff]  ;;  %v3808_v25 = vld [vmem:[#allocation2 + $0x182] sm:$0xff] }
 0x4e6   : > { %3002 = vst.msk [vmem:[#allocation3 + $0xb0] sm:$0xff] %vm1004_vm4, %v2929_v46 }
 0x4e7   : > { %v2931_v34 = vpop.permute.xlu1 %2930  ;;  %3672 = vrot.lane.b32.xlu0 %v3598_v22, %s4362_s14  ;;  %v3977_v23 = vld [vmem:[#allocation3 + $0x28] sm:$0xff] }
 0x4e8   : > { %3003 = vst.msk [vmem:[#allocation3 + $0xb8] sm:$0xff] %vm1004_vm4, %v2931_v34  ;;  %v4006_v49 = vpack.c.bf16 %v3977_v23, %v3976_v53 }
 0x4e9   : > { %3674 = vrot.lane.b32.xlu1 %v3599_v17, %s4362_s14  ;;  %v3089_v48 = vpop.permute.xlu0 %3088  ;;  %v3992_v7 = vld [vmem:[#allocation3 + $0xa0] sm:$0xff] }
 0x4ea   : > { %3178 = vst.msk [vmem:[#allocation3 + $0x30] sm:$0xff] %vm1197_vm5, %v3089_v48  ;;  %v4037_v56 = vsel %vm2094_vm11, %v4006_v49, 0 }
 0x4eb   : > { %v3091_v5 = vpop.permute.xlu1 %3090  ;;  %3704 = vrot.lane.b32.xlu0 %v3614_v10, %s4362_s14  ;;  %v3993_v21 = vld [vmem:[#allocation3 + $0xa8] sm:$0xff] }
 0x4ec   : > { %3179 = vst.msk [vmem:[#allocation3 + $0x38] sm:$0xff] %vm1197_vm5, %v3091_v5  ;;  %v4014_v35 = vpack.c.bf16 %v3993_v21, %v3992_v7 }
 0x4ed   : > { %3706 = vrot.lane.b32.xlu1 %v3615_v28, %s4362_s14  ;;  %v3121_v11 = vpop.permute.xlu0 %3120 }
 0x4ee   : > { %3194 = vst.msk [vmem:[#allocation3 + $0xb0] sm:$0xff] %vm1197_vm5, %v3121_v11  ;;  %4317 = vmatprep.subr.msk.bf16.mxu1 %vm2094_vm11, %v4014_v35  ;;  %v3410_v35 = vld [vmem:[#allocation2 + $0xd8] sm:$0xff] }
 0x4ef   : > { %v3123_v8 = vpop.permute.xlu1 %3122  ;;  %3864 = vrot.lane.b32.xlu0 %v3790_v6, %s4363_s19  ;;  %4259 = vmatpush3.bf16.xpose.msra.mxu1 %v4037_v56  ;;  %v3426_v56 = vld [vmem:[#allocation2 + $0x198] sm:$0xff] }
 0x4f0   : > { %3195 = vst.msk [vmem:[#allocation3 + $0xb8] sm:$0xff] %vm1197_vm5, %v3123_v8 }
 0x4f1   : > { %3866 = vrot.lane.b32.xlu1 %v3791_v24, %s4363_s19  ;;  %v3281_v26 = vpop.permute.xlu0 %3280 }
 0x4f2   : > { %3370 = vst.msk [vmem:[#allocation3 + $0x30] sm:$0xff] %vm1390_vm7, %v3281_v26 }
 0x4f3   : > { %v3283_v57 = vpop.permute.xlu1 %3282  ;;  %3896 = vrot.lane.b32.xlu0 %v3806_v29, %s4363_s19 }
 0x4f4   : > { %3371 = vst.msk [vmem:[#allocation3 + $0x38] sm:$0xff] %vm1390_vm7, %v3283_v57  ;;  %v3602_v57 = vld [vmem:[#allocation2 + $0xd9] sm:$0xff] }
 0x4f5   : > { %3898 = vrot.lane.b32.xlu1 %v3807_v54, %s4363_s19  ;;  %v3313_v60 = vpop.permute.xlu0 %3312 }
 0x4f6   : > { %3386 = vst.msk [vmem:[#allocation3 + $0xb0] sm:$0xff] %vm1390_vm7, %v3313_v60 }
 0x4f7   : > { %v3315_v0 = vpop.permute.xlu1 %3314  ;;  %2940 = vrot.lane.b32.xlu0 %v2848_v15, %s4358_s30  ;;  %v3603_v15 = vld [vmem:[#allocation2 + $0xe1] sm:$0xff] }
 0x4f8   : > { %3387 = vst.msk [vmem:[#allocation3 + $0xb8] sm:$0xff] %vm1390_vm7, %v3315_v0  ;;  %v3618_v0 = vld [vmem:[#allocation2 + $0x199] sm:$0xff] }
 0x4f9   : > { %2942 = vrot.lane.b32.xlu1 %v2849_v38, %s4358_s30  ;;  %v3473_v12 = vpop.permute.xlu0 %3472 }
 0x4fa   : > { %3562 = vst.msk [vmem:[#allocation3 + $0x30] sm:$0xff] %vm1584_vm8, %v3473_v12 }
 0x4fb   : > { %v3475_v16 = vpop.permute.xlu1 %3474  ;;  %3100 = vrot.lane.b32.xlu0 %v3598_v22, %s4359_s7  ;;  %v3809_v22 = vld [vmem:[#allocation2 + $0x18a] sm:$0xff] }
 0x4fc   : > { %3563 = vst.msk [vmem:[#allocation3 + $0x38] sm:$0xff] %vm1584_vm8, %v3475_v16  ;;  %v3619_v16 = vld [vmem:[#allocation2 + $0x1a1] sm:$0xff] }
 0x4fd   : > { %3102 = vrot.lane.b32.xlu1 %v3599_v17, %s4359_s7  ;;  %v3505_v37 = vpop.permute.xlu0 %3504 }
 0x4fe   : > { %3578 = vst.msk [vmem:[#allocation3 + $0xb0] sm:$0xff] %vm1584_vm8, %v3505_v37 }
 0x4ff   : > { %v3507_v39 = vpop.permute.xlu1 %3506  ;;  %3132 = vrot.lane.b32.xlu0 %v3614_v10, %s4359_s7 }
 0x500   : > { %3579 = vst.msk [vmem:[#allocation3 + $0xb8] sm:$0xff] %vm1584_vm8, %v3507_v39 }
 0x501   : > { %3134 = vrot.lane.b32.xlu1 %v3615_v28, %s4359_s7  ;;  %v3665_v20 = vpop.permute.xlu0 %3664 }
 0x502   : > { %3754 = vst.msk [vmem:[#allocation3 + $0x30] sm:$0xff] %vm1777_vm9, %v3665_v20 }
 0x503   : > { %v3667_v33 = vpop.permute.xlu1 %3666  ;;  %3292 = vrot.lane.b32.xlu0 %v3790_v6, %s4360_s8  ;;  %v3411_v6 = vld [vmem:[#allocation2 + $0xe0] sm:$0xff] }
 0x504   : > { %3755 = vst.msk [vmem:[#allocation3 + $0x38] sm:$0xff] %vm1777_vm9, %v3667_v33 }
 0x505   : > { %3294 = vrot.lane.b32.xlu1 %v3791_v24, %s4360_s8  ;;  %v3697_v40 = vpop.permute.xlu0 %3696  ;;  %v3427_v24 = vld [vmem:[#allocation2 + $0x1a0] sm:$0xff] }
 0x506   : > { %3770 = vst.msk [vmem:[#allocation3 + $0xb0] sm:$0xff] %vm1777_vm9, %v3697_v40 }
 0x507   : > { %v3699_v41 = vpop.permute.xlu1 %3698  ;;  %3324 = vrot.lane.b32.xlu0 %v3806_v29, %s4360_s8 }
 0x508   : > { %3771 = vst.msk [vmem:[#allocation3 + $0xb8] sm:$0xff] %vm1777_vm9, %v3699_v41 }
 0x509   : > { %3326 = vrot.lane.b32.xlu1 %v3807_v54, %s4360_s8  ;;  %v3857_v42 = vpop.permute.xlu0 %3856 }
 0x50a   : > { %3946 = vst.msk [vmem:[#allocation3 + $0x30] sm:$0xff] %vm1970_vm10, %v3857_v42  ;;  %v3794_v42 = vld [vmem:[#allocation2 + $0xda] sm:$0xff] }
 0x50b   : > { %v3859_v19 = vpop.permute.xlu1 %3858  ;;  %3484 = vrot.lane.b32.xlu0 %v3408_v55, %s4361_s9 }
 0x50c   : > { %3947 = vst.msk [vmem:[#allocation3 + $0x38] sm:$0xff] %vm1970_vm10, %v3859_v19 }
 0x50d   : > { %3486 = vrot.lane.b32.xlu1 %v3409_v3, %s4361_s9  ;;  %v3889_v9 = vpop.permute.xlu0 %3888  ;;  %v3795_v3 = vld [vmem:[#allocation2 + $0xe2] sm:$0xff] }
 0x50e   : > { %3962 = vst.msk [vmem:[#allocation3 + $0xb0] sm:$0xff] %vm1970_vm10, %v3889_v9  ;;  %v3810_v9 = vld [vmem:[#allocation2 + $0x19a] sm:$0xff] }
 0x50f   : > { %v3891_v27 = vpop.permute.xlu1 %3890  ;;  %3516 = vrot.lane.b32.xlu0 %v3424_v18, %s4361_s9 }
 0x510   : > { %3963 = vst.msk [vmem:[#allocation3 + $0xb8] sm:$0xff] %vm1970_vm10, %v3891_v27  ;;  %v3811_v27 = vld [vmem:[#allocation2 + $0x1a2] sm:$0xff] }
 0x511   : > { %3518 = vrot.lane.b32.xlu1 %v3425_v31, %s4361_s9  ;;  %v2933_v1 = vpop.permute.xlu0 %2932  ;;  %v3978_v63 = vld [vmem:[#allocation3 + $0x30] sm:$0xff] }
 0x512   : > { %3004 = vst.msk [vmem:[#allocation3 + $0xc0] sm:$0xff] %vm1004_vm4, %v2933_v1  ;;  %v6361_v1 = vld [vmem:[%s6450_s4] sm:$0xf] }
 0x513   : > { %v2935_v30 = vpop.permute.xlu1 %2934  ;;  %3676 = vrot.lane.b32.xlu0 %v3600_v43, %s4362_s14  ;;  %v3979_v32 = vld [vmem:[#allocation3 + $0x38] sm:$0xff]  ;;  %4270 = vmatprep.mubr.msk.bf16.mxu1 %vm2094_vm11, %v6361_v1 }
 0x514   : > { %3005 = vst.msk [vmem:[#allocation3 + $0xc8] sm:$0xff] %vm1004_vm4, %v2935_v30  ;;  %v4007_v14 = vpack.c.bf16 %v3979_v32, %v3978_v63  ;;  %v4364_v63 = vmov 0  }
 0x515   : > { %3678 = vrot.lane.b32.xlu1 %v3601_v50, %s4362_s14  ;;  %v3093_v36 = vpop.permute.xlu0 %3092  ;;  %v3994_v44 = vld [vmem:[#allocation3 + $0xb0] sm:$0xff]  ;;  %4341 = vset.pattern.permute.xlu0 %v4364_v63 }
 0x516   : > { %3180 = vst.msk [vmem:[#allocation3 + $0x40] sm:$0xff] %vm1197_vm5, %v3093_v36  ;;  %v4040_v45 = vsel %vm2094_vm11, %v4007_v14, 0 }
 0x517   : > { %v3095_v59 = vpop.permute.xlu1 %3094  ;;  %3708 = vrot.lane.b32.xlu0 %v3616_v51, %s4362_s14  ;;  %v3995_v47 = vld [vmem:[#allocation3 + $0xb8] sm:$0xff] }
 0x518   : > { %3181 = vst.msk [vmem:[#allocation3 + $0x48] sm:$0xff] %vm1197_vm5, %v3095_v59  ;;  %v4015_v61 = vpack.c.bf16 %v3995_v47, %v3994_v44 }
 0x519   : > { %3710 = vrot.lane.b32.xlu1 %v3617_v58, %s4362_s14  ;;  %v3125_v13 = vpop.permute.xlu0 %3124 }
 0x51a   : > { %3196 = vst.msk [vmem:[#allocation3 + $0xc0] sm:$0xff] %vm1197_vm5, %v3125_v13  ;;  %4318 = vmatprep.subr.msk.bf16.mxu1 %vm2094_vm11, %v4015_v61 }
 0x51b   : > { %v3127_v62 = vpop.permute.xlu1 %3126  ;;  %3868 = vrot.lane.b32.xlu0 %v3792_v2, %s4363_s19  ;;  %4261 = vmatpush3.bf16.xpose.msra.mxu1 %v4040_v45 }
 0x51c   : > { %3197 = vst.msk [vmem:[#allocation3 + $0xc8] sm:$0xff] %vm1197_vm5, %v3127_v62 }
 0x51d   : > { %3870 = vrot.lane.b32.xlu1 %v3793_v4, %s4363_s19  ;;  %v3285_v52 = vpop.permute.xlu0 %3284 }
 0x51e   : > { %3372 = vst.msk [vmem:[#allocation3 + $0x40] sm:$0xff] %vm1390_vm7, %v3285_v52 }
 0x51f   : > { %v3287_v46 = vpop.permute.xlu1 %3286  ;;  %3900 = vrot.lane.b32.xlu0 %v3808_v25, %s4363_s19 }
 0x520   : > { %3373 = vst.msk [vmem:[#allocation3 + $0x48] sm:$0xff] %vm1390_vm7, %v3287_v46 }
 0x521   : > { %3902 = vrot.lane.b32.xlu1 %v3809_v22, %s4363_s19  ;;  %v3317_v34 = vpop.permute.xlu0 %3316 }
 0x522   : > { %3388 = vst.msk [vmem:[#allocation3 + $0xc0] sm:$0xff] %vm1390_vm7, %v3317_v34 }
 0x523   : > { %v3319_v23 = vpop.permute.xlu1 %3318  ;;  %2944 = vrot.lane.b32.xlu0 %v3424_v18, %s4358_s30 }
 0x524   : > { %3389 = vst.msk [vmem:[#allocation3 + $0xc8] sm:$0xff] %vm1390_vm7, %v3319_v23 }
 0x525   : > { %2946 = vrot.lane.b32.xlu1 %v3425_v31, %s4358_s30  ;;  %v3477_v17 = vpop.permute.xlu0 %3476  ;;  %s4231_s30 = sshll.u32 %s6567_s22, 4 }
 0x526   : > { %3564 = vst.msk [vmem:[#allocation3 + $0x40] sm:$0xff] %vm1584_vm8, %v3477_v17  ;;  %s271_s12 = scalar_lea.vmem %s6452_s6, %s4231_s30 }
 0x527   : > { %v3479_v48 = vpop.permute.xlu1 %3478  ;;  %3104 = vrot.lane.b32.xlu0 %v3600_v43, %s4359_s7 }
 0x528   : > { %3565 = vst.msk [vmem:[#allocation3 + $0x48] sm:$0xff] %vm1584_vm8, %v3479_v48 }
 0x529   : > { %3106 = vrot.lane.b32.xlu1 %v3601_v50, %s4359_s7  ;;  %v3509_v53 = vpop.permute.xlu0 %3508  ;;  %v4021_v50 = vld [vmem:[%s6451_s5] sm:$0xff] }
 0x52a   : > { %3580 = vst.msk [vmem:[#allocation3 + $0xc0] sm:$0xff] %vm1584_vm8, %v3509_v53 }
 0x52b   : > { %v3511_v10 = vpop.permute.xlu1 %3510  ;;  %3136 = vrot.lane.b32.xlu0 %v3616_v51, %s4359_s7 }
 0x52c   : > { %3581 = vst.msk [vmem:[#allocation3 + $0xc8] sm:$0xff] %vm1584_vm8, %v3511_v10 }
 0x52d   : > { %3138 = vrot.lane.b32.xlu1 %v3617_v58, %s4359_s7  ;;  %v3669_v49 = vpop.permute.xlu0 %3668 }
 0x52e   : > { %3756 = vst.msk [vmem:[#allocation3 + $0x40] sm:$0xff] %vm1777_vm9, %v3669_v49 }
 0x52f   : > { %v3671_v5 = vpop.permute.xlu1 %3670  ;;  %3296 = vrot.lane.b32.xlu0 %v3792_v2, %s4360_s8 }
 0x530   : > { %3757 = vst.msk [vmem:[#allocation3 + $0x48] sm:$0xff] %vm1777_vm9, %v3671_v5 }
 0x531   : > { %3298 = vrot.lane.b32.xlu1 %v3793_v4, %s4360_s8  ;;  %v3701_v7 = vpop.permute.xlu0 %3700 }
 0x532   : > { %3772 = vst.msk [vmem:[#allocation3 + $0xc0] sm:$0xff] %vm1777_vm9, %v3701_v7 }
 0x533   : > { %v3703_v21 = vpop.permute.xlu1 %3702  ;;  %3328 = vrot.lane.b32.xlu0 %v3808_v25, %s4360_s8 }
 0x534   : > { %3773 = vst.msk [vmem:[#allocation3 + $0xc8] sm:$0xff] %vm1777_vm9, %v3703_v21 }
 0x535   : > { %3330 = vrot.lane.b32.xlu1 %v3809_v22, %s4360_s8  ;;  %v3861_v28 = vpop.permute.xlu0 %3860 }
 0x536   : > { %3948 = vst.msk [vmem:[#allocation3 + $0x40] sm:$0xff] %vm1970_vm10, %v3861_v28 }
 0x537   : > { %v3863_v11 = vpop.permute.xlu1 %3862  ;;  %3488 = vrot.lane.b32.xlu0 %v3410_v35, %s4361_s9 }
 0x538   : > { %3949 = vst.msk [vmem:[#allocation3 + $0x48] sm:$0xff] %vm1970_vm10, %v3863_v11 }
 0x539   : > { %3490 = vrot.lane.b32.xlu1 %v3411_v6, %s4361_s9  ;;  %v3893_v8 = vpop.permute.xlu0 %3892 }
 0x53a   : > { %3964 = vst.msk [vmem:[#allocation3 + $0xc0] sm:$0xff] %vm1970_vm10, %v3893_v8 }
 0x53b   : > { %v3895_v26 = vpop.permute.xlu1 %3894  ;;  %3520 = vrot.lane.b32.xlu0 %v3426_v56, %s4361_s9 }
 0x53c   : > { %3965 = vst.msk [vmem:[#allocation3 + $0xc8] sm:$0xff] %vm1970_vm10, %v3895_v26 }
 0x53d   : > { %3522 = vrot.lane.b32.xlu1 %v3427_v24, %s4361_s9  ;;  %v2937_v29 = vpop.permute.xlu0 %2936  ;;  %v3980_v12 = vld [vmem:[#allocation3 + $0x40] sm:$0xff]  ;;  %s266_s9 = scalar_lea.vmem %s6447_s1, %s4231_s30 }
 0x53e   : > { %3006 = vst.msk [vmem:[#allocation3 + $0xd0] sm:$0xff] %vm1004_vm4, %v2937_v29 }
 0x53f   : > { %v2939_v54 = vpop.permute.xlu1 %2938  ;;  %3680 = vrot.lane.b32.xlu0 %v3602_v57, %s4362_s14  ;;  %v3981_v60 = vld [vmem:[#allocation3 + $0x48] sm:$0xff] }
 0x540   : > { %3007 = vst.msk [vmem:[#allocation3 + $0xd8] sm:$0xff] %vm1004_vm4, %v2939_v54  ;;  %v4008_v37 = vpack.c.bf16 %v3981_v60, %v3980_v12 }
 0x541   : > { %3682 = vrot.lane.b32.xlu1 %v3603_v15, %s4362_s14  ;;  %v3097_v38 = vpop.permute.xlu0 %3096  ;;  %v3996_v20 = vld [vmem:[#allocation3 + $0xc0] sm:$0xff] }
 0x542   : > { %3182 = vst.msk [vmem:[#allocation3 + $0x50] sm:$0xff] %vm1197_vm5, %v3097_v38  ;;  %v4043_v55 = vsel %vm2094_vm11, %v4008_v37, 0 }
 0x543   : > { %v3099_v39 = vpop.permute.xlu1 %3098  ;;  %3712 = vrot.lane.b32.xlu0 %v3618_v0, %s4362_s14  ;;  %v3997_v33 = vld [vmem:[#allocation3 + $0xc8] sm:$0xff] }
 0x544   : > { %3183 = vst.msk [vmem:[#allocation3 + $0x58] sm:$0xff] %vm1197_vm5, %v3099_v39  ;;  %v4016_v40 = vpack.c.bf16 %v3997_v33, %v3996_v20 }
 0x545   : > { %3714 = vrot.lane.b32.xlu1 %v3619_v16, %s4362_s14  ;;  %v3129_v41 = vpop.permute.xlu0 %3128 }
 0x546   : > { %3198 = vst.msk [vmem:[#allocation3 + $0xd0] sm:$0xff] %vm1197_vm5, %v3129_v41  ;;  %4319 = vmatprep.subr.msk.bf16.mxu1 %vm2094_vm11, %v4016_v40 }
 0x547   : > { %v3131_v19 = vpop.permute.xlu1 %3130  ;;  %3872 = vrot.lane.b32.xlu0 %v3794_v42, %s4363_s19  ;;  %4263 = vmatpush3.bf16.xpose.msra.mxu1 %v4043_v55 }
 0x548   : > { %3199 = vst.msk [vmem:[#allocation3 + $0xd8] sm:$0xff] %vm1197_vm5, %v3131_v19 }
 0x549   : > { %3874 = vrot.lane.b32.xlu1 %v3795_v3, %s4363_s19  ;;  %v3289_v18 = vpop.permute.xlu0 %3288 }
 0x54a   : > { %3374 = vst.msk [vmem:[#allocation3 + $0x50] sm:$0xff] %vm1390_vm7, %v3289_v18 }
 0x54b   : > { %v3291_v31 = vpop.permute.xlu1 %3290  ;;  %3904 = vrot.lane.b32.xlu0 %v3810_v9, %s4363_s19 }
 0x54c   : > { %3375 = vst.msk [vmem:[#allocation3 + $0x58] sm:$0xff] %vm1390_vm7, %v3291_v31 }
 0x54d   : > { %3906 = vrot.lane.b32.xlu1 %v3811_v27, %s4363_s19  ;;  %v3321_v43 = vpop.permute.xlu0 %3320 }
 0x54e   : > { %3390 = vst.msk [vmem:[#allocation3 + $0xd0] sm:$0xff] %vm1390_vm7, %v3321_v43 }
 0x54f   : > { %v3323_v30 = vpop.permute.xlu1 %3322  ;;  %4024 = vperm.xlu0 %4341, %v4021_v50  }
 0x550   : > { %3391 = vst.msk [vmem:[#allocation3 + $0xd8] sm:$0xff] %vm1390_vm7, %v3323_v30 }
 0x551   : > { %v3481_v32 = vpop.permute.xlu0 %3480 }
 0x552   : > { %3566 = vst.msk [vmem:[#allocation3 + $0x50] sm:$0xff] %vm1584_vm8, %v3481_v32 }
 0x553   : > { %v3483_v36 = vpop.permute.xlu1 %3482 }
 0x554   : > { %3567 = vst.msk [vmem:[#allocation3 + $0x58] sm:$0xff] %vm1584_vm8, %v3483_v36 }
 0x555   : > { %v3513_v51 = vpop.permute.xlu0 %3512 }
 0x556   : > { %3582 = vst.msk [vmem:[#allocation3 + $0xd0] sm:$0xff] %vm1584_vm8, %v3513_v51 }
 0x557   : > { %v3515_v14 = vpop.permute.xlu1 %3514 }
 0x558   : > { %3583 = vst.msk [vmem:[#allocation3 + $0xd8] sm:$0xff] %vm1584_vm8, %v3515_v14 }
 0x559   : > { %v3673_v59 = vpop.permute.xlu0 %3672 }
 0x55a   : > { %3758 = vst.msk [vmem:[#allocation3 + $0x50] sm:$0xff] %vm1777_vm9, %v3673_v59 }
 0x55b   : > { %v3675_v44 = vpop.permute.xlu1 %3674 }
 0x55c   : > { %3759 = vst.msk [vmem:[#allocation3 + $0x58] sm:$0xff] %vm1777_vm9, %v3675_v44 }
 0x55d   : > { %v3705_v47 = vpop.permute.xlu0 %3704 }
 0x55e   : > { %3774 = vst.msk [vmem:[#allocation3 + $0xd0] sm:$0xff] %vm1777_vm9, %v3705_v47 }
 0x55f   : > { %v3707_v58 = vpop.permute.xlu1 %3706 }
 0x560   : > { %3775 = vst.msk [vmem:[#allocation3 + $0xd8] sm:$0xff] %vm1777_vm9, %v3707_v58 }
 0x561   : > { %v3865_v61 = vpop.permute.xlu0 %3864 }
 0x562   : > { %3950 = vst.msk [vmem:[#allocation3 + $0x50] sm:$0xff] %vm1970_vm10, %v3865_v61 }
 0x563   : > { %v3867_v13 = vpop.permute.xlu1 %3866 }
 0x564   : > { %3951 = vst.msk [vmem:[#allocation3 + $0x58] sm:$0xff] %vm1970_vm10, %v3867_v13 }
 0x565   : > { %v3897_v2 = vpop.permute.xlu0 %3896 }
 0x566   : > { %3966 = vst.msk [vmem:[#allocation3 + $0xd0] sm:$0xff] %vm1970_vm10, %v3897_v2 }
 0x567   : > { %v3899_v45 = vpop.permute.xlu1 %3898 }
 0x568   : > { %3967 = vst.msk [vmem:[#allocation3 + $0xd8] sm:$0xff] %vm1970_vm10, %v3899_v45 }
 0x569   : > { %v2941_v62 = vpop.permute.xlu0 %2940  ;;  %v3982_v46 = vld [vmem:[#allocation3 + $0x50] sm:$0xff] }
 0x56a   : > { %3008 = vst.msk [vmem:[#allocation3 + $0xe0] sm:$0xff] %vm1004_vm4, %v2941_v62 }
 0x56b   : > { %v2943_v4 = vpop.permute.xlu1 %2942  ;;  %v3983_v52 = vld [vmem:[#allocation3 + $0x58] sm:$0xff] }
 0x56c   : > { %3009 = vst.msk [vmem:[#allocation3 + $0xe8] sm:$0xff] %vm1004_vm4, %v2943_v4  ;;  %v4009_v22 = vpack.c.bf16 %v3983_v52, %v3982_v46  ;;  %v4119_v46 = vld [vmem:[%s266_s9] sm:$0xff] }
 0x56d   : > { %v3101_v25 = vpop.permute.xlu0 %3100  ;;  %v3998_v23 = vld [vmem:[#allocation3 + $0xd0] sm:$0xff] }
 0x56e   : > { %3184 = vst.msk [vmem:[#allocation3 + $0x60] sm:$0xff] %vm1197_vm5, %v3101_v25  ;;  %v4046_v10 = vsel %vm2094_vm11, %v4009_v22, 0 }
 0x56f   : > { %v3103_v34 = vpop.permute.xlu1 %3102  ;;  %v3999_v17 = vld [vmem:[#allocation3 + $0xd8] sm:$0xff] }
 0x570   : > { %3185 = vst.msk [vmem:[#allocation3 + $0x68] sm:$0xff] %vm1197_vm5, %v3103_v34  ;;  %v4017_v48 = vpack.c.bf16 %v3999_v17, %v3998_v23  ;;  %v4120_v23 = vld [vmem:[%s266_s9 + $0x8] sm:$0xff] }
 0x571   : > { %v3133_v53 = vpop.permute.xlu0 %3132 }
 0x572   : > { %3200 = vst.msk [vmem:[#allocation3 + $0xe0] sm:$0xff] %vm1197_vm5, %v3133_v53  ;;  %4320 = vmatprep.subr.msk.bf16.mxu1 %vm2094_vm11, %v4017_v48 }
 0x573   : > { %v3135_v49 = vpop.permute.xlu1 %3134  ;;  %4265 = vmatpush3.bf16.xpose.msra.mxu1 %v4046_v10 }
 0x574   : > { %3201 = vst.msk [vmem:[#allocation3 + $0xe8] sm:$0xff] %vm1197_vm5, %v3135_v49 }
 0x575   : > { %v3293_v5 = vpop.permute.xlu0 %3292 }
 0x576   : > { %3376 = vst.msk [vmem:[#allocation3 + $0x60] sm:$0xff] %vm1390_vm7, %v3293_v5 }
 0x577   : > { %v3295_v7 = vpop.permute.xlu1 %3294 }
 0x578   : > { %3377 = vst.msk [vmem:[#allocation3 + $0x68] sm:$0xff] %vm1390_vm7, %v3295_v7 }
 0x579   : > { %v3325_v21 = vpop.permute.xlu0 %3324 }
 0x57a   : > { %3392 = vst.msk [vmem:[#allocation3 + $0xe0] sm:$0xff] %vm1390_vm7, %v3325_v21 }
 0x57b   : > { %v3327_v28 = vpop.permute.xlu1 %3326 }
 0x57c   : > { %3393 = vst.msk [vmem:[#allocation3 + $0xe8] sm:$0xff] %vm1390_vm7, %v3327_v28 }
 0x57d   : > { %v3485_v35 = vpop.permute.xlu0 %3484 }
 0x57e   : > { %3568 = vst.msk [vmem:[#allocation3 + $0x60] sm:$0xff] %vm1584_vm8, %v3485_v35 }
 0x57f   : > { %v3487_v11 = vpop.permute.xlu1 %3486 }
 0x580   : > { %3569 = vst.msk [vmem:[#allocation3 + $0x68] sm:$0xff] %vm1584_vm8, %v3487_v11 }
 0x581   : > { %v3517_v6 = vpop.permute.xlu0 %3516 }
 0x582   : > { %3584 = vst.msk [vmem:[#allocation3 + $0xe0] sm:$0xff] %vm1584_vm8, %v3517_v6 }
 0x583   : > { %v3519_v56 = vpop.permute.xlu1 %3518 }
 0x584   : > { %3585 = vst.msk [vmem:[#allocation3 + $0xe8] sm:$0xff] %vm1584_vm8, %v3519_v56 }
 0x585   : > { %v3677_v8 = vpop.permute.xlu0 %3676 }
 0x586   : > { %3760 = vst.msk [vmem:[#allocation3 + $0x60] sm:$0xff] %vm1777_vm9, %v3677_v8 }
 0x587   : > { %v3679_v24 = vpop.permute.xlu1 %3678 }
 0x588   : > { %3761 = vst.msk [vmem:[#allocation3 + $0x68] sm:$0xff] %vm1777_vm9, %v3679_v24 }
 0x589   : > { %v3709_v26 = vpop.permute.xlu0 %3708 }
 0x58a   : > { %3776 = vst.msk [vmem:[#allocation3 + $0xe0] sm:$0xff] %vm1777_vm9, %v3709_v26 }
 0x58b   : > { %v3711_v29 = vpop.permute.xlu1 %3710 }
 0x58c   : > { %3777 = vst.msk [vmem:[#allocation3 + $0xe8] sm:$0xff] %vm1777_vm9, %v3711_v29 }
 0x58d   : > { %v3869_v57 = vpop.permute.xlu0 %3868 }
 0x58e   : > { %3952 = vst.msk [vmem:[#allocation3 + $0x60] sm:$0xff] %vm1970_vm10, %v3869_v57 }
 0x58f   : > { %v3871_v54 = vpop.permute.xlu1 %3870 }
 0x590   : > { %3953 = vst.msk [vmem:[#allocation3 + $0x68] sm:$0xff] %vm1970_vm10, %v3871_v54 }
 0x591   : > { %v3901_v60 = vpop.permute.xlu0 %3900 }
 0x592   : > { %3968 = vst.msk [vmem:[#allocation3 + $0xe0] sm:$0xff] %vm1970_vm10, %v3901_v60 }
 0x593   : > { %v3903_v15 = vpop.permute.xlu1 %3902 }
 0x594   : > { %3969 = vst.msk [vmem:[#allocation3 + $0xe8] sm:$0xff] %vm1970_vm10, %v3903_v15 }
 0x595   : > { %v2945_v0 = vpop.permute.xlu0 %2944  ;;  %v3984_v37 = vld [vmem:[#allocation3 + $0x60] sm:$0xff] }
 0x596   : > { %3010 = vst.msk [vmem:[#allocation3 + $0xf0] sm:$0xff] %vm1004_vm4, %v2945_v0 }
 0x597   : > { %v2947_v38 = vpop.permute.xlu1 %2946  ;;  %v3985_v12 = vld [vmem:[#allocation3 + $0x68] sm:$0xff] }
 0x598   : > { %3011 = vst.msk [vmem:[#allocation3 + $0xf8] sm:$0xff] %vm1004_vm4, %v2947_v38  ;;  %v4010_v39 = vpack.c.bf16 %v3985_v12, %v3984_v37 }
 0x599   : > { %v3105_v16 = vpop.permute.xlu0 %3104  ;;  %v4000_v33 = vld [vmem:[#allocation3 + $0xe0] sm:$0xff] }
 0x59a   : > { %3186 = vst.msk [vmem:[#allocation3 + $0x70] sm:$0xff] %vm1197_vm5, %v3105_v16  ;;  %v4049_v55 = vsel %vm2094_vm11, %v4010_v39, 0 }
 0x59b   : > { %v3107_v20 = vpop.permute.xlu1 %3106  ;;  %v4001_v40 = vld [vmem:[#allocation3 + $0xe8] sm:$0xff] }
 0x59c   : > { %3187 = vst.msk [vmem:[#allocation3 + $0x78] sm:$0xff] %vm1197_vm5, %v3107_v20  ;;  %v4018_v41 = vpack.c.bf16 %v4001_v40, %v4000_v33 }
 0x59d   : > { %v3137_v42 = vpop.permute.xlu0 %3136 }
 0x59e   : > { %3202 = vst.msk [vmem:[#allocation3 + $0xf0] sm:$0xff] %vm1197_vm5, %v3137_v42  ;;  %4321 = vmatprep.subr.msk.bf16.mxu1 %vm2094_vm11, %v4018_v41 }
 0x59f   : > { %v3139_v19 = vpop.permute.xlu1 %3138  ;;  %4267 = vmatpush3.bf16.xpose.msra.mxu1 %v4049_v55 }
 0x5a0   : > { %3203 = vst.msk [vmem:[#allocation3 + $0xf8] sm:$0xff] %vm1197_vm5, %v3139_v19 }
 0x5a1   : > { %v3297_v3 = vpop.permute.xlu0 %3296 }
 0x5a2   : > { %3378 = vst.msk [vmem:[#allocation3 + $0x70] sm:$0xff] %vm1390_vm7, %v3297_v3 }
 0x5a3   : > { %v3299_v9 = vpop.permute.xlu1 %3298 }
 0x5a4   : > { %3379 = vst.msk [vmem:[#allocation3 + $0x78] sm:$0xff] %vm1390_vm7, %v3299_v9 }
 0x5a5   : > { %v3329_v18 = vpop.permute.xlu0 %3328 }
 0x5a6   : > { %3394 = vst.msk [vmem:[#allocation3 + $0xf0] sm:$0xff] %vm1390_vm7, %v3329_v18 }
 0x5a7   : > { %v3331_v27 = vpop.permute.xlu1 %3330 }
 0x5a8   : > { %3395 = vst.msk [vmem:[#allocation3 + $0xf8] sm:$0xff] %vm1390_vm7, %v3331_v27 }
 0x5a9   : > { %v3489_v31 = vpop.permute.xlu0 %3488 }
 0x5aa   : > { %3570 = vst.msk [vmem:[#allocation3 + $0x70] sm:$0xff] %vm1584_vm8, %v3489_v31 }
 0x5ab   : > { %v3491_v43 = vpop.permute.xlu1 %3490 }
 0x5ac   : > { %3571 = vst.msk [vmem:[#allocation3 + $0x78] sm:$0xff] %vm1584_vm8, %v3491_v43 }
 0x5ad   : > { %v3521_v30 = vpop.permute.xlu0 %3520 }
 0x5ae   : > { %3586 = vst.msk [vmem:[#allocation3 + $0xf0] sm:$0xff] %vm1584_vm8, %v3521_v30 }
 0x5af   : > { %v3523_v32 = vpop.permute.xlu1 %3522 }
 0x5b0   : > { %3587 = vst.msk [vmem:[#allocation3 + $0xf8] sm:$0xff] %vm1584_vm8, %v3523_v32 }
 0x5b1   : > { %v3681_v50 = vpop.permute.xlu0 %3680 }
 0x5b2   : > { %3762 = vst.msk [vmem:[#allocation3 + $0x70] sm:$0xff] %vm1777_vm9, %v3681_v50 }
 0x5b3   : > { %v3683_v36 = vpop.permute.xlu1 %3682 }
 0x5b4   : > { %3763 = vst.msk [vmem:[#allocation3 + $0x78] sm:$0xff] %vm1777_vm9, %v3683_v36 }
 0x5b5   : > { %v3713_v63 = vpop.permute.xlu0 %3712 }
 0x5b6   : > { %3778 = vst.msk [vmem:[#allocation3 + $0xf0] sm:$0xff] %vm1777_vm9, %v3713_v63 }
 0x5b7   : > { %v3715_v51 = vpop.permute.xlu1 %3714 }
 0x5b8   : > { %3779 = vst.msk [vmem:[#allocation3 + $0xf8] sm:$0xff] %vm1777_vm9, %v3715_v51 }
 0x5b9   : > { %v3873_v14 = vpop.permute.xlu0 %3872 }
 0x5ba   : > { %3954 = vst.msk [vmem:[#allocation3 + $0x70] sm:$0xff] %vm1970_vm10, %v3873_v14 }
 0x5bb   : > { %v3875_v59 = vpop.permute.xlu1 %3874 }
 0x5bc   : > { %3955 = vst.msk [vmem:[#allocation3 + $0x78] sm:$0xff] %vm1970_vm10, %v3875_v59 }
 0x5bd   : > { %v3905_v44 = vpop.permute.xlu0 %3904 }
 0x5be   : > { %3970 = vst.msk [vmem:[#allocation3 + $0xf0] sm:$0xff] %vm1970_vm10, %v3905_v44 }
 0x5bf   : > { %v3907_v47 = vpop.permute.xlu1 %3906 }
 0x5c0   : > { %3971 = vst.msk [vmem:[#allocation3 + $0xf8] sm:$0xff] %vm1970_vm10, %v3907_v47 }
 0x5c1   : > { %v3986_v13 = vld [vmem:[#allocation3 + $0x70] sm:$0xff] }
 0x5c3   : > { %v3987_v58 = vld [vmem:[#allocation3 + $0x78] sm:$0xff] }
 0x5c4   : > { %v4011_v2 = vpack.c.bf16 %v3987_v58, %v3986_v13 }
 0x5c5   : > { %v4002_v61 = vld [vmem:[#allocation3 + $0xf0] sm:$0xff] }
 0x5c6   : > { %v4052_v4 = vsel %vm2094_vm11, %v4011_v2, 0 }
 0x5c7   : > { %v4003_v45 = vld [vmem:[#allocation3 + $0xf8] sm:$0xff] }
 0x5c8   : > { %v4019_v62 = vpack.c.bf16 %v4003_v45, %v4002_v61 }
 0x5ca   : > { %4322 = vmatprep.subr.msk.bf16.mxu1 %vm2094_vm11, %v4019_v62 }
 0x5cb   : > { %4269 = vmatpush3.bf16.xpose.msra.mxu1 %v4052_v4 }
 0x5ce   : > { %v4025_v52 = vpop.permute.xlu0 %4024 }
 0x5d2   : > { %4271 = vmatmul.mubr.msk.bf16.vlgmr.msra.gmra.mrb[0].mxu1 %vm2094_vm11, %v6361_v1 }
 0x6a5   : > { %v4112_v25 = vpop.f32.mrb[0].mxu1 }
 0x6a6   : > { %v4113_v22 = vadd.f32 %v4112_v25, %v4025_v52  ;;  %v4114_v34 = vpop.f32.mrb[1].mxu1 }
 0x6a7   : > { %v4115_v17 = vadd.f32 %v4114_v34, %v4025_v52  ;;  %v4116_v48 = vpop.f32.mrb[2].mxu1 }
 0x6a8   : > { %v4121_v53 = vadd.f32 %v4119_v46, %v4113_v22  ;;  %v4117_v10 = vpop.f32.mrb[3].mxu1 }
 0x6a9   : > { %v4122_v1 = vadd.f32 %v4120_v23, %v4115_v17 }
 0x6aa   : > { %v4123_v49 = vmax.f32 %v4121_v53, 0.0 }
 0x6ab   : > { %v4124_v5 = vmax.f32 %v4122_v1, 0.0 }
 0x6ac   : > { %4125 = vst [vmem:[%s271_s12] sm:$0xff] %v4123_v49 }
 0x6ad   : > { %4126 = vst [vmem:[%s271_s12 + $0x8] sm:$0xff] %v4124_v5 }
 0x6ae PF: > { %s16_s21 = sadd.s32 1, %s4353_s21  }
 0x6af   : > { %p13_p4 = scmp.ge.s32.totalorder %s16_s21, 4  }
 0x6b1   :  { %15 = sbr.rel (!%p13_p4) target bundleno = 1 (0x1), region = 79 }

</bundles_post_ra>
